<compile_context>
chip_gen: v5e
topology: v5e:2x2
jax: 0.10.0
libtpu: 0.0.40
codegen_flags: <defaults>
</compile_context>

<pallas_src>
import functools

import jax
import jax.numpy as jnp
import numpy as np
from jax.experimental import pallas as pl
from jax.experimental.pallas import tpu as pltpu

_K = 3            # conv kernel size (module hard-codes 3)
_STRIDE = 2
_PAD = 1
_TAPS = _K * _K


def _conv_out(h):
    return (h + 2 * _PAD - _K) // _STRIDE + 1


# ----------------------------------------------------------------------------
# Static im2col composition plan (per sample).
#
# Row orderings (per sample) are chosen so every layer in the fused kernel
# consumes CONTIGUOUS row slices of the previous layer's rows:
#   conv3 output rows :  q = p3                  (P3 rows, p3 = i3*W3 + j3)
#   conv2 dup rows    :  r = t3 * P3 + p3        (R2 = 9*P3 rows)
#   conv1 dup rows    :  s = t2 * R2 + r         (R1 = 9*R2 rows)
# so layer-L's tap-t contribution is rows [t*Rprev, (t+1)*Rprev) of layer L-1.
# Rows whose source pixel falls in the zero padding are masked to zero.
# ----------------------------------------------------------------------------
def _build_plan(input_size):
    H0 = input_size
    H1 = _conv_out(H0)
    H2 = _conv_out(H1)
    H3 = _conv_out(H2)
    P3 = H3 * H3
    R2 = _TAPS * P3
    R1 = _TAPS * R2

    # conv3 output pixels (pixel-major)
    p3 = np.arange(P3)
    i3, j3 = p3 // H3, p3 % H3

    # conv2 duplicated rows: r = t3*P3 + p3
    t3 = np.arange(_TAPS)
    kh3, kw3 = t3 // _K, t3 % _K
    i2 = (_STRIDE * i3[None, :] - _PAD + kh3[:, None]).reshape(R2)
    j2 = (_STRIDE * j3[None, :] - _PAD + kw3[:, None]).reshape(R2)
    valid2 = (i2 >= 0) & (i2 < H2) & (j2 >= 0) & (j2 < H2)

    # conv1 duplicated rows: s = t2*R2 + r
    t2 = np.arange(_TAPS)
    kh2, kw2 = t2 // _K, t2 % _K
    i1 = (_STRIDE * i2[None, :] - _PAD + kh2[:, None]).reshape(R1)
    j1 = (_STRIDE * j2[None, :] - _PAD + kw2[:, None]).reshape(R1)
    valid1 = (i1 >= 0) & (i1 < H1) & (j1 >= 0) & (j1 < H1)

    # Gather indices into the zero-padded input frame (per sample), idx[s, t1].
    t1 = np.arange(_TAPS)
    kh1, kw1 = t1 // _K, t1 % _K
    hp = _STRIDE * i1[:, None] - _PAD + kh1[None, :] + _PAD
    wp = _STRIDE * j1[:, None] - _PAD + kw1[None, :] + _PAD
    hp = np.clip(hp, 0, H0 + 2 * _PAD - 1)      # OOB rows are masked anyway
    wp = np.clip(wp, 0, H0 + 2 * _PAD - 1)
    idx = (hp * (H0 + 2 * _PAD) + wp).astype(np.int32)      # (R1, 9)

    return {
        "H1": H1, "H2": H2, "H3": H3, "P3": P3, "R2": R2, "R1": R1,
        "idx": idx,
        "mask1": valid1.astype(np.float32).reshape(R1, 1),
        "mask2": valid2.astype(np.float32).reshape(R2, 1),
    }


# ----------------------------------------------------------------------------
# Fused encoder kernel: one grid step == one batch sample.
# ----------------------------------------------------------------------------
def _encoder_kernel(p0_ref, m1_ref, m2_ref,
                    w1_ref, b1_ref, w2_ref, b2_ref, w3_ref, b3_ref,
                    wf_ref, bf_ref, wh_ref, bh_ref,
                    out_ref, a2_ref, a3_ref):
    f32 = jnp.float32
    c1 = w1_ref.shape[1]          # conv1 out channels
    c2 = w2_ref.shape[1]          # conv2 out channels
    c3 = w3_ref.shape[1]          # conv3 out channels
    r2 = a2_ref.shape[0]          # duplicated conv2 rows per sample
    p3 = a3_ref.shape[0]          # conv3 output pixels per sample

    w1 = w1_ref[...]
    b1 = b1_ref[...]

    # ---- conv1 fused into conv2: conv2's tap-t2 rows are exactly conv1's
    # ---- chunk t2, so each conv1 chunk is computed and consumed immediately.
    acc2 = jnp.zeros((r2, c2), f32)
    for t2 in range(_TAPS):
        a1 = jnp.dot(p0_ref[t2 * r2:(t2 + 1) * r2, :], w1,
                     preferred_element_type=f32)
        a1 = jnp.maximum(a1 + b1, 0.0) * m1_ref[t2 * r2:(t2 + 1) * r2, :]
        acc2 = acc2 + jnp.dot(a1, w2_ref[t2 * c1:(t2 + 1) * c1, :],
                              preferred_element_type=f32)
    a2_ref[...] = jnp.maximum(acc2 + b2_ref[...], 0.0) * m2_ref[...]

    # ---- conv3: 9 tap-group matmuls over contiguous row slices of a2.
    acc3 = jnp.zeros((p3, c3), f32)
    for t3 in range(_TAPS):
        acc3 = acc3 + jnp.dot(a2_ref[t3 * p3:(t3 + 1) * p3, :],
                              w3_ref[t3 * c2:(t3 + 1) * c2, :],
                              preferred_element_type=f32)
    a3_ref[...] = jnp.maximum(acc3 + b3_ref[...], 0.0)

    # ---- fc1 (+ReLU): per-pixel (1, c3) x (c3, 256) matmuls, accumulated.
    acc_h = jnp.zeros((1, bf_ref.shape[1]), f32)
    for p in range(p3):
        acc_h = acc_h + jnp.dot(a3_ref[p:p + 1, :],
                                wf_ref[p * c3:(p + 1) * c3, :],
                                preferred_element_type=f32)
    h = jnp.maximum(acc_h + bf_ref[...], 0.0)

    # ---- fused mu | logvar heads.
    out_ref[0] = jnp.dot(h, wh_ref[...], preferred_element_type=f32) + bh_ref[...]


# ----------------------------------------------------------------------------
# Parameters: raw (PyTorch layout) + one-time kernel-side preprocessing.
# ----------------------------------------------------------------------------
def init_params(key, in_ch, d_size, latent_dim):
    ks = jax.random.split(key, 12)
    s = 0.05
    return {
        "c1_w": jax.random.normal(ks[0], (d_size, in_ch, 3, 3), jnp.float32) * s,
        "c1_b": jax.random.normal(ks[1], (d_size,), jnp.float32) * s,
        "c2_w": jax.random.normal(ks[2], (d_size * 2, d_size, 3, 3), jnp.float32) * s,
        "c2_b": jax.random.normal(ks[3], (d_size * 2,), jnp.float32) * s,
        "c3_w": jax.random.normal(ks[4], (d_size * 4, d_size * 2, 3, 3), jnp.float32) * s,
        "c3_b": jax.random.normal(ks[5], (d_size * 4,), jnp.float32) * s,
        "fc1_w": jax.random.normal(ks[6], (256, d_size * 4 * 4 * 4), jnp.float32) * s,
        "fc1_b": jax.random.normal(ks[7], (256,), jnp.float32) * s,
        "fc_mu_w": jax.random.normal(ks[8], (latent_dim, 256), jnp.float32) * s,
        "fc_mu_b": jax.random.normal(ks[9], (latent_dim,), jnp.float32) * s,
        "fc_lv_w": jax.random.normal(ks[10], (latent_dim, 256), jnp.float32) * s,
        "fc_lv_b": jax.random.normal(ks[11], (latent_dim,), jnp.float32) * s,
    }


def preprocess_params(params, plan):
    """One-time weight prep: tap-grouped conv weights, fc1 column permutation,
    mu/logvar head fusion, and the static gather/mask tables."""
    def conv_wmat(w):                                   # OIHW -> ((kh,kw,c), O)
        o, c, kh, kw = w.shape
        return w.transpose(2, 3, 1, 0).reshape(kh * kw * c, o).astype(jnp.float32)

    def row_bias(b):
        return jnp.asarray(b, jnp.float32).reshape(1, -1)

    c3_out = params["c3_w"].shape[0]
    n_fc, fc_in = params["fc1_w"].shape
    assert fc_in == c3_out * plan["P3"], "fc1 expects the module's 4x4 spatial map"

    # PyTorch flattens NCHW (c,h,w); permute fc1 columns once into pixel-major
    # (h,w,c) blocks so the kernel can use contiguous conv3-row slices.
    fc1 = params["fc1_w"].reshape(n_fc, c3_out, plan["H3"], plan["H3"])
    fc1 = fc1.transpose(2, 3, 1, 0).reshape(plan["P3"] * c3_out, n_fc)

    heads_w = jnp.concatenate([params["fc_mu_w"], params["fc_lv_w"]], axis=0)
    heads_b = jnp.concatenate([params["fc_mu_b"], params["fc_lv_b"]], axis=0)

    return {
        "w1": conv_wmat(params["c1_w"]), "b1": row_bias(params["c1_b"]),
        "w2": conv_wmat(params["c2_w"]), "b2": row_bias(params["c2_b"]),
        "w3": conv_wmat(params["c3_w"]), "b3": row_bias(params["c3_b"]),
        "wf": fc1.astype(jnp.float32), "bf": row_bias(params["fc1_b"]),
        "wh": heads_w.T.astype(jnp.float32), "bh": row_bias(heads_b),
        "idx": jnp.asarray(plan["idx"], jnp.int32),
        "mask1": jnp.asarray(plan["mask1"], jnp.float32),
        "mask2": jnp.asarray(plan["mask2"], jnp.float32),
    }


# ----------------------------------------------------------------------------
# Encoder forward (mirrors the PyTorch module): one fused pallas_call.
# ----------------------------------------------------------------------------
@jax.jit
def encoder_forward(x_nchw, pp):
    n_batch, c0, h0, _ = x_nchw.shape
    r1, taps = pp["idx"].shape
    r2 = pp["mask2"].shape[0]
    p3 = r2 // _TAPS
    c1 = pp["w1"].shape[1]
    c2 = pp["w2"].shape[1]
    c3 = pp["w3"].shape[1]
    n_fc = pp["wf"].shape[1]
    two_lat = pp["wh"].shape[1]

    # NCHW -> NHWC once, zero-pad the border once, flatten pixels.
    xh = jnp.transpose(x_nchw, (0, 2, 3, 1)).astype(jnp.float32)
    xp = jnp.pad(xh, ((0, 0), (_PAD, _PAD), (_PAD, _PAD), (0, 0)))
    frame = (h0 + 2 * _PAD) * (h0 + 2 * _PAD)
    xf = xp.reshape(n_batch * frame, c0)

    # Composed im2col of the *input only* (single small gather).  Every other
    # layer's patches are formed in-kernel from contiguous row slices.
    idx = pp["idx"][None] + (jnp.arange(n_batch, dtype=jnp.int32) * frame)[:, None, None]
    p0 = jnp.take(xf, idx.reshape(n_batch * r1, taps), axis=0)
    p0 = p0.reshape(n_batch * r1, taps * c0)

    grid_spec = pltpu.PrefetchScalarGridSpec(
        num_scalar_prefetch=0,
        grid=(n_batch,),
        in_specs=[
            pl.BlockSpec((r1, taps * c0), lambda n: (n, 0)),     # per-sample patches
            pl.BlockSpec((r1, 1), lambda n: (0, 0)),             # mask1 (shared)
            pl.BlockSpec((r2, 1), lambda n: (0, 0)),             # mask2 (shared)
            pl.BlockSpec((taps * c0, c1), lambda n: (0, 0)),     # conv1 weight
            pl.BlockSpec((1, c1), lambda n: (0, 0)),             # conv1 bias
            pl.BlockSpec((_TAPS * c1, c2), lambda n: (0, 0)),    # conv2 weight
            pl.BlockSpec((1, c2), lambda n: (0, 0)),             # conv2 bias
            pl.BlockSpec((_TAPS * c2, c3), lambda n: (0, 0)),    # conv3 weight
            pl.BlockSpec((1, c3), lambda n: (0, 0)),             # conv3 bias
            pl.BlockSpec((p3 * c3, n_fc), lambda n: (0, 0)),     # fc1 weight (permuted)
            pl.BlockSpec((1, n_fc), lambda n: (0, 0)),           # fc1 bias
            pl.BlockSpec((n_fc, two_lat), lambda n: (0, 0)),     # fused mu|logvar weight
            pl.BlockSpec((1, two_lat), lambda n: (0, 0)),        # fused mu|logvar bias
        ],
        out_specs=pl.BlockSpec((1, 1, two_lat), lambda n: (n, 0, 0)),
        scratch_shapes=[
            pltpu.VMEM((r2, c2), jnp.float32),                   # conv2 activations
            pltpu.VMEM((p3, c3), jnp.float32),                   # conv3 activations
        ],
    )

    out = pl.pallas_call(
        _encoder_kernel,
        out_shape=jax.ShapeDtypeStruct((n_batch, 1, two_lat), jnp.float32),
        grid_spec=grid_spec,
        compiler_params=pltpu.CompilerParams(
            dimension_semantics=("parallel",)),   # v7x: one sample per TensorCore
    )(p0, pp["mask1"], pp["mask2"],
      pp["w1"], pp["b1"], pp["w2"], pp["b2"], pp["w3"], pp["b3"],
      pp["wf"], pp["bf"], pp["wh"], pp["bh"])

    out = out[:, 0, :]
    lat = two_lat // 2
    return out[:, :lat], out[:, lat:]


# Pure-JAX f32 reference (lax.conv, PyTorch semantics) for verification only.
def encoder_reference(x, params, d_size):
    def conv(x, w, b):
        y = jax.lax.conv_general_dilated(
            x, w, window_strides=(2, 2), padding=((1, 1), (1, 1)),
            dimension_numbers=("NCHW", "OIHW", "NCHW"))
        return jax.nn.relu(y + b[None, :, None, None])

    x = conv(x, params["c1_w"], params["c1_b"])
    x = conv(x, params["c2_w"], params["c2_b"])
    x = conv(x, params["c3_w"], params["c3_b"])
    x = x.reshape(x.shape[0], d_size * 4 * 4 * 4)
    h = jax.nn.relu(x @ params["fc1_w"].T + params["fc1_b"])
    mu = h @ params["fc_mu_w"].T + params["fc_mu_b"]
    logvar = h @ params["fc_lv_w"].T + params["fc_lv_b"]
    return mu, logvar


if __name__ == "__main__":
    # Small shapes: batch=2, in_ch=3, d_size=8, latent_dim=32, input_size=28
    # (28 -> 14 -> 7 -> 4 matches the hard-coded 4x4 flatten in the module).
    batch, in_ch, d_size, latent_dim, input_size = 2, 3, 8, 32, 28

    key = jax.random.PRNGKey(0)
    kx, kp = jax.random.split(key)
    x = jax.random.normal(kx, (batch, in_ch, input_size, input_size), jnp.float32)

    raw = init_params(kp, in_ch, d_size, latent_dim)
    plan = _build_plan(input_size)            # static index/mask tables, built once
    pp = preprocess_params(raw, plan)         # weight layout prep, built once

    mu, logvar = encoder_forward(x, pp)
    mu = jax.block_until_ready(mu)
    logvar = jax.block_until_ready(logvar)

    mu_ref, logvar_ref = encoder_reference(x, raw, d_size)
    assert mu.shape == (batch, latent_dim) and logvar.shape == (batch, latent_dim)
    np.testing.assert_allclose(np.asarray(mu), np.asarray(mu_ref),
                               atol=1e-2, rtol=1e-2)
    np.testing.assert_allclose(np.asarray(logvar), np.asarray(logvar_ref),
                               atol=1e-2, rtol=1e-2)

    print("KERNEL_OK")
</pallas_src>

<mosaic_0001>
module attributes {stable_mosaic.version = 11 : i64} {
  func.func @_encoder_kernel(%arg0: i32, %arg1: memref<1296x27xf32, #tpu.memory_space<vmem>>, %arg2: memref<1296x1xf32, #tpu.memory_space<vmem>>, %arg3: memref<144x1xf32, #tpu.memory_space<vmem>>, %arg4: memref<27x8xf32, #tpu.memory_space<vmem>>, %arg5: memref<1x8xf32, #tpu.memory_space<vmem>>, %arg6: memref<72x16xf32, #tpu.memory_space<vmem>>, %arg7: memref<1x16xf32, #tpu.memory_space<vmem>>, %arg8: memref<144x32xf32, #tpu.memory_space<vmem>>, %arg9: memref<1x32xf32, #tpu.memory_space<vmem>>, %arg10: memref<512x256xf32, #tpu.memory_space<vmem>>, %arg11: memref<1x256xf32, #tpu.memory_space<vmem>>, %arg12: memref<256x64xf32, #tpu.memory_space<vmem>>, %arg13: memref<1x64xf32, #tpu.memory_space<vmem>>, %arg14: memref<1x1x64xf32, #tpu.memory_space<vmem>>, %arg15: memref<144x16xf32, #tpu.memory_space<vmem>>, %arg16: memref<16x32xf32, #tpu.memory_space<vmem>>) attributes {dimension_semantics = [#tpu.dimension_semantics<parallel>], iteration_bounds = array<i64: 2>, scalar_prefetch = 0 : i64, scratch_operands = 2 : i64, tpu.core_type = #tpu.core_type<tc>, window_params = [{transform_indices = @transform_0, window_bounds = array<i64: 1296, 27>}, {pipeline_mode = #tpu.pipeline_mode<synchronous>, transform_indices = @transform_1, window_bounds = array<i64: 1296, 1>}, {pipeline_mode = #tpu.pipeline_mode<synchronous>, transform_indices = @transform_2, window_bounds = array<i64: 144, 1>}, {pipeline_mode = #tpu.pipeline_mode<synchronous>, transform_indices = @transform_3, window_bounds = array<i64: 27, 8>}, {pipeline_mode = #tpu.pipeline_mode<synchronous>, transform_indices = @transform_4, window_bounds = array<i64: 1, 8>}, {pipeline_mode = #tpu.pipeline_mode<synchronous>, transform_indices = @transform_5, window_bounds = array<i64: 72, 16>}, {pipeline_mode = #tpu.pipeline_mode<synchronous>, transform_indices = @transform_6, window_bounds = array<i64: 1, 16>}, {pipeline_mode = #tpu.pipeline_mode<synchronous>, transform_indices = @transform_7, window_bounds = array<i64: 144, 32>}, {pipeline_mode = #tpu.pipeline_mode<synchronous>, transform_indices = @transform_8, window_bounds = array<i64: 1, 32>}, {pipeline_mode = #tpu.pipeline_mode<synchronous>, transform_indices = @transform_9, window_bounds = array<i64: 512, 256>}, {pipeline_mode = #tpu.pipeline_mode<synchronous>, transform_indices = @transform_10, window_bounds = array<i64: 1, 256>}, {pipeline_mode = #tpu.pipeline_mode<synchronous>, transform_indices = @transform_11, window_bounds = array<i64: 256, 64>}, {pipeline_mode = #tpu.pipeline_mode<synchronous>, transform_indices = @transform_12, window_bounds = array<i64: 1, 64>}, {transform_indices = @transform_13, window_bounds = array<i64: 1, 1, 64>}]} {
    %c0 = arith.constant 0 : index
    %c0_0 = arith.constant 0 : index
    %0 = vector.load %arg4[%c0, %c0_0] : memref<27x8xf32, #tpu.memory_space<vmem>>, vector<27x8xf32>
    %c0_1 = arith.constant 0 : index
    %c0_2 = arith.constant 0 : index
    %1 = vector.load %arg5[%c0_1, %c0_2] : memref<1x8xf32, #tpu.memory_space<vmem>>, vector<1x8xf32>
    %cst = arith.constant 0.000000e+00 : f32
    %2 = vector.broadcast %cst : f32 to vector<144x16xf32>
    %c0_3 = arith.constant 0 : index
    %c0_4 = arith.constant 0 : index
    %3 = vector.load %arg1[%c0_3, %c0_4] : memref<1296x27xf32, #tpu.memory_space<vmem>>, vector<144x27xf32>
    %cst_5 = arith.constant dense<0.000000e+00> : vector<144x8xf32>
    %4 = tpu.matmul %3, %0, %cst_5 {dimension_numbers = #tpu.dot_dimension_numbers<[1], [0], [0], [1], [0, 0, 1, 1], [], []>} : vector<144x27xf32>, vector<27x8xf32>, vector<144x8xf32> -> vector<144x8xf32>
    %5 = vector.broadcast %1 : vector<1x8xf32> to vector<144x8xf32>
    %6 = arith.addf %4, %5 : vector<144x8xf32>
    %cst_6 = arith.constant 0.000000e+00 : f32
    %7 = vector.broadcast %cst_6 : f32 to vector<144x8xf32>
    %8 = arith.maximumf %6, %7 : vector<144x8xf32>
    %c0_7 = arith.constant 0 : index
    %c0_8 = arith.constant 0 : index
    %9 = vector.load %arg2[%c0_7, %c0_8] : memref<1296x1xf32, #tpu.memory_space<vmem>>, vector<144x1xf32>
    %10 = vector.broadcast %9 : vector<144x1xf32> to vector<144x8xf32>
    %11 = arith.mulf %8, %10 : vector<144x8xf32>
    %c0_9 = arith.constant 0 : index
    %c0_10 = arith.constant 0 : index
    %12 = vector.load %arg6[%c0_9, %c0_10] : memref<72x16xf32, #tpu.memory_space<vmem>>, vector<8x16xf32>
    %cst_11 = arith.constant dense<0.000000e+00> : vector<144x16xf32>
    %13 = tpu.matmul %11, %12, %cst_11 {dimension_numbers = #tpu.dot_dimension_numbers<[1], [0], [0], [1], [0, 0, 1, 1], [], []>} : vector<144x8xf32>, vector<8x16xf32>, vector<144x16xf32> -> vector<144x16xf32>
    %14 = arith.addf %2, %13 : vector<144x16xf32>
    %c144 = arith.constant 144 : index
    %c0_12 = arith.constant 0 : index
    %15 = vector.load %arg1[%c144, %c0_12] : memref<1296x27xf32, #tpu.memory_space<vmem>>, vector<144x27xf32>
    %cst_13 = arith.constant dense<0.000000e+00> : vector<144x8xf32>
    %16 = tpu.matmul %15, %0, %cst_13 {dimension_numbers = #tpu.dot_dimension_numbers<[1], [0], [0], [1], [0, 0, 1, 1], [], []>} : vector<144x27xf32>, vector<27x8xf32>, vector<144x8xf32> -> vector<144x8xf32>
    %17 = vector.broadcast %1 : vector<1x8xf32> to vector<144x8xf32>
    %18 = arith.addf %16, %17 : vector<144x8xf32>
    %cst_14 = arith.constant 0.000000e+00 : f32
    %19 = vector.broadcast %cst_14 : f32 to vector<144x8xf32>
    %20 = arith.maximumf %18, %19 : vector<144x8xf32>
    %c144_15 = arith.constant 144 : index
    %c0_16 = arith.constant 0 : index
    %21 = vector.load %arg2[%c144_15, %c0_16] : memref<1296x1xf32, #tpu.memory_space<vmem>>, vector<144x1xf32>
    %22 = vector.broadcast %21 : vector<144x1xf32> to vector<144x8xf32>
    %23 = arith.mulf %20, %22 : vector<144x8xf32>
    %c8 = arith.constant 8 : index
    %c0_17 = arith.constant 0 : index
    %24 = vector.load %arg6[%c8, %c0_17] : memref<72x16xf32, #tpu.memory_space<vmem>>, vector<8x16xf32>
    %cst_18 = arith.constant dense<0.000000e+00> : vector<144x16xf32>
    %25 = tpu.matmul %23, %24, %cst_18 {dimension_numbers = #tpu.dot_dimension_numbers<[1], [0], [0], [1], [0, 0, 1, 1], [], []>} : vector<144x8xf32>, vector<8x16xf32>, vector<144x16xf32> -> vector<144x16xf32>
    %26 = arith.addf %14, %25 : vector<144x16xf32>
    %c288 = arith.constant 288 : index
    %c0_19 = arith.constant 0 : index
    %27 = vector.load %arg1[%c288, %c0_19] : memref<1296x27xf32, #tpu.memory_space<vmem>>, vector<144x27xf32>
    %cst_20 = arith.constant dense<0.000000e+00> : vector<144x8xf32>
    %28 = tpu.matmul %27, %0, %cst_20 {dimension_numbers = #tpu.dot_dimension_numbers<[1], [0], [0], [1], [0, 0, 1, 1], [], []>} : vector<144x27xf32>, vector<27x8xf32>, vector<144x8xf32> -> vector<144x8xf32>
    %29 = vector.broadcast %1 : vector<1x8xf32> to vector<144x8xf32>
    %30 = arith.addf %28, %29 : vector<144x8xf32>
    %cst_21 = arith.constant 0.000000e+00 : f32
    %31 = vector.broadcast %cst_21 : f32 to vector<144x8xf32>
    %32 = arith.maximumf %30, %31 : vector<144x8xf32>
    %c288_22 = arith.constant 288 : index
    %c0_23 = arith.constant 0 : index
    %33 = vector.load %arg2[%c288_22, %c0_23] : memref<1296x1xf32, #tpu.memory_space<vmem>>, vector<144x1xf32>
    %34 = vector.broadcast %33 : vector<144x1xf32> to vector<144x8xf32>
    %35 = arith.mulf %32, %34 : vector<144x8xf32>
    %c16 = arith.constant 16 : index
    %c0_24 = arith.constant 0 : index
    %36 = vector.load %arg6[%c16, %c0_24] : memref<72x16xf32, #tpu.memory_space<vmem>>, vector<8x16xf32>
    %cst_25 = arith.constant dense<0.000000e+00> : vector<144x16xf32>
    %37 = tpu.matmul %35, %36, %cst_25 {dimension_numbers = #tpu.dot_dimension_numbers<[1], [0], [0], [1], [0, 0, 1, 1], [], []>} : vector<144x8xf32>, vector<8x16xf32>, vector<144x16xf32> -> vector<144x16xf32>
    %38 = arith.addf %26, %37 : vector<144x16xf32>
    %c432 = arith.constant 432 : index
    %c0_26 = arith.constant 0 : index
    %39 = vector.load %arg1[%c432, %c0_26] : memref<1296x27xf32, #tpu.memory_space<vmem>>, vector<144x27xf32>
    %cst_27 = arith.constant dense<0.000000e+00> : vector<144x8xf32>
    %40 = tpu.matmul %39, %0, %cst_27 {dimension_numbers = #tpu.dot_dimension_numbers<[1], [0], [0], [1], [0, 0, 1, 1], [], []>} : vector<144x27xf32>, vector<27x8xf32>, vector<144x8xf32> -> vector<144x8xf32>
    %41 = vector.broadcast %1 : vector<1x8xf32> to vector<144x8xf32>
    %42 = arith.addf %40, %41 : vector<144x8xf32>
    %cst_28 = arith.constant 0.000000e+00 : f32
    %43 = vector.broadcast %cst_28 : f32 to vector<144x8xf32>
    %44 = arith.maximumf %42, %43 : vector<144x8xf32>
    %c432_29 = arith.constant 432 : index
    %c0_30 = arith.constant 0 : index
    %45 = vector.load %arg2[%c432_29, %c0_30] : memref<1296x1xf32, #tpu.memory_space<vmem>>, vector<144x1xf32>
    %46 = vector.broadcast %45 : vector<144x1xf32> to vector<144x8xf32>
    %47 = arith.mulf %44, %46 : vector<144x8xf32>
    %c24 = arith.constant 24 : index
    %c0_31 = arith.constant 0 : index
    %48 = vector.load %arg6[%c24, %c0_31] : memref<72x16xf32, #tpu.memory_space<vmem>>, vector<8x16xf32>
    %cst_32 = arith.constant dense<0.000000e+00> : vector<144x16xf32>
    %49 = tpu.matmul %47, %48, %cst_32 {dimension_numbers = #tpu.dot_dimension_numbers<[1], [0], [0], [1], [0, 0, 1, 1], [], []>} : vector<144x8xf32>, vector<8x16xf32>, vector<144x16xf32> -> vector<144x16xf32>
    %50 = arith.addf %38, %49 : vector<144x16xf32>
    %c576 = arith.constant 576 : index
    %c0_33 = arith.constant 0 : index
    %51 = vector.load %arg1[%c576, %c0_33] : memref<1296x27xf32, #tpu.memory_space<vmem>>, vector<144x27xf32>
    %cst_34 = arith.constant dense<0.000000e+00> : vector<144x8xf32>
    %52 = tpu.matmul %51, %0, %cst_34 {dimension_numbers = #tpu.dot_dimension_numbers<[1], [0], [0], [1], [0, 0, 1, 1], [], []>} : vector<144x27xf32>, vector<27x8xf32>, vector<144x8xf32> -> vector<144x8xf32>
    %53 = vector.broadcast %1 : vector<1x8xf32> to vector<144x8xf32>
    %54 = arith.addf %52, %53 : vector<144x8xf32>
    %cst_35 = arith.constant 0.000000e+00 : f32
    %55 = vector.broadcast %cst_35 : f32 to vector<144x8xf32>
    %56 = arith.maximumf %54, %55 : vector<144x8xf32>
    %c576_36 = arith.constant 576 : index
    %c0_37 = arith.constant 0 : index
    %57 = vector.load %arg2[%c576_36, %c0_37] : memref<1296x1xf32, #tpu.memory_space<vmem>>, vector<144x1xf32>
    %58 = vector.broadcast %57 : vector<144x1xf32> to vector<144x8xf32>
    %59 = arith.mulf %56, %58 : vector<144x8xf32>
    %c32 = arith.constant 32 : index
    %c0_38 = arith.constant 0 : index
    %60 = vector.load %arg6[%c32, %c0_38] : memref<72x16xf32, #tpu.memory_space<vmem>>, vector<8x16xf32>
    %cst_39 = arith.constant dense<0.000000e+00> : vector<144x16xf32>
    %61 = tpu.matmul %59, %60, %cst_39 {dimension_numbers = #tpu.dot_dimension_numbers<[1], [0], [0], [1], [0, 0, 1, 1], [], []>} : vector<144x8xf32>, vector<8x16xf32>, vector<144x16xf32> -> vector<144x16xf32>
    %62 = arith.addf %50, %61 : vector<144x16xf32>
    %c720 = arith.constant 720 : index
    %c0_40 = arith.constant 0 : index
    %63 = vector.load %arg1[%c720, %c0_40] : memref<1296x27xf32, #tpu.memory_space<vmem>>, vector<144x27xf32>
    %cst_41 = arith.constant dense<0.000000e+00> : vector<144x8xf32>
    %64 = tpu.matmul %63, %0, %cst_41 {dimension_numbers = #tpu.dot_dimension_numbers<[1], [0], [0], [1], [0, 0, 1, 1], [], []>} : vector<144x27xf32>, vector<27x8xf32>, vector<144x8xf32> -> vector<144x8xf32>
    %65 = vector.broadcast %1 : vector<1x8xf32> to vector<144x8xf32>
    %66 = arith.addf %64, %65 : vector<144x8xf32>
    %cst_42 = arith.constant 0.000000e+00 : f32
    %67 = vector.broadcast %cst_42 : f32 to vector<144x8xf32>
    %68 = arith.maximumf %66, %67 : vector<144x8xf32>
    %c720_43 = arith.constant 720 : index
    %c0_44 = arith.constant 0 : index
    %69 = vector.load %arg2[%c720_43, %c0_44] : memref<1296x1xf32, #tpu.memory_space<vmem>>, vector<144x1xf32>
    %70 = vector.broadcast %69 : vector<144x1xf32> to vector<144x8xf32>
    %71 = arith.mulf %68, %70 : vector<144x8xf32>
    %c40 = arith.constant 40 : index
    %c0_45 = arith.constant 0 : index
    %72 = vector.load %arg6[%c40, %c0_45] : memref<72x16xf32, #tpu.memory_space<vmem>>, vector<8x16xf32>
    %cst_46 = arith.constant dense<0.000000e+00> : vector<144x16xf32>
    %73 = tpu.matmul %71, %72, %cst_46 {dimension_numbers = #tpu.dot_dimension_numbers<[1], [0], [0], [1], [0, 0, 1, 1], [], []>} : vector<144x8xf32>, vector<8x16xf32>, vector<144x16xf32> -> vector<144x16xf32>
    %74 = arith.addf %62, %73 : vector<144x16xf32>
    %c864 = arith.constant 864 : index
    %c0_47 = arith.constant 0 : index
    %75 = vector.load %arg1[%c864, %c0_47] : memref<1296x27xf32, #tpu.memory_space<vmem>>, vector<144x27xf32>
    %cst_48 = arith.constant dense<0.000000e+00> : vector<144x8xf32>
    %76 = tpu.matmul %75, %0, %cst_48 {dimension_numbers = #tpu.dot_dimension_numbers<[1], [0], [0], [1], [0, 0, 1, 1], [], []>} : vector<144x27xf32>, vector<27x8xf32>, vector<144x8xf32> -> vector<144x8xf32>
    %77 = vector.broadcast %1 : vector<1x8xf32> to vector<144x8xf32>
    %78 = arith.addf %76, %77 : vector<144x8xf32>
    %cst_49 = arith.constant 0.000000e+00 : f32
    %79 = vector.broadcast %cst_49 : f32 to vector<144x8xf32>
    %80 = arith.maximumf %78, %79 : vector<144x8xf32>
    %c864_50 = arith.constant 864 : index
    %c0_51 = arith.constant 0 : index
    %81 = vector.load %arg2[%c864_50, %c0_51] : memref<1296x1xf32, #tpu.memory_space<vmem>>, vector<144x1xf32>
    %82 = vector.broadcast %81 : vector<144x1xf32> to vector<144x8xf32>
    %83 = arith.mulf %80, %82 : vector<144x8xf32>
    %c48 = arith.constant 48 : index
    %c0_52 = arith.constant 0 : index
    %84 = vector.load %arg6[%c48, %c0_52] : memref<72x16xf32, #tpu.memory_space<vmem>>, vector<8x16xf32>
    %cst_53 = arith.constant dense<0.000000e+00> : vector<144x16xf32>
    %85 = tpu.matmul %83, %84, %cst_53 {dimension_numbers = #tpu.dot_dimension_numbers<[1], [0], [0], [1], [0, 0, 1, 1], [], []>} : vector<144x8xf32>, vector<8x16xf32>, vector<144x16xf32> -> vector<144x16xf32>
    %86 = arith.addf %74, %85 : vector<144x16xf32>
    %c1008 = arith.constant 1008 : index
    %c0_54 = arith.constant 0 : index
    %87 = vector.load %arg1[%c1008, %c0_54] : memref<1296x27xf32, #tpu.memory_space<vmem>>, vector<144x27xf32>
    %cst_55 = arith.constant dense<0.000000e+00> : vector<144x8xf32>
    %88 = tpu.matmul %87, %0, %cst_55 {dimension_numbers = #tpu.dot_dimension_numbers<[1], [0], [0], [1], [0, 0, 1, 1], [], []>} : vector<144x27xf32>, vector<27x8xf32>, vector<144x8xf32> -> vector<144x8xf32>
    %89 = vector.broadcast %1 : vector<1x8xf32> to vector<144x8xf32>
    %90 = arith.addf %88, %89 : vector<144x8xf32>
    %cst_56 = arith.constant 0.000000e+00 : f32
    %91 = vector.broadcast %cst_56 : f32 to vector<144x8xf32>
    %92 = arith.maximumf %90, %91 : vector<144x8xf32>
    %c1008_57 = arith.constant 1008 : index
    %c0_58 = arith.constant 0 : index
    %93 = vector.load %arg2[%c1008_57, %c0_58] : memref<1296x1xf32, #tpu.memory_space<vmem>>, vector<144x1xf32>
    %94 = vector.broadcast %93 : vector<144x1xf32> to vector<144x8xf32>
    %95 = arith.mulf %92, %94 : vector<144x8xf32>
    %c56 = arith.constant 56 : index
    %c0_59 = arith.constant 0 : index
    %96 = vector.load %arg6[%c56, %c0_59] : memref<72x16xf32, #tpu.memory_space<vmem>>, vector<8x16xf32>
    %cst_60 = arith.constant dense<0.000000e+00> : vector<144x16xf32>
    %97 = tpu.matmul %95, %96, %cst_60 {dimension_numbers = #tpu.dot_dimension_numbers<[1], [0], [0], [1], [0, 0, 1, 1], [], []>} : vector<144x8xf32>, vector<8x16xf32>, vector<144x16xf32> -> vector<144x16xf32>
    %98 = arith.addf %86, %97 : vector<144x16xf32>
    %c1152 = arith.constant 1152 : index
    %c0_61 = arith.constant 0 : index
    %99 = vector.load %arg1[%c1152, %c0_61] : memref<1296x27xf32, #tpu.memory_space<vmem>>, vector<144x27xf32>
    %cst_62 = arith.constant dense<0.000000e+00> : vector<144x8xf32>
    %100 = tpu.matmul %99, %0, %cst_62 {dimension_numbers = #tpu.dot_dimension_numbers<[1], [0], [0], [1], [0, 0, 1, 1], [], []>} : vector<144x27xf32>, vector<27x8xf32>, vector<144x8xf32> -> vector<144x8xf32>
    %101 = vector.broadcast %1 : vector<1x8xf32> to vector<144x8xf32>
    %102 = arith.addf %100, %101 : vector<144x8xf32>
    %cst_63 = arith.constant 0.000000e+00 : f32
    %103 = vector.broadcast %cst_63 : f32 to vector<144x8xf32>
    %104 = arith.maximumf %102, %103 : vector<144x8xf32>
    %c1152_64 = arith.constant 1152 : index
    %c0_65 = arith.constant 0 : index
    %105 = vector.load %arg2[%c1152_64, %c0_65] : memref<1296x1xf32, #tpu.memory_space<vmem>>, vector<144x1xf32>
    %106 = vector.broadcast %105 : vector<144x1xf32> to vector<144x8xf32>
    %107 = arith.mulf %104, %106 : vector<144x8xf32>
    %c64 = arith.constant 64 : index
    %c0_66 = arith.constant 0 : index
    %108 = vector.load %arg6[%c64, %c0_66] : memref<72x16xf32, #tpu.memory_space<vmem>>, vector<8x16xf32>
    %cst_67 = arith.constant dense<0.000000e+00> : vector<144x16xf32>
    %109 = tpu.matmul %107, %108, %cst_67 {dimension_numbers = #tpu.dot_dimension_numbers<[1], [0], [0], [1], [0, 0, 1, 1], [], []>} : vector<144x8xf32>, vector<8x16xf32>, vector<144x16xf32> -> vector<144x16xf32>
    %110 = arith.addf %98, %109 : vector<144x16xf32>
    %c0_68 = arith.constant 0 : index
    %c0_69 = arith.constant 0 : index
    %111 = vector.load %arg7[%c0_68, %c0_69] : memref<1x16xf32, #tpu.memory_space<vmem>>, vector<1x16xf32>
    %112 = vector.broadcast %111 : vector<1x16xf32> to vector<144x16xf32>
    %113 = arith.addf %110, %112 : vector<144x16xf32>
    %cst_70 = arith.constant 0.000000e+00 : f32
    %114 = vector.broadcast %cst_70 : f32 to vector<144x16xf32>
    %115 = arith.maximumf %113, %114 : vector<144x16xf32>
    %c0_71 = arith.constant 0 : index
    %c0_72 = arith.constant 0 : index
    %116 = vector.load %arg3[%c0_71, %c0_72] : memref<144x1xf32, #tpu.memory_space<vmem>>, vector<144x1xf32>
    %117 = vector.broadcast %116 : vector<144x1xf32> to vector<144x16xf32>
    %118 = arith.mulf %115, %117 : vector<144x16xf32>
    %c0_73 = arith.constant 0 : index
    %c0_74 = arith.constant 0 : index
    %119 = vector.load %arg15[%c0_73, %c0_74] : memref<144x16xf32, #tpu.memory_space<vmem>>, vector<144x16xf32>
    tpu.vector_store %arg15[%c0_73, %c0_74], %118 {strides = array<i32>} : memref<144x16xf32, #tpu.memory_space<vmem>>, vector<144x16xf32>,
    %cst_75 = arith.constant 0.000000e+00 : f32
    %120 = vector.broadcast %cst_75 : f32 to vector<16x32xf32>
    %c0_76 = arith.constant 0 : index
    %c0_77 = arith.constant 0 : index
    %121 = vector.load %arg15[%c0_76, %c0_77] : memref<144x16xf32, #tpu.memory_space<vmem>>, vector<16x16xf32>
    %c0_78 = arith.constant 0 : index
    %c0_79 = arith.constant 0 : index
    %122 = vector.load %arg8[%c0_78, %c0_79] : memref<144x32xf32, #tpu.memory_space<vmem>>, vector<16x32xf32>
    %cst_80 = arith.constant dense<0.000000e+00> : vector<16x32xf32>
    %123 = tpu.matmul %121, %122, %cst_80 {dimension_numbers = #tpu.dot_dimension_numbers<[1], [0], [0], [1], [0, 0, 1, 1], [], []>} : vector<16x16xf32>, vector<16x32xf32>, vector<16x32xf32> -> vector<16x32xf32>
    %124 = arith.addf %120, %123 : vector<16x32xf32>
    %c16_81 = arith.constant 16 : index
    %c0_82 = arith.constant 0 : index
    %125 = vector.load %arg15[%c16_81, %c0_82] : memref<144x16xf32, #tpu.memory_space<vmem>>, vector<16x16xf32>
    %c16_83 = arith.constant 16 : index
    %c0_84 = arith.constant 0 : index
    %126 = vector.load %arg8[%c16_83, %c0_84] : memref<144x32xf32, #tpu.memory_space<vmem>>, vector<16x32xf32>
    %cst_85 = arith.constant dense<0.000000e+00> : vector<16x32xf32>
    %127 = tpu.matmul %125, %126, %cst_85 {dimension_numbers = #tpu.dot_dimension_numbers<[1], [0], [0], [1], [0, 0, 1, 1], [], []>} : vector<16x16xf32>, vector<16x32xf32>, vector<16x32xf32> -> vector<16x32xf32>
    %128 = arith.addf %124, %127 : vector<16x32xf32>
    %c32_86 = arith.constant 32 : index
    %c0_87 = arith.constant 0 : index
    %129 = vector.load %arg15[%c32_86, %c0_87] : memref<144x16xf32, #tpu.memory_space<vmem>>, vector<16x16xf32>
    %c32_88 = arith.constant 32 : index
    %c0_89 = arith.constant 0 : index
    %130 = vector.load %arg8[%c32_88, %c0_89] : memref<144x32xf32, #tpu.memory_space<vmem>>, vector<16x32xf32>
    %cst_90 = arith.constant dense<0.000000e+00> : vector<16x32xf32>
    %131 = tpu.matmul %129, %130, %cst_90 {dimension_numbers = #tpu.dot_dimension_numbers<[1], [0], [0], [1], [0, 0, 1, 1], [], []>} : vector<16x16xf32>, vector<16x32xf32>, vector<16x32xf32> -> vector<16x32xf32>
    %132 = arith.addf %128, %131 : vector<16x32xf32>
    %c48_91 = arith.constant 48 : index
    %c0_92 = arith.constant 0 : index
    %133 = vector.load %arg15[%c48_91, %c0_92] : memref<144x16xf32, #tpu.memory_space<vmem>>, vector<16x16xf32>
    %c48_93 = arith.constant 48 : index
    %c0_94 = arith.constant 0 : index
    %134 = vector.load %arg8[%c48_93, %c0_94] : memref<144x32xf32, #tpu.memory_space<vmem>>, vector<16x32xf32>
    %cst_95 = arith.constant dense<0.000000e+00> : vector<16x32xf32>
    %135 = tpu.matmul %133, %134, %cst_95 {dimension_numbers = #tpu.dot_dimension_numbers<[1], [0], [0], [1], [0, 0, 1, 1], [], []>} : vector<16x16xf32>, vector<16x32xf32>, vector<16x32xf32> -> vector<16x32xf32>
    %136 = arith.addf %132, %135 : vector<16x32xf32>
    %c64_96 = arith.constant 64 : index
    %c0_97 = arith.constant 0 : index
    %137 = vector.load %arg15[%c64_96, %c0_97] : memref<144x16xf32, #tpu.memory_space<vmem>>, vector<16x16xf32>
    %c64_98 = arith.constant 64 : index
    %c0_99 = arith.constant 0 : index
    %138 = vector.load %arg8[%c64_98, %c0_99] : memref<144x32xf32, #tpu.memory_space<vmem>>, vector<16x32xf32>
    %cst_100 = arith.constant dense<0.000000e+00> : vector<16x32xf32>
    %139 = tpu.matmul %137, %138, %cst_100 {dimension_numbers = #tpu.dot_dimension_numbers<[1], [0], [0], [1], [0, 0, 1, 1], [], []>} : vector<16x16xf32>, vector<16x32xf32>, vector<16x32xf32> -> vector<16x32xf32>
    %140 = arith.addf %136, %139 : vector<16x32xf32>
    %c80 = arith.constant 80 : index
    %c0_101 = arith.constant 0 : index
    %141 = vector.load %arg15[%c80, %c0_101] : memref<144x16xf32, #tpu.memory_space<vmem>>, vector<16x16xf32>
    %c80_102 = arith.constant 80 : index
    %c0_103 = arith.constant 0 : index
    %142 = vector.load %arg8[%c80_102, %c0_103] : memref<144x32xf32, #tpu.memory_space<vmem>>, vector<16x32xf32>
    %cst_104 = arith.constant dense<0.000000e+00> : vector<16x32xf32>
    %143 = tpu.matmul %141, %142, %cst_104 {dimension_numbers = #tpu.dot_dimension_numbers<[1], [0], [0], [1], [0, 0, 1, 1], [], []>} : vector<16x16xf32>, vector<16x32xf32>, vector<16x32xf32> -> vector<16x32xf32>
    %144 = arith.addf %140, %143 : vector<16x32xf32>
    %c96 = arith.constant 96 : index
    %c0_105 = arith.constant 0 : index
    %145 = vector.load %arg15[%c96, %c0_105] : memref<144x16xf32, #tpu.memory_space<vmem>>, vector<16x16xf32>
    %c96_106 = arith.constant 96 : index
    %c0_107 = arith.constant 0 : index
    %146 = vector.load %arg8[%c96_106, %c0_107] : memref<144x32xf32, #tpu.memory_space<vmem>>, vector<16x32xf32>
    %cst_108 = arith.constant dense<0.000000e+00> : vector<16x32xf32>
    %147 = tpu.matmul %145, %146, %cst_108 {dimension_numbers = #tpu.dot_dimension_numbers<[1], [0], [0], [1], [0, 0, 1, 1], [], []>} : vector<16x16xf32>, vector<16x32xf32>, vector<16x32xf32> -> vector<16x32xf32>
    %148 = arith.addf %144, %147 : vector<16x32xf32>
    %c112 = arith.constant 112 : index
    %c0_109 = arith.constant 0 : index
    %149 = vector.load %arg15[%c112, %c0_109] : memref<144x16xf32, #tpu.memory_space<vmem>>, vector<16x16xf32>
    %c112_110 = arith.constant 112 : index
    %c0_111 = arith.constant 0 : index
    %150 = vector.load %arg8[%c112_110, %c0_111] : memref<144x32xf32, #tpu.memory_space<vmem>>, vector<16x32xf32>
    %cst_112 = arith.constant dense<0.000000e+00> : vector<16x32xf32>
    %151 = tpu.matmul %149, %150, %cst_112 {dimension_numbers = #tpu.dot_dimension_numbers<[1], [0], [0], [1], [0, 0, 1, 1], [], []>} : vector<16x16xf32>, vector<16x32xf32>, vector<16x32xf32> -> vector<16x32xf32>
    %152 = arith.addf %148, %151 : vector<16x32xf32>
    %c128 = arith.constant 128 : index
    %c0_113 = arith.constant 0 : index
    %153 = vector.load %arg15[%c128, %c0_113] : memref<144x16xf32, #tpu.memory_space<vmem>>, vector<16x16xf32>
    %c128_114 = arith.constant 128 : index
    %c0_115 = arith.constant 0 : index
    %154 = vector.load %arg8[%c128_114, %c0_115] : memref<144x32xf32, #tpu.memory_space<vmem>>, vector<16x32xf32>
    %cst_116 = arith.constant dense<0.000000e+00> : vector<16x32xf32>
    %155 = tpu.matmul %153, %154, %cst_116 {dimension_numbers = #tpu.dot_dimension_numbers<[1], [0], [0], [1], [0, 0, 1, 1], [], []>} : vector<16x16xf32>, vector<16x32xf32>, vector<16x32xf32> -> vector<16x32xf32>
    %156 = arith.addf %152, %155 : vector<16x32xf32>
    %c0_117 = arith.constant 0 : index
    %c0_118 = arith.constant 0 : index
    %157 = vector.load %arg9[%c0_117, %c0_118] : memref<1x32xf32, #tpu.memory_space<vmem>>, vector<1x32xf32>
    %158 = vector.broadcast %157 : vector<1x32xf32> to vector<16x32xf32>
    %159 = arith.addf %156, %158 : vector<16x32xf32>
    %cst_119 = arith.constant 0.000000e+00 : f32
    %160 = vector.broadcast %cst_119 : f32 to vector<16x32xf32>
    %161 = arith.maximumf %159, %160 : vector<16x32xf32>
    %c0_120 = arith.constant 0 : index
    %c0_121 = arith.constant 0 : index
    %162 = vector.load %arg16[%c0_120, %c0_121] : memref<16x32xf32, #tpu.memory_space<vmem>>, vector<16x32xf32>
    tpu.vector_store %arg16[%c0_120, %c0_121], %161 {strides = array<i32>} : memref<16x32xf32, #tpu.memory_space<vmem>>, vector<16x32xf32>,
    %cst_122 = arith.constant 0.000000e+00 : f32
    %163 = vector.broadcast %cst_122 : f32 to vector<1x256xf32>
    %c0_123 = arith.constant 0 : index
    %c0_124 = arith.constant 0 : index
    %164 = vector.load %arg16[%c0_123, %c0_124] : memref<16x32xf32, #tpu.memory_space<vmem>>, vector<1x32xf32>
    %c0_125 = arith.constant 0 : index
    %c0_126 = arith.constant 0 : index
    %165 = vector.load %arg10[%c0_125, %c0_126] : memref<512x256xf32, #tpu.memory_space<vmem>>, vector<32x256xf32>
    %cst_127 = arith.constant dense<0.000000e+00> : vector<1x256xf32>
    %166 = tpu.matmul %164, %165, %cst_127 {dimension_numbers = #tpu.dot_dimension_numbers<[1], [0], [0], [1], [0, 0, 1, 1], [], []>} : vector<1x32xf32>, vector<32x256xf32>, vector<1x256xf32> -> vector<1x256xf32>
    %167 = arith.addf %163, %166 : vector<1x256xf32>
    %c1 = arith.constant 1 : index
    %c0_128 = arith.constant 0 : index
    %168 = vector.load %arg16[%c1, %c0_128] : memref<16x32xf32, #tpu.memory_space<vmem>>, vector<1x32xf32>
    %c32_129 = arith.constant 32 : index
    %c0_130 = arith.constant 0 : index
    %169 = vector.load %arg10[%c32_129, %c0_130] : memref<512x256xf32, #tpu.memory_space<vmem>>, vector<32x256xf32>
    %cst_131 = arith.constant dense<0.000000e+00> : vector<1x256xf32>
    %170 = tpu.matmul %168, %169, %cst_131 {dimension_numbers = #tpu.dot_dimension_numbers<[1], [0], [0], [1], [0, 0, 1, 1], [], []>} : vector<1x32xf32>, vector<32x256xf32>, vector<1x256xf32> -> vector<1x256xf32>
    %171 = arith.addf %167, %170 : vector<1x256xf32>
    %c2 = arith.constant 2 : index
    %c0_132 = arith.constant 0 : index
    %172 = vector.load %arg16[%c2, %c0_132] : memref<16x32xf32, #tpu.memory_space<vmem>>, vector<1x32xf32>
    %c64_133 = arith.constant 64 : index
    %c0_134 = arith.constant 0 : index
    %173 = vector.load %arg10[%c64_133, %c0_134] : memref<512x256xf32, #tpu.memory_space<vmem>>, vector<32x256xf32>
    %cst_135 = arith.constant dense<0.000000e+00> : vector<1x256xf32>
    %174 = tpu.matmul %172, %173, %cst_135 {dimension_numbers = #tpu.dot_dimension_numbers<[1], [0], [0], [1], [0, 0, 1, 1], [], []>} : vector<1x32xf32>, vector<32x256xf32>, vector<1x256xf32> -> vector<1x256xf32>
    %175 = arith.addf %171, %174 : vector<1x256xf32>
    %c3 = arith.constant 3 : index
    %c0_136 = arith.constant 0 : index
    %176 = vector.load %arg16[%c3, %c0_136] : memref<16x32xf32, #tpu.memory_space<vmem>>, vector<1x32xf32>
    %c96_137 = arith.constant 96 : index
    %c0_138 = arith.constant 0 : index
    %177 = vector.load %arg10[%c96_137, %c0_138] : memref<512x256xf32, #tpu.memory_space<vmem>>, vector<32x256xf32>
    %cst_139 = arith.constant dense<0.000000e+00> : vector<1x256xf32>
    %178 = tpu.matmul %176, %177, %cst_139 {dimension_numbers = #tpu.dot_dimension_numbers<[1], [0], [0], [1], [0, 0, 1, 1], [], []>} : vector<1x32xf32>, vector<32x256xf32>, vector<1x256xf32> -> vector<1x256xf32>
    %179 = arith.addf %175, %178 : vector<1x256xf32>
    %c4 = arith.constant 4 : index
    %c0_140 = arith.constant 0 : index
    %180 = vector.load %arg16[%c4, %c0_140] : memref<16x32xf32, #tpu.memory_space<vmem>>, vector<1x32xf32>
    %c128_141 = arith.constant 128 : index
    %c0_142 = arith.constant 0 : index
    %181 = vector.load %arg10[%c128_141, %c0_142] : memref<512x256xf32, #tpu.memory_space<vmem>>, vector<32x256xf32>
    %cst_143 = arith.constant dense<0.000000e+00> : vector<1x256xf32>
    %182 = tpu.matmul %180, %181, %cst_143 {dimension_numbers = #tpu.dot_dimension_numbers<[1], [0], [0], [1], [0, 0, 1, 1], [], []>} : vector<1x32xf32>, vector<32x256xf32>, vector<1x256xf32> -> vector<1x256xf32>
    %183 = arith.addf %179, %182 : vector<1x256xf32>
    %c5 = arith.constant 5 : index
    %c0_144 = arith.constant 0 : index
    %184 = vector.load %arg16[%c5, %c0_144] : memref<16x32xf32, #tpu.memory_space<vmem>>, vector<1x32xf32>
    %c160 = arith.constant 160 : index
    %c0_145 = arith.constant 0 : index
    %185 = vector.load %arg10[%c160, %c0_145] : memref<512x256xf32, #tpu.memory_space<vmem>>, vector<32x256xf32>
    %cst_146 = arith.constant dense<0.000000e+00> : vector<1x256xf32>
    %186 = tpu.matmul %184, %185, %cst_146 {dimension_numbers = #tpu.dot_dimension_numbers<[1], [0], [0], [1], [0, 0, 1, 1], [], []>} : vector<1x32xf32>, vector<32x256xf32>, vector<1x256xf32> -> vector<1x256xf32>
    %187 = arith.addf %183, %186 : vector<1x256xf32>
    %c6 = arith.constant 6 : index
    %c0_147 = arith.constant 0 : index
    %188 = vector.load %arg16[%c6, %c0_147] : memref<16x32xf32, #tpu.memory_space<vmem>>, vector<1x32xf32>
    %c192 = arith.constant 192 : index
    %c0_148 = arith.constant 0 : index
    %189 = vector.load %arg10[%c192, %c0_148] : memref<512x256xf32, #tpu.memory_space<vmem>>, vector<32x256xf32>
    %cst_149 = arith.constant dense<0.000000e+00> : vector<1x256xf32>
    %190 = tpu.matmul %188, %189, %cst_149 {dimension_numbers = #tpu.dot_dimension_numbers<[1], [0], [0], [1], [0, 0, 1, 1], [], []>} : vector<1x32xf32>, vector<32x256xf32>, vector<1x256xf32> -> vector<1x256xf32>
    %191 = arith.addf %187, %190 : vector<1x256xf32>
    %c7 = arith.constant 7 : index
    %c0_150 = arith.constant 0 : index
    %192 = vector.load %arg16[%c7, %c0_150] : memref<16x32xf32, #tpu.memory_space<vmem>>, vector<1x32xf32>
    %c224 = arith.constant 224 : index
    %c0_151 = arith.constant 0 : index
    %193 = vector.load %arg10[%c224, %c0_151] : memref<512x256xf32, #tpu.memory_space<vmem>>, vector<32x256xf32>
    %cst_152 = arith.constant dense<0.000000e+00> : vector<1x256xf32>
    %194 = tpu.matmul %192, %193, %cst_152 {dimension_numbers = #tpu.dot_dimension_numbers<[1], [0], [0], [1], [0, 0, 1, 1], [], []>} : vector<1x32xf32>, vector<32x256xf32>, vector<1x256xf32> -> vector<1x256xf32>
    %195 = arith.addf %191, %194 : vector<1x256xf32>
    %c8_153 = arith.constant 8 : index
    %c0_154 = arith.constant 0 : index
    %196 = vector.load %arg16[%c8_153, %c0_154] : memref<16x32xf32, #tpu.memory_space<vmem>>, vector<1x32xf32>
    %c256 = arith.constant 256 : index
    %c0_155 = arith.constant 0 : index
    %197 = vector.load %arg10[%c256, %c0_155] : memref<512x256xf32, #tpu.memory_space<vmem>>, vector<32x256xf32>
    %cst_156 = arith.constant dense<0.000000e+00> : vector<1x256xf32>
    %198 = tpu.matmul %196, %197, %cst_156 {dimension_numbers = #tpu.dot_dimension_numbers<[1], [0], [0], [1], [0, 0, 1, 1], [], []>} : vector<1x32xf32>, vector<32x256xf32>, vector<1x256xf32> -> vector<1x256xf32>
    %199 = arith.addf %195, %198 : vector<1x256xf32>
    %c9 = arith.constant 9 : index
    %c0_157 = arith.constant 0 : index
    %200 = vector.load %arg16[%c9, %c0_157] : memref<16x32xf32, #tpu.memory_space<vmem>>, vector<1x32xf32>
    %c288_158 = arith.constant 288 : index
    %c0_159 = arith.constant 0 : index
    %201 = vector.load %arg10[%c288_158, %c0_159] : memref<512x256xf32, #tpu.memory_space<vmem>>, vector<32x256xf32>
    %cst_160 = arith.constant dense<0.000000e+00> : vector<1x256xf32>
    %202 = tpu.matmul %200, %201, %cst_160 {dimension_numbers = #tpu.dot_dimension_numbers<[1], [0], [0], [1], [0, 0, 1, 1], [], []>} : vector<1x32xf32>, vector<32x256xf32>, vector<1x256xf32> -> vector<1x256xf32>
    %203 = arith.addf %199, %202 : vector<1x256xf32>
    %c10 = arith.constant 10 : index
    %c0_161 = arith.constant 0 : index
    %204 = vector.load %arg16[%c10, %c0_161] : memref<16x32xf32, #tpu.memory_space<vmem>>, vector<1x32xf32>
    %c320 = arith.constant 320 : index
    %c0_162 = arith.constant 0 : index
    %205 = vector.load %arg10[%c320, %c0_162] : memref<512x256xf32, #tpu.memory_space<vmem>>, vector<32x256xf32>
    %cst_163 = arith.constant dense<0.000000e+00> : vector<1x256xf32>
    %206 = tpu.matmul %204, %205, %cst_163 {dimension_numbers = #tpu.dot_dimension_numbers<[1], [0], [0], [1], [0, 0, 1, 1], [], []>} : vector<1x32xf32>, vector<32x256xf32>, vector<1x256xf32> -> vector<1x256xf32>
    %207 = arith.addf %203, %206 : vector<1x256xf32>
    %c11 = arith.constant 11 : index
    %c0_164 = arith.constant 0 : index
    %208 = vector.load %arg16[%c11, %c0_164] : memref<16x32xf32, #tpu.memory_space<vmem>>, vector<1x32xf32>
    %c352 = arith.constant 352 : index
    %c0_165 = arith.constant 0 : index
    %209 = vector.load %arg10[%c352, %c0_165] : memref<512x256xf32, #tpu.memory_space<vmem>>, vector<32x256xf32>
    %cst_166 = arith.constant dense<0.000000e+00> : vector<1x256xf32>
    %210 = tpu.matmul %208, %209, %cst_166 {dimension_numbers = #tpu.dot_dimension_numbers<[1], [0], [0], [1], [0, 0, 1, 1], [], []>} : vector<1x32xf32>, vector<32x256xf32>, vector<1x256xf32> -> vector<1x256xf32>
    %211 = arith.addf %207, %210 : vector<1x256xf32>
    %c12 = arith.constant 12 : index
    %c0_167 = arith.constant 0 : index
    %212 = vector.load %arg16[%c12, %c0_167] : memref<16x32xf32, #tpu.memory_space<vmem>>, vector<1x32xf32>
    %c384 = arith.constant 384 : index
    %c0_168 = arith.constant 0 : index
    %213 = vector.load %arg10[%c384, %c0_168] : memref<512x256xf32, #tpu.memory_space<vmem>>, vector<32x256xf32>
    %cst_169 = arith.constant dense<0.000000e+00> : vector<1x256xf32>
    %214 = tpu.matmul %212, %213, %cst_169 {dimension_numbers = #tpu.dot_dimension_numbers<[1], [0], [0], [1], [0, 0, 1, 1], [], []>} : vector<1x32xf32>, vector<32x256xf32>, vector<1x256xf32> -> vector<1x256xf32>
    %215 = arith.addf %211, %214 : vector<1x256xf32>
    %c13 = arith.constant 13 : index
    %c0_170 = arith.constant 0 : index
    %216 = vector.load %arg16[%c13, %c0_170] : memref<16x32xf32, #tpu.memory_space<vmem>>, vector<1x32xf32>
    %c416 = arith.constant 416 : index
    %c0_171 = arith.constant 0 : index
    %217 = vector.load %arg10[%c416, %c0_171] : memref<512x256xf32, #tpu.memory_space<vmem>>, vector<32x256xf32>
    %cst_172 = arith.constant dense<0.000000e+00> : vector<1x256xf32>
    %218 = tpu.matmul %216, %217, %cst_172 {dimension_numbers = #tpu.dot_dimension_numbers<[1], [0], [0], [1], [0, 0, 1, 1], [], []>} : vector<1x32xf32>, vector<32x256xf32>, vector<1x256xf32> -> vector<1x256xf32>
    %219 = arith.addf %215, %218 : vector<1x256xf32>
    %c14 = arith.constant 14 : index
    %c0_173 = arith.constant 0 : index
    %220 = vector.load %arg16[%c14, %c0_173] : memref<16x32xf32, #tpu.memory_space<vmem>>, vector<1x32xf32>
    %c448 = arith.constant 448 : index
    %c0_174 = arith.constant 0 : index
    %221 = vector.load %arg10[%c448, %c0_174] : memref<512x256xf32, #tpu.memory_space<vmem>>, vector<32x256xf32>
    %cst_175 = arith.constant dense<0.000000e+00> : vector<1x256xf32>
    %222 = tpu.matmul %220, %221, %cst_175 {dimension_numbers = #tpu.dot_dimension_numbers<[1], [0], [0], [1], [0, 0, 1, 1], [], []>} : vector<1x32xf32>, vector<32x256xf32>, vector<1x256xf32> -> vector<1x256xf32>
    %223 = arith.addf %219, %222 : vector<1x256xf32>
    %c15 = arith.constant 15 : index
    %c0_176 = arith.constant 0 : index
    %224 = vector.load %arg16[%c15, %c0_176] : memref<16x32xf32, #tpu.memory_space<vmem>>, vector<1x32xf32>
    %c480 = arith.constant 480 : index
    %c0_177 = arith.constant 0 : index
    %225 = vector.load %arg10[%c480, %c0_177] : memref<512x256xf32, #tpu.memory_space<vmem>>, vector<32x256xf32>
    %cst_178 = arith.constant dense<0.000000e+00> : vector<1x256xf32>
    %226 = tpu.matmul %224, %225, %cst_178 {dimension_numbers = #tpu.dot_dimension_numbers<[1], [0], [0], [1], [0, 0, 1, 1], [], []>} : vector<1x32xf32>, vector<32x256xf32>, vector<1x256xf32> -> vector<1x256xf32>
    %227 = arith.addf %223, %226 : vector<1x256xf32>
    %c0_179 = arith.constant 0 : index
    %c0_180 = arith.constant 0 : index
    %228 = vector.load %arg11[%c0_179, %c0_180] : memref<1x256xf32, #tpu.memory_space<vmem>>, vector<1x256xf32>
    %229 = arith.addf %227, %228 : vector<1x256xf32>
    %cst_181 = arith.constant 0.000000e+00 : f32
    %230 = vector.broadcast %cst_181 : f32 to vector<1x256xf32>
    %231 = arith.maximumf %229, %230 : vector<1x256xf32>
    %c0_182 = arith.constant 0 : index
    %c0_183 = arith.constant 0 : index
    %232 = vector.load %arg12[%c0_182, %c0_183] : memref<256x64xf32, #tpu.memory_space<vmem>>, vector<256x64xf32>
    %cst_184 = arith.constant dense<0.000000e+00> : vector<1x64xf32>
    %233 = tpu.matmul %231, %232, %cst_184 {dimension_numbers = #tpu.dot_dimension_numbers<[1], [0], [0], [1], [0, 0, 1, 1], [], []>} : vector<1x256xf32>, vector<256x64xf32>, vector<1x64xf32> -> vector<1x64xf32>
    %c0_185 = arith.constant 0 : index
    %c0_186 = arith.constant 0 : index
    %234 = vector.load %arg13[%c0_185, %c0_186] : memref<1x64xf32, #tpu.memory_space<vmem>>, vector<1x64xf32>
    %235 = arith.addf %233, %234 : vector<1x64xf32>
    %c0_187 = arith.constant 0 : index
    %c0_188 = arith.constant 0 : index
    %c0_189 = arith.constant 0 : index
    %236 = vector.load %arg14[%c0_187, %c0_188, %c0_189] : memref<1x1x64xf32, #tpu.memory_space<vmem>>, vector<1x1x64xf32>
    %237 = vector.shape_cast %236 : vector<1x1x64xf32> to vector<1x64xf32>
    %238 = vector.shape_cast %235 : vector<1x64xf32> to vector<1x1x64xf32>
    tpu.vector_store %arg14[%c0_187, %c0_188, %c0_189], %238 {strides = array<i32>} : memref<1x1x64xf32, #tpu.memory_space<vmem>>, vector<1x1x64xf32>,
    return
  }
  func.func @transform_0(%arg0: i32) -> (i32, i32) {
    %c0_i32 = arith.constant 0 : i32
    %c0_i32_0 = arith.constant 0 : i32
    return %arg0, %c0_i32 : i32, i32
  }
  func.func @transform_1(%arg0: i32) -> (i32, i32) {
    %c0_i32 = arith.constant 0 : i32
    %c0_i32_0 = arith.constant 0 : i32
    %c0_i32_1 = arith.constant 0 : i32
    return %c0_i32, %c0_i32_0 : i32, i32
  }
  func.func @transform_2(%arg0: i32) -> (i32, i32) {
    %c0_i32 = arith.constant 0 : i32
    %c0_i32_0 = arith.constant 0 : i32
    %c0_i32_1 = arith.constant 0 : i32
    return %c0_i32, %c0_i32_0 : i32, i32
  }
  func.func @transform_3(%arg0: i32) -> (i32, i32) {
    %c0_i32 = arith.constant 0 : i32
    %c0_i32_0 = arith.constant 0 : i32
    %c0_i32_1 = arith.constant 0 : i32
    return %c0_i32, %c0_i32_0 : i32, i32
  }
  func.func @transform_4(%arg0: i32) -> (i32, i32) {
    %c0_i32 = arith.constant 0 : i32
    %c0_i32_0 = arith.constant 0 : i32
    %c0_i32_1 = arith.constant 0 : i32
    return %c0_i32, %c0_i32_0 : i32, i32
  }
  func.func @transform_5(%arg0: i32) -> (i32, i32) {
    %c0_i32 = arith.constant 0 : i32
    %c0_i32_0 = arith.constant 0 : i32
    %c0_i32_1 = arith.constant 0 : i32
    return %c0_i32, %c0_i32_0 : i32, i32
  }
  func.func @transform_6(%arg0: i32) -> (i32, i32) {
    %c0_i32 = arith.constant 0 : i32
    %c0_i32_0 = arith.constant 0 : i32
    %c0_i32_1 = arith.constant 0 : i32
    return %c0_i32, %c0_i32_0 : i32, i32
  }
  func.func @transform_7(%arg0: i32) -> (i32, i32) {
    %c0_i32 = arith.constant 0 : i32
    %c0_i32_0 = arith.constant 0 : i32
    %c0_i32_1 = arith.constant 0 : i32
    return %c0_i32, %c0_i32_0 : i32, i32
  }
  func.func @transform_8(%arg0: i32) -> (i32, i32) {
    %c0_i32 = arith.constant 0 : i32
    %c0_i32_0 = arith.constant 0 : i32
    %c0_i32_1 = arith.constant 0 : i32
    return %c0_i32, %c0_i32_0 : i32, i32
  }
  func.func @transform_9(%arg0: i32) -> (i32, i32) {
    %c0_i32 = arith.constant 0 : i32
    %c0_i32_0 = arith.constant 0 : i32
    %c0_i32_1 = arith.constant 0 : i32
    return %c0_i32, %c0_i32_0 : i32, i32
  }
  func.func @transform_10(%arg0: i32) -> (i32, i32) {
    %c0_i32 = arith.constant 0 : i32
    %c0_i32_0 = arith.constant 0 : i32
    %c0_i32_1 = arith.constant 0 : i32
    return %c0_i32, %c0_i32_0 : i32, i32
  }
  func.func @transform_11(%arg0: i32) -> (i32, i32) {
    %c0_i32 = arith.constant 0 : i32
    %c0_i32_0 = arith.constant 0 : i32
    %c0_i32_1 = arith.constant 0 : i32
    return %c0_i32, %c0_i32_0 : i32, i32
  }
  func.func @transform_12(%arg0: i32) -> (i32, i32) {
    %c0_i32 = arith.constant 0 : i32
    %c0_i32_0 = arith.constant 0 : i32
    %c0_i32_1 = arith.constant 0 : i32
    return %c0_i32, %c0_i32_0 : i32, i32
  }
  func.func @transform_13(%arg0: i32) -> (i32, i32, i32) {
    %c0_i32 = arith.constant 0 : i32
    %c0_i32_0 = arith.constant 0 : i32
    %c0_i32_1 = arith.constant 0 : i32
    return %arg0, %c0_i32, %c0_i32_0 : i32, i32, i32
  }
}

</mosaic_0001>

<bundles_post_ra>
// kernel: encoder_forward.1
= control target key start
LH: loop header
LB: loop body
LE: loop exit
PB: predicated region body
PF: predicated region fallthrough
CT: control target
= control target key end

     0   :  { %s6287_s25 = smov 0   ;;  %s9018_s0 = inlined_call_operand.vmem [shape: f32[2592,27], index: 0, kind: input, shape index: {}]   ;;  %s9019_s1 = inlined_call_operand.vmem [shape: f32[1296,1], index: 1, kind: input, shape index: {}]   ;;  %s9020_s2 = inlined_call_operand.vmem [shape: f32[144,1], index: 2, kind: input, shape index: {}]   ;;  %s9021_s3 = inlined_call_operand.vmem [shape: f32[27,8], index: 3, kind: input, shape index: {}]   ;;  %s9022_s4 = inlined_call_operand.vmem [shape: f32[1,8], index: 4, kind: input, shape index: {}]   ;;  %s9023_s5 = inlined_call_operand.vmem [shape: f32[72,16], index: 5, kind: input, shape index: {}]   ;;  %s9024_s6 = inlined_call_operand.vmem [shape: f32[1,16], index: 6, kind: input, shape index: {}]   ;;  %s9025_s7 = inlined_call_operand.vmem [shape: f32[144,32], index: 7, kind: input, shape index: {}]   ;;  %s9026_s8 = inlined_call_operand.vmem [shape: f32[1,32], index: 8, kind: input, shape index: {}]   ;;  %s9027_s9 = inlined_call_operand.vmem [shape: f32[512,256], index: 9, kind: input, shape index: {}]   ;;  %s9028_s10 = inlined_call_operand.vmem [shape: f32[1,256], index: 10, kind: input, shape index: {}]   ;;  %s9029_s11 = inlined_call_operand.vmem [shape: f32[256,64], index: 11, kind: input, shape index: {}]   ;;  %s9030_s12 = inlined_call_operand.vmem [shape: f32[1,64], index: 12, kind: input, shape index: {}]   ;;  %s9031_s13 = inlined_call_operand.vmem [shape: f32[2,1,64], index: 13, kind: output, shape index: {}]  }
   0x1 LB: > { %s6293_s26 = sadd.s32 4294967295, %s6214_s25   ;;  %p5799_p0 = scmp.ge.s32.totalorder %s6214_s25, 1  ;;  %s6214_s25 = sphi %s6287_s25, %s23_s25  }
   0x2   : > { %p388_p1 = scmp.lt.s32.totalorder %s6214_s25, 3 }
   0x4   : > { %p389_p2 = pnand %p5799_p0, %p388_p1 }
   0x6   : > { %392 = sbr.rel (%p389_p2) target bundleno = 1644 (0x66c), region = 72 }
   0xb   : > { %v905_v0 = vld [vmem:[%s9019_s1 + $0xb0] sm:$0xff]  ;;  %v903_v1 = vld [vmem:[%s9019_s1 + $0xa0] sm:$0xff]  ;;  %s430_s16 = smul.u32 162, %s6293_s26  ;;  %v6216_v3 = vmov 0   ;;  %v6310_v4 = vld [vmem:[%s9021_s3 + $0x18] sm:$0x7] }
   0xc   : > { %v901_v2 = vld [vmem:[%s9019_s1 + $0x90] sm:$0xff]  ;;  %6197 = vset.pattern.permute.xlu2 %v6216_v3  ;;  %6196 = vset.pattern.permute.xlu1 %v6216_v3  ;;  %vm520_vm0 = vcmask 1042432   ;;  %v6324_v6 = vld [vmem:[%s9021_s3 + $0x8] sm:$0xff]  ;;  %v6331_v7 = vld [vmem:[%s9021_s3] sm:$0xff]  ;;  %vm465_vm1 = vcmask 220160   ;;  %vm1028_vm2 = vcmask 64512  }
   0xd   : > { %6195 = vset.pattern.permute.xlu0 %v6216_v3  ;;  %941 = vperm.xlu2 %6197, %v905_v0   ;;  %p431_p3 = scmp.lt.s32.totalorder %s430_s16, 323  ;;  %v6315_v5 = vld [vmem:[%s9021_s3 + $0x10] sm:$0xff]  ;;  %v906_v10 = vld [vmem:[%s9019_s1 + $0xb8] sm:$0xff]  ;;  %v904_v11 = vld [vmem:[%s9019_s1 + $0xa8] sm:$0xff]  ;;  %vm4462_vm3 = vcmask 130048   ;;  %vm4800_vm4 = vcmask 261120  }
   0xe   : > { %931 = vperm.xlu1 %6196, %v903_v1   ;;  %921 = vperm.xlu0 %6195, %v901_v2   ;;  %v902_v12 = vld [vmem:[%s9019_s1 + $0x98] sm:$0xff]  ;;  %v909_v15 = vld [vmem:[%s9019_s1 + $0xd0] sm:$0xff]  ;;  %v908_v16 = vld [vmem:[%s9019_s1 + $0xc8] sm:$0xff]  ;;  %p436_p4 = scmp.lt.s32.totalorder %s6293_s26, 1  ;;  %vm5746_vm5 = vcmask 516096  }
   0xf   : > { %5801 = vmatpush.msk.msra.mxu0 %vm520_vm0, %v6310_v4  ;;  %5820 = vmatpush.msk.msra.mxu1 %vm520_vm0, %v6310_v4  ;;  %s9131_s16 = smov (!%p431_p3, %s430_s16), 323  ;;  %v907_v17 = vld [vmem:[%s9019_s1 + $0xc0] sm:$0xff]  ;;  %v912_v20 = vld [vmem:[%s9019_s1 + $0xe8] sm:$0xff]  ;;  %v910_v22 = vld [vmem:[%s9019_s1 + $0xd8] sm:$0xff] }
  0x10   : > { %s5800_s23 = sshll.u32 %s9131_s16, 3  ;;  %v911_v21 = vld [vmem:[%s9019_s1 + $0xe0] sm:$0xff]  ;;  %v914_v26 = vld [vmem:[%s9019_s1 + $0xf8] sm:$0xff]  ;;  %v913_v27 = vld [vmem:[%s9019_s1 + $0xf0] sm:$0xff]  ;;  %s9133_s26 = smov (!%p436_p4, %s6293_s26), 1 }
  0x11   : > { %537 = vmatpush.msra.mxu0 %v6315_v5  ;;  %825 = vmatpush.msra.mxu1 %v6315_v5  ;;  %s6336_s30 = scalar_lea.vmem %s9018_s0, %s5800_s23  ;;  %v915_v25 = vld [vmem:[%s9019_s1 + $0x100] sm:$0xff]  ;;  %v918_v30 = vld [vmem:[%s9019_s1 + $0x118] sm:$0xff]  ;;  %v917_v31 = vld [vmem:[%s9019_s1 + $0x110] sm:$0xff]  ;;  %s438_s15 = scalar_lea.vmem %s9031_s13, %s9133_s26 }
  0x12   : > { %v444_v8 = vld [vmem:[%s6336_s30] sm:$0xff]  ;;  %v740_v9 = vld [vmem:[%s6336_s30 + $0x90] sm:$0xff]  ;;  %v445_v13 = vld [vmem:[%s6336_s30 + $0x8] sm:$0xff] }
  0x13   : > { %538 = vmatpush.msra.mxu0 %v6324_v6  ;;  %826 = vmatpush.msra.mxu1 %v6324_v6  ;;  %v741_v14 = vld [vmem:[%s6336_s30 + $0x98] sm:$0xff]  ;;  %v446_v18 = vld [vmem:[%s6336_s30 + $0x10] sm:$0xff]  ;;  %v742_v19 = vld [vmem:[%s6336_s30 + $0xa0] sm:$0xff] }
  0x14   : > { %v447_v23 = vld [vmem:[%s6336_s30 + $0x18] sm:$0xff]  ;;  %v743_v24 = vld [vmem:[%s6336_s30 + $0xa8] sm:$0xff]  ;;  %v448_v28 = vld [vmem:[%s6336_s30 + $0x20] sm:$0xff] }
  0x15   : > { %539 = vmatpush.msra.mxu0 %v6331_v7  ;;  %827 = vmatpush.msra.mxu1 %v6331_v7  ;;  %v744_v29 = vld [vmem:[%s6336_s30 + $0xb0] sm:$0xff]  ;;  %v916_v32 = vld [vmem:[%s9019_s1 + $0x108] sm:$0xff]  ;;  %v745_v34 = vld [vmem:[%s6336_s30 + $0xb8] sm:$0xff] }
  0x16   : > { %5802 = vmatmul.msk.f32.vlgmr.msra.gmra.mxu0 %vm465_vm1, %v444_v8  ;;  %5821 = vmatmul.msk.f32.vlgmr.msra.gmra.mxu1 %vm465_vm1, %v740_v9  ;;  %v449_v33 = vld [vmem:[%s6336_s30 + $0x28] sm:$0xff]  ;;  %v615_v35 = vld [vmem:[%s9019_s1 + $0x10] sm:$0xff]  ;;  %v613_v37 = vld [vmem:[%s9019_s1] sm:$0xff] }
  0x17   : > { %946 = vperm.xlu2 %6197, %v906_v10   ;;  %936 = vperm.xlu1 %6196, %v904_v11   ;;  %v614_v36 = vld [vmem:[%s9019_s1 + $0x8] sm:$0xff]  ;;  %v450_v38 = vld [vmem:[%s6336_s30 + $0x30] sm:$0xff]  ;;  %v746_v39 = vld [vmem:[%s6336_s30 + $0xc0] sm:$0xff] }
  0x18   : > { %926 = vperm.xlu0 %6195, %v902_v12   ;;  %5912 = vmatpush.msk.msrb.mxu0 %vm520_vm0, %v6310_v4  ;;  %v618_v40 = vld [vmem:[%s9019_s1 + $0x28] sm:$0xff]  ;;  %v617_v41 = vld [vmem:[%s9019_s1 + $0x20] sm:$0xff]  ;;  %v616_v42 = vld [vmem:[%s9019_s1 + $0x18] sm:$0xff] }
  0x19   : > { %v451_v43 = vld [vmem:[%s6336_s30 + $0x38] sm:$0xff]  ;;  %v747_v44 = vld [vmem:[%s6336_s30 + $0xc8] sm:$0xff]  ;;  %v621_v45 = vld [vmem:[%s9019_s1 + $0x40] sm:$0xff] }
  0x1a   : > { %1795 = vmatpush.msrb.mxu0 %v6315_v5  ;;  %v620_v46 = vld [vmem:[%s9019_s1 + $0x38] sm:$0xff]  ;;  %v619_v47 = vld [vmem:[%s9019_s1 + $0x30] sm:$0xff]  ;;  %v452_v48 = vld [vmem:[%s6336_s30 + $0x40] sm:$0xff] }
  0x1b   : > { %v748_v49 = vld [vmem:[%s6336_s30 + $0xd0] sm:$0xff]  ;;  %v624_v50 = vld [vmem:[%s9019_s1 + $0x58] sm:$0xff]  ;;  %v622_v52 = vld [vmem:[%s9019_s1 + $0x48] sm:$0xff] }
  0x1c   : > { %1796 = vmatpush.msrb.mxu0 %v6324_v6  ;;  %v623_v51 = vld [vmem:[%s9019_s1 + $0x50] sm:$0xff]  ;;  %v453_v53 = vld [vmem:[%s6336_s30 + $0x48] sm:$0xff]  ;;  %v749_v54 = vld [vmem:[%s6336_s30 + $0xd8] sm:$0xff] }
  0x1d   : > { %v627_v55 = vld [vmem:[%s9019_s1 + $0x70] sm:$0xff]  ;;  %v626_v56 = vld [vmem:[%s9019_s1 + $0x68] sm:$0xff]  ;;  %v625_v57 = vld [vmem:[%s9019_s1 + $0x60] sm:$0xff] }
  0x1e   : > { %5803 = vmatmul.msk.f32.gmra.mxu0 %vm465_vm1, %v445_v13  ;;  %5822 = vmatmul.msk.f32.gmra.mxu1 %vm465_vm1, %v741_v14  ;;  %v454_v58 = vld [vmem:[%s6336_s30 + $0x50] sm:$0xff]  ;;  %v750_v59 = vld [vmem:[%s6336_s30 + $0xe0] sm:$0xff]  ;;  %v630_v60 = vld [vmem:[%s9019_s1 + $0x88] sm:$0xff] }
  0x1f   : > { %961 = vperm.xlu2 %6197, %v909_v15   ;;  %956 = vperm.xlu1 %6196, %v908_v16   ;;  %v629_v61 = vld [vmem:[%s9019_s1 + $0x80] sm:$0xff]  ;;  %v628_v62 = vld [vmem:[%s9019_s1 + $0x78] sm:$0xff]  ;;  %v751_v0 = vld [vmem:[%s6336_s30 + $0xe8] sm:$0xff] }
  0x20   : > { %951 = vperm.xlu0 %6195, %v907_v17   ;;  %1797 = vmatpush.msrb.mxu0 %v6331_v7  ;;  %v455_v63 = vld [vmem:[%s6336_s30 + $0x58] sm:$0xff]  ;;  %v1442_v1 = vld [vmem:[%s9019_s1 + $0x130] sm:$0xff]  ;;  %v1441_v2 = vld [vmem:[%s9019_s1 + $0x128] sm:$0xff] }
  0x21   : > { %v1440_v3 = vld [vmem:[%s9019_s1 + $0x120] sm:$0xff]  ;;  %v752_v9 = vld [vmem:[%s6336_s30 + $0xf0] sm:$0xff]  ;;  %v1445_v10 = vld [vmem:[%s9019_s1 + $0x148] sm:$0xff] }
  0x22   : > { %5986 = vmatpush.msk.msra.mxu0 %vm520_vm0, %v6310_v4  ;;  %v456_v8 = vld [vmem:[%s6336_s30 + $0x60] sm:$0xff]  ;;  %v1443_v12 = vld [vmem:[%s9019_s1 + $0x138] sm:$0xff]  ;;  %v1027_v14 = vld [vmem:[%s9023_s5 + $0x8] sm:$0xff] }
  0x23   : > { %v1444_v11 = vld [vmem:[%s9019_s1 + $0x140] sm:$0xff]  ;;  %1098 = vmatpush.msra.mxu2 %v1027_v14  ;;  %v457_v15 = vld [vmem:[%s6336_s30 + $0x68] sm:$0xff]  ;;  %v753_v16 = vld [vmem:[%s6336_s30 + $0xf8] sm:$0xff] }
  0x24   : > { %2657 = vmatpush.msra.mxu0 %v6315_v5  ;;  %v1448_v17 = vld [vmem:[%s9019_s1 + $0x160] sm:$0xff] }
  0x25   : > { %5875 = vmatpush.msk.msrb.mxu2 %vm520_vm0, %v6310_v4 }
  0x26   : > { %2658 = vmatpush.msra.mxu0 %v6324_v6  ;;  %5823 = vmatmul.msk.f32.gmra.mxu1 %vm465_vm1, %v742_v19  ;;  %v1446_v19 = vld [vmem:[%s9019_s1 + $0x150] sm:$0xff] }
  0x27   : > { %5804 = vmatmul.msk.f32.gmra.mxu0 %vm465_vm1, %v446_v18  ;;  %976 = vperm.xlu2 %6197, %v912_v20   ;;  %v1447_v18 = vld [vmem:[%s9019_s1 + $0x158] sm:$0xff] }
  0x28   : > { %971 = vperm.xlu1 %6196, %v911_v21   ;;  %966 = vperm.xlu0 %6195, %v910_v22  }
  0x29   : > { %2659 = vmatpush.msra.mxu0 %v6331_v7  ;;  %1364 = vmatpush.msrb.mxu2 %v6315_v5 }
  0x2b   : > { %1365 = vmatpush.msrb.mxu2 %v6324_v6 }
  0x2d   : > { %1366 = vmatpush.msrb.mxu2 %v6331_v7 }
  0x2e   : > { %5824 = vmatmul.msk.f32.gmra.mxu1 %vm465_vm1, %v743_v24  ;;  %v754_v24 = vld [vmem:[%s6336_s30 + $0x100] sm:$0xff] }
  0x2f   : > { %5805 = vmatmul.msk.f32.gmra.mxu0 %vm465_vm1, %v447_v23  ;;  %991 = vperm.xlu2 %6197, %v915_v25   ;;  %v458_v23 = vld [vmem:[%s6336_s30 + $0x70] sm:$0xff]  ;;  %v1451_v25 = vld [vmem:[%s9019_s1 + $0x178] sm:$0xff] }
  0x30   : > { %986 = vperm.xlu1 %6196, %v914_v26   ;;  %981 = vperm.xlu0 %6195, %v913_v27   ;;  %v1450_v26 = vld [vmem:[%s9019_s1 + $0x170] sm:$0xff]  ;;  %v1449_v27 = vld [vmem:[%s9019_s1 + $0x168] sm:$0xff] }
  0x36   : > { %5825 = vmatmul.msk.f32.gmra.mxu1 %vm465_vm1, %v744_v29 }
  0x37   : > { %5806 = vmatmul.msk.f32.gmra.mxu0 %vm465_vm1, %v448_v28  ;;  %1006 = vperm.xlu2 %6197, %v918_v30   ;;  %v459_v30 = vld [vmem:[%s6336_s30 + $0x78] sm:$0xff] }
  0x38   : > { %1001 = vperm.xlu1 %6196, %v917_v31   ;;  %996 = vperm.xlu0 %6195, %v916_v32   ;;  %v755_v31 = vld [vmem:[%s6336_s30 + $0x108] sm:$0xff] }
  0x3e   : > { %5826 = vmatmul.msk.f32.gmra.mxu1 %vm465_vm1, %v745_v34  ;;  %v1453_v34 = vld [vmem:[%s9019_s1 + $0x188] sm:$0xff] }
  0x3f   : > { %5807 = vmatmul.msk.f32.gmra.mxu0 %vm465_vm1, %v449_v33  ;;  %643 = vperm.xlu2 %6197, %v615_v35   ;;  %v1454_v33 = vld [vmem:[%s9019_s1 + $0x190] sm:$0xff]  ;;  %v1452_v35 = vld [vmem:[%s9019_s1 + $0x180] sm:$0xff] }
  0x40   : > { %638 = vperm.xlu1 %6196, %v614_v36   ;;  %633 = vperm.xlu0 %6195, %v613_v37   ;;  %v6581_v36 = vld [vmem:[%s9022_s4] ss:$0 sm:$0xff] }
  0x46   : > { %5827 = vmatmul.msk.f32.gmra.mxu1 %vm465_vm1, %v746_v39 }
  0x47   : > { %5808 = vmatmul.msk.f32.gmra.mxu0 %vm465_vm1, %v450_v38  ;;  %658 = vperm.xlu2 %6197, %v618_v40  }
  0x48   : > { %653 = vperm.xlu1 %6196, %v617_v41   ;;  %648 = vperm.xlu0 %6195, %v616_v42   ;;  %v460_v41 = vld [vmem:[%s6336_s30 + $0x80] sm:$0xff]  ;;  %v756_v42 = vld [vmem:[%s6336_s30 + $0x110] sm:$0xff] }
  0x4e   : > { %5828 = vmatmul.msk.f32.gmra.mxu1 %vm465_vm1, %v747_v44 }
  0x4f   : > { %5809 = vmatmul.msk.f32.gmra.mxu0 %vm465_vm1, %v451_v43  ;;  %673 = vperm.xlu2 %6197, %v621_v45   ;;  %v739_v43 = vld [vmem:[%s9023_s5] sm:$0xff]  ;;  %v1457_v45 = vld [vmem:[%s9019_s1 + $0x1a8] sm:$0xff] }
  0x50   : > { %668 = vperm.xlu1 %6196, %v620_v46   ;;  %663 = vperm.xlu0 %6195, %v619_v47   ;;  %v1456_v46 = vld [vmem:[%s9019_s1 + $0x1a0] sm:$0xff]  ;;  %v1455_v47 = vld [vmem:[%s9019_s1 + $0x198] sm:$0xff] }
  0x51   : > { %1223 = vmatpush.msra.mxu3 %v739_v43 }
  0x56   : > { %5829 = vmatmul.msk.f32.gmra.mxu1 %vm465_vm1, %v748_v49 }
  0x57   : > { %5810 = vmatmul.msk.f32.gmra.mxu0 %vm465_vm1, %v452_v48  ;;  %688 = vperm.xlu2 %6197, %v624_v50  }
  0x58   : > { %683 = vperm.xlu1 %6196, %v623_v51   ;;  %678 = vperm.xlu0 %6195, %v622_v52  }
  0x5e   : > { %5830 = vmatmul.msk.f32.gmra.mxu1 %vm465_vm1, %v749_v54 }
  0x5f   : > { %5811 = vmatmul.msk.f32.gmra.mxu0 %vm465_vm1, %v453_v53  ;;  %703 = vperm.xlu2 %6197, %v627_v55   ;;  %v461_v55 = vld [vmem:[%s6336_s30 + $0x88] sm:$0xff] }
  0x60   : > { %698 = vperm.xlu1 %6196, %v626_v56   ;;  %693 = vperm.xlu0 %6195, %v625_v57   ;;  %v757_v56 = vld [vmem:[%s6336_s30 + $0x118] sm:$0xff] }
  0x66   : > { %5831 = vmatmul.msk.f32.gmra.mxu1 %vm465_vm1, %v750_v59  ;;  %v1871_v59 = vld [vmem:[%s9019_s1 + $0x1b0] sm:$0xff] }
  0x67   : > { %5812 = vmatmul.msk.f32.gmra.mxu0 %vm465_vm1, %v454_v58  ;;  %718 = vperm.xlu2 %6197, %v630_v60   ;;  %v6521_v13 = vpop.permute.xlu2 %941  ;;  %v2303_v58 = vld [vmem:[%s9019_s1 + $0x248] sm:$0xff]  ;;  %v2302_v60 = vld [vmem:[%s9019_s1 + $0x240] sm:$0xff] }
  0x68   : > { %713 = vperm.xlu1 %6196, %v629_v61   ;;  %708 = vperm.xlu0 %6195, %v628_v62  }
  0x6e   : > { %5832 = vmatmul.msk.f32.gmra.mxu1 %vm465_vm1, %v751_v0 }
  0x6f   : > { %5813 = vmatmul.msk.f32.gmra.mxu0 %vm465_vm1, %v455_v63  ;;  %1470 = vperm.xlu2 %6197, %v1442_v1  }
  0x70   : > { %1465 = vperm.xlu1 %6196, %v1441_v2   ;;  %1460 = vperm.xlu0 %6195, %v1440_v3  }
  0x71   : > { %v6545_v22 = vpop.permute.xlu2 %946 }
  0x76   : > { %5833 = vmatmul.msk.f32.gmra.mxu1 %vm465_vm1, %v752_v9 }
  0x77   : > { %5814 = vmatmul.msk.f32.gmra.mxu0 %vm465_vm1, %v456_v8  ;;  %1485 = vperm.xlu2 %6197, %v1445_v10   ;;  %v1710_v8 = vld [vmem:[%s6336_s30 + $0x1b0] sm:$0xff]  ;;  %v1873_v10 = vld [vmem:[%s9019_s1 + $0x1c0] sm:$0xff] }
  0x78   : > { %1480 = vperm.xlu1 %6196, %v1444_v11   ;;  %1475 = vperm.xlu0 %6195, %v1443_v12   ;;  %v2304_v11 = vld [vmem:[%s9019_s1 + $0x250] sm:$0xff]  ;;  %v1872_v12 = vld [vmem:[%s9019_s1 + $0x1b8] sm:$0xff] }
  0x79   : > { %v6565_v32 = vpop.permute.xlu2 %961 }
  0x7e   : > { %5834 = vmatmul.msk.f32.gmra.mxu1 %vm465_vm1, %v753_v16 }
  0x7f   : > { %5815 = vmatmul.msk.f32.gmra.mxu0 %vm465_vm1, %v457_v15  ;;  %1500 = vperm.xlu2 %6197, %v1448_v17  }
  0x80   : > { %1495 = vperm.xlu1 %6196, %v1447_v18   ;;  %1490 = vperm.xlu0 %6195, %v1446_v19   ;;  %v6542_v20 = vpop.permute.xlu1 %931  ;;  %v922_v21 = vpop.permute.xlu0 %921 }
  0x81   : > { %v6604_v48 = vpop.permute.xlu2 %976 }
  0x86   : > { %5835 = vmatmul.msk.f32.gmra.mxu1 %vm465_vm1, %v754_v24  ;;  %v1711_v24 = vld [vmem:[%s6336_s30 + $0x1b8] sm:$0xff] }
  0x87   : > { %5816 = vmatmul.msk.f32.gmra.mxu0 %vm465_vm1, %v458_v23  ;;  %1515 = vperm.xlu2 %6197, %v1451_v25   ;;  %v1874_v25 = vld [vmem:[%s9019_s1 + $0x1c8] sm:$0xff] }
  0x88   : > { %1510 = vperm.xlu1 %6196, %v1450_v26   ;;  %1505 = vperm.xlu0 %6195, %v1449_v27  }
  0x89   : > { %v6561_v28 = vpop.permute.xlu1 %936  ;;  %v6630_v62 = vpop.permute.xlu2 %991 }
  0x8a   : > { %v927_v29 = vpop.permute.xlu0 %926 }
  0x8e   : > { %5836 = vmatmul.msk.f32.gmra.mxu1 %vm465_vm1, %v755_v31 }
  0x8f   : > { %5817 = vmatmul.msk.f32.gmra.mxu0 %vm465_vm1, %v459_v30  ;;  %1530 = vperm.xlu2 %6197, %v1454_v33  }
  0x90   : > { %1525 = vperm.xlu1 %6196, %v1453_v34   ;;  %1520 = vperm.xlu0 %6195, %v1452_v35  }
  0x91   : > { %v6583_v37 = vpop.permute.xlu1 %956  ;;  %v6656_v17 = vpop.permute.xlu2 %1006 }
  0x92   : > { %v6585_v38 = vpop.permute.xlu0 %951 }
  0x93   : > { %v6587_v39 = vpop.f32.mrf.mxu0  ;;  %v829_v40 = vpop.f32.mrf.mxu1 }
  0x94   : > { %v830_v44 = vadd.f32 %v6581_v36, %v829_v40  ;;  %v542_v19 = vadd.f32 %v6581_v36, %v6587_v39  ;;  %v1712_v39 = vld [vmem:[%s6336_s30 + $0x1c0] sm:$0xff] }
  0x96   : > { %v883_v49 = vmax.f32 %v830_v44, 0.0  ;;  %5837 = vmatmul.msk.f32.gmra.mxu1 %vm465_vm1, %v756_v42  ;;  %v595_v27 = vmax.f32 %v542_v19, 0.0  ;;  %v1876_v42 = vld [vmem:[%s9019_s1 + $0x1d8] sm:$0xff]  ;;  %v1878_v19 = vld [vmem:[%s9019_s1 + $0x1e8] sm:$0xff] }
  0x97   : > { %5818 = vmatmul.msk.f32.gmra.mxu0 %vm465_vm1, %v460_v41  ;;  %1545 = vperm.xlu2 %6197, %v1457_v45  }
  0x98   : > { %1540 = vperm.xlu1 %6196, %v1456_v46   ;;  %1535 = vperm.xlu0 %6195, %v1455_v47   ;;  %v1009_v50 = vmul.f32 %v922_v21, %v883_v49 }
  0x99   : > { %v644_v40 = vpop.permute.xlu2 %643 }
  0x9a   : > { %v6608_v51 = vpop.permute.xlu1 %971  ;;  %v6610_v52 = vpop.permute.xlu0 %966  ;;  %5839 = vmatmul.msk.f32.vlgmr.msra.gmra.mxu2 %vm1028_vm2, %v1009_v50 }
  0x9b   : > { %v544_v53 = vpop.f32.mrf.mxu0  ;;  %v832_v54 = vpop.f32.mrf.mxu1  ;;  %5949 = vmatpush.msk.msra.mxu2 %vm520_vm0, %v6310_v4 }
  0x9c   : > { %v833_v57 = vadd.f32 %v6581_v36, %v832_v54 }
  0x9d   : > { %2226 = vmatpush.msra.mxu2 %v6315_v5 }
  0x9e   : > { %v884_v61 = vmax.f32 %v833_v57, 0.0  ;;  %5838 = vmatmul.msk.f32.gmra.mxu1 %vm465_vm1, %v757_v56  ;;  %v2309_v57 = vld [vmem:[%s9019_s1 + $0x278] sm:$0xff] }
  0x9f   : > { %5819 = vmatmul.msk.f32.gmra.mxu0 %vm465_vm1, %v461_v55  ;;  %2327 = vperm.xlu2 %6197, %v2303_v58   ;;  %v1713_v55 = vld [vmem:[%s6336_s30 + $0x1c8] sm:$0xff]  ;;  %v2308_v58 = vld [vmem:[%s9019_s1 + $0x270] sm:$0xff] }
  0xa0   : > { %1891 = vperm.xlu1 %6196, %v1871_v59   ;;  %2322 = vperm.xlu0 %6195, %v2302_v60   ;;  %v1010_v63 = vmul.f32 %v927_v29, %v884_v61 }
  0xa1   : > { %2227 = vmatpush.msra.mxu2 %v6324_v6  ;;  %v6711_v59 = vpop.permute.xlu2 %658 }
  0xa2   : > { %v6633_v0 = vpop.permute.xlu1 %986  ;;  %v6635_v1 = vpop.permute.xlu0 %981  ;;  %5840 = vmatmul.msk.f32.gmra.mxu2 %vm1028_vm2, %v1010_v63 }
  0xa3   : > { %v835_v3 = vpop.f32.mrf.mxu1  ;;  %2228 = vmatpush.msra.mxu2 %v6331_v7 }
  0xa4   : > { %v547_v2 = vpop.f32.mrf.mxu0  ;;  %v836_v9 = vadd.f32 %v6581_v36, %v835_v3 }
  0xa5   : > { %v548_v49 = vadd.f32 %v6581_v36, %v547_v2 }
  0xa6   : > { %v885_v14 = vmax.f32 %v836_v9, 0.0 }
  0xa7   : > { %5913 = vmatmul.msk.f32.vlgmr.msrb.gmra.mxu0 %vm465_vm1, %v1710_v8  ;;  %1901 = vperm.xlu2 %6197, %v1873_v10   ;;  %v597_v61 = vmax.f32 %v548_v49, 0.0 }
  0xa8   : > { %2332 = vperm.xlu1 %6196, %v2304_v11   ;;  %1896 = vperm.xlu0 %6195, %v1872_v12   ;;  %v1011_v15 = vmul.f32 %v6542_v20, %v885_v14  ;;  %v1714_v12 = vld [vmem:[%s6336_s30 + $0x1d0] sm:$0xff] }
  0xa9   : > { %6060 = vmatpush.msk.msrb.mxu0 %vm520_vm0, %v6310_v4  ;;  %v2306_v4 = vld [vmem:[%s9019_s1 + $0x260] sm:$0xff]  ;;  %v723_v11 = vmul.f32 %v644_v40, %v597_v61 }
  0xaa   : > { %v6654_v16 = vpop.permute.xlu1 %1001  ;;  %v6658_v18 = vpop.permute.xlu0 %996  ;;  %5841 = vmatmul.msk.f32.gmra.mxu2 %vm1028_vm2, %v1011_v15  ;;  %v1879_v15 = vld [vmem:[%s9019_s1 + $0x1f0] sm:$0xff] }
  0xab   : > { %3519 = vmatpush.msrb.mxu0 %v6315_v5  ;;  %v838_v23 = vpop.f32.mrf.mxu1  ;;  %v2305_v5 = vld [vmem:[%s9019_s1 + $0x258] sm:$0xff] }
  0xac   : > { %v550_v21 = vpop.f32.mrf.mxu0  ;;  %v839_v20 = vadd.f32 %v6581_v36, %v838_v23 }
  0xad   : > { %3520 = vmatpush.msrb.mxu0 %v6324_v6  ;;  %v545_v6 = vadd.f32 %v6581_v36, %v544_v53  ;;  %v551_v8 = vadd.f32 %v6581_v36, %v550_v21 }
  0xae   : > { %v886_v26 = vmax.f32 %v839_v20, 0.0 }
  0xaf   : > { %5914 = vmatmul.msk.f32.gmra.mxu0 %vm465_vm1, %v1711_v24  ;;  %2342 = vperm.xlu2 %6197, %v2306_v4   ;;  %v596_v44 = vmax.f32 %v545_v6, 0.0  ;;  %v598_v23 = vmax.f32 %v551_v8, 0.0  ;;  %v6734_v24 = vpop.permute.xlu2 %673  ;;  %v2312_v6 = vld [vmem:[%s9019_s1 + $0x290] sm:$0xff] }
  0xb0   : > { %1906 = vperm.xlu1 %6196, %v1874_v25   ;;  %2337 = vperm.xlu0 %6195, %v2305_v5   ;;  %v1012_v29 = vmul.f32 %v6561_v28, %v886_v26  ;;  %v1875_v28 = vld [vmem:[%s9019_s1 + $0x1d0] sm:$0xff] }
  0xb1   : > { %3521 = vmatpush.msrb.mxu0 %v6331_v7  ;;  %v2307_v7 = vld [vmem:[%s9019_s1 + $0x268] sm:$0xff] }
  0xb2   : > { %v639_v30 = vpop.permute.xlu1 %638  ;;  %v634_v31 = vpop.permute.xlu0 %633  ;;  %5842 = vmatmul.msk.f32.gmra.mxu2 %vm1028_vm2, %v1012_v29  ;;  %v1715_v29 = vld [vmem:[%s6336_s30 + $0x1d8] sm:$0xff] }
  0xb3   : > { %v721_v33 = vmul.f32 %v634_v31, %v595_v27  ;;  %v841_v35 = vpop.f32.mrf.mxu1  ;;  %v722_v50 = vmul.f32 %v639_v30, %v596_v44 }
  0xb4   : > { %v553_v34 = vpop.f32.mrf.mxu0  ;;  %v842_v41 = vadd.f32 %v6581_v36, %v841_v35 }
  0xb5   : > { %5857 = vmatmul.msk.f32.vlgmr.msra.gmra.mxu3 %vm1028_vm2, %v721_v33  ;;  %v554_v25 = vadd.f32 %v6581_v36, %v553_v34  ;;  %v2311_v33 = vld [vmem:[%s9019_s1 + $0x288] sm:$0xff] }
  0xb6   : > { %v887_v43 = vmax.f32 %v842_v41, 0.0 }
  0xb7   : > { %5915 = vmatmul.msk.f32.gmra.mxu0 %vm465_vm1, %v1712_v39  ;;  %1916 = vperm.xlu2 %6197, %v1876_v42   ;;  %v599_v35 = vmax.f32 %v554_v25, 0.0  ;;  %v6757_v40 = vpop.permute.xlu2 %688  ;;  %v2316_v25 = vld [vmem:[%s9019_s1 + $0x2b0] sm:$0xff] }
  0xb8   : > { %2347 = vperm.xlu1 %6196, %v2307_v7   ;;  %1911 = vperm.xlu0 %6195, %v1875_v28   ;;  %v1013_v45 = vmul.f32 %v6521_v13, %v887_v43  ;;  %v1877_v13 = vld [vmem:[%s9019_s1 + $0x1e0] sm:$0xff] }
  0xb9   : > { %v1716_v43 = vld [vmem:[%s6336_s30 + $0x1e0] sm:$0xff] }
  0xba   : > { %v6695_v46 = vpop.permute.xlu1 %653  ;;  %v649_v47 = vpop.permute.xlu0 %648  ;;  %5843 = vmatmul.msk.f32.gmra.mxu2 %vm1028_vm2, %v1013_v45 }
  0xbb   : > { %v844_v54 = vpop.f32.mrf.mxu1  ;;  %v724_v5 = vmul.f32 %v649_v47, %v598_v23  ;;  %v725_v41 = vmul.f32 %v6695_v46, %v599_v35  ;;  %v1882_v47 = vld [vmem:[%s9019_s1 + $0x208] sm:$0xff]  ;;  %v1881_v46 = vld [vmem:[%s9019_s1 + $0x200] sm:$0xff]  ;;  %v1719_v35 = vld [vmem:[%s6336_s30 + $0x1f8] sm:$0xff] }
  0xbc   : > { %v556_v53 = vpop.f32.mrf.mxu0  ;;  %v845_v56 = vadd.f32 %v6581_v36, %v844_v54 }
  0xbd   : > { %5858 = vmatmul.msk.f32.gmra.mxu3 %vm1028_vm2, %v722_v50  ;;  %v557_v42 = vadd.f32 %v6581_v36, %v556_v53 }
  0xbe   : > { %v888_v60 = vmax.f32 %v845_v56, 0.0 }
  0xbf   : > { %5916 = vmatmul.msk.f32.gmra.mxu0 %vm465_vm1, %v1713_v55  ;;  %2357 = vperm.xlu2 %6197, %v2309_v57   ;;  %v600_v53 = vmax.f32 %v557_v42, 0.0  ;;  %v2317_v42 = vld [vmem:[%s9019_s1 + $0x2b8] sm:$0xff] }
  0xc0   : > { %1921 = vperm.xlu1 %6196, %v1877_v13   ;;  %2352 = vperm.xlu0 %6195, %v2308_v58   ;;  %v1014_v63 = vmul.f32 %v6545_v22, %v888_v60  ;;  %v2310_v22 = vld [vmem:[%s9019_s1 + $0x280] sm:$0xff]  ;;  %v1717_v58 = vld [vmem:[%s6336_s30 + $0x1e8] sm:$0xff]  ;;  %v6784_v60 = vpop.permute.xlu2 %703 }
  0xc1   : > { %v726_v13 = vmul.f32 %v6711_v59, %v600_v53  ;;  %v2314_v59 = vld [vmem:[%s9019_s1 + $0x2a0] sm:$0xff] }
  0xc2   : > { %v6715_v2 = vpop.permute.xlu1 %668  ;;  %v6717_v3 = vpop.permute.xlu0 %663  ;;  %5844 = vmatmul.msk.f32.gmra.mxu2 %vm1028_vm2, %v1014_v63  ;;  %v2315_v63 = vld [vmem:[%s9019_s1 + $0x2a8] sm:$0xff]  ;;  %v1720_v53 = vld [vmem:[%s6336_s30 + $0x200] sm:$0xff] }
  0xc3   : > { %v847_v10 = vpop.f32.mrf.mxu1 }
  0xc4   : > { %v559_v9 = vpop.f32.mrf.mxu0  ;;  %v848_v14 = vadd.f32 %v6581_v36, %v847_v10 }
  0xc5   : > { %5859 = vmatmul.msk.f32.gmra.mxu3 %vm1028_vm2, %v723_v11  ;;  %v560_v55 = vadd.f32 %v6581_v36, %v559_v9 }
  0xc6   : > { %v889_v21 = vmax.f32 %v848_v14, 0.0 }
  0xc7   : > { %5917 = vmatmul.msk.f32.gmra.mxu0 %vm465_vm1, %v1714_v12  ;;  %1931 = vperm.xlu2 %6197, %v1879_v15   ;;  %v601_v10 = vmax.f32 %v560_v55, 0.0 }
  0xc8   : > { %2362 = vperm.xlu1 %6196, %v2310_v22   ;;  %1926 = vperm.xlu0 %6195, %v1878_v19   ;;  %v1015_v20 = vmul.f32 %v6585_v38, %v889_v21  ;;  %v1880_v38 = vld [vmem:[%s9019_s1 + $0x1f8] sm:$0xff]  ;;  %v1718_v21 = vld [vmem:[%s6336_s30 + $0x1f0] sm:$0xff] }
  0xc9   : > { %v727_v19 = vmul.f32 %v6717_v3, %v601_v10  ;;  %v1721_v10 = vld [vmem:[%s6336_s30 + $0x208] sm:$0xff] }
  0xca   : > { %v6737_v4 = vpop.permute.xlu0 %678  ;;  %5845 = vmatmul.msk.f32.gmra.mxu2 %vm1028_vm2, %v1015_v20  ;;  %v6742_v30 = vpop.permute.xlu1 %683  ;;  %v1885_v20 = vld [vmem:[%s9019_s1 + $0x220] sm:$0xff] }
  0xcb   : > { %v850_v27 = vpop.f32.mrf.mxu1 }
  0xcc   : > { %v562_v26 = vpop.f32.mrf.mxu0  ;;  %v851_v31 = vadd.f32 %v6581_v36, %v850_v27 }
  0xcd   : > { %5860 = vmatmul.msk.f32.gmra.mxu3 %vm1028_vm2, %v724_v5  ;;  %v563_v14 = vadd.f32 %v6581_v36, %v562_v26  ;;  %v6818_v5 = vpop.permute.xlu2 %718 }
  0xce   : > { %v890_v34 = vmax.f32 %v851_v31, 0.0 }
  0xcf   : > { %5918 = vmatmul.msk.f32.gmra.mxu0 %vm465_vm1, %v1715_v29  ;;  %2372 = vperm.xlu2 %6197, %v2312_v6   ;;  %v602_v26 = vmax.f32 %v563_v14, 0.0 }
  0xd0   : > { %1936 = vperm.xlu1 %6196, %v1880_v38   ;;  %2367 = vperm.xlu0 %6195, %v2311_v33   ;;  %v1016_v39 = vmul.f32 %v6583_v37, %v890_v34  ;;  %v2313_v37 = vld [vmem:[%s9019_s1 + $0x298] sm:$0xff] }
  0xd1   : > { %v728_v34 = vmul.f32 %v6715_v2, %v602_v26  ;;  %v1722_v26 = vld [vmem:[%s6336_s30 + $0x210] sm:$0xff] }
  0xd2   : > { %5846 = vmatmul.msk.f32.gmra.mxu2 %vm1028_vm2, %v1016_v39  ;;  %v6763_v44 = vpop.permute.xlu0 %693  ;;  %v6776_v49 = vpop.permute.xlu1 %698 }
  0xd3   : > { %v853_v28 = vpop.f32.mrf.mxu1 }
  0xd4   : > { %v565_v7 = vpop.f32.mrf.mxu0  ;;  %v854_v45 = vadd.f32 %v6581_v36, %v853_v28 }
  0xd5   : > { %5861 = vmatmul.msk.f32.gmra.mxu3 %vm1028_vm2, %v725_v41  ;;  %v566_v6 = vadd.f32 %v6581_v36, %v565_v7  ;;  %v2318_v41 = vld [vmem:[%s9019_s1 + $0x2c0] sm:$0xff]  ;;  %v6842_v28 = vpop.permute.xlu2 %1470 }
  0xd6   : > { %v891_v50 = vmax.f32 %v854_v45, 0.0 }
  0xd7   : > { %5919 = vmatmul.msk.f32.gmra.mxu0 %vm465_vm1, %v1716_v43  ;;  %1946 = vperm.xlu2 %6197, %v1882_v47   ;;  %v603_v2 = vmax.f32 %v566_v6, 0.0  ;;  %v2735_v6 = vld [vmem:[%s9019_s1 + $0x2e0] sm:$0xff] }
  0xd8   : > { %2377 = vperm.xlu1 %6196, %v2313_v37   ;;  %1941 = vperm.xlu0 %6195, %v1881_v46   ;;  %v1017_v54 = vmul.f32 %v6565_v32, %v891_v50  ;;  %v1883_v32 = vld [vmem:[%s9019_s1 + $0x210] sm:$0xff] }
  0xd9   : > { %v729_v50 = vmul.f32 %v6734_v24, %v603_v2  ;;  %v1887_v24 = vld [vmem:[%s9019_s1 + $0x230] sm:$0xff] }
  0xda   : > { %5847 = vmatmul.msk.f32.gmra.mxu2 %vm1028_vm2, %v1017_v54  ;;  %v6797_v8 = vpop.permute.xlu0 %708  ;;  %v6800_v11 = vpop.permute.xlu1 %713 }
  0xdb   : > { %v856_v57 = vpop.f32.mrf.mxu1 }
  0xdc   : > { %v568_v56 = vpop.f32.mrf.mxu0  ;;  %v857_v61 = vadd.f32 %v6581_v36, %v856_v57  ;;  %v2319_v57 = vld [vmem:[%s9019_s1 + $0x2c8] sm:$0xff] }
  0xdd   : > { %5862 = vmatmul.msk.f32.gmra.mxu3 %vm1028_vm2, %v726_v13  ;;  %v569_v47 = vadd.f32 %v6581_v36, %v568_v56 }
  0xde   : > { %v892_v9 = vmax.f32 %v857_v61, 0.0  ;;  %v6868_v61 = vpop.permute.xlu2 %1485 }
  0xdf   : > { %5920 = vmatmul.msk.f32.gmra.mxu0 %vm465_vm1, %v1717_v58  ;;  %2387 = vperm.xlu2 %6197, %v2315_v63   ;;  %v604_v13 = vmax.f32 %v569_v47, 0.0 }
  0xe0   : > { %1951 = vperm.xlu1 %6196, %v1883_v32   ;;  %2382 = vperm.xlu0 %6195, %v2314_v59   ;;  %v1018_v12 = vmul.f32 %v6610_v52, %v892_v9  ;;  %v1884_v52 = vld [vmem:[%s9019_s1 + $0x218] sm:$0xff] }
  0xe1   : > { %v730_v9 = vmul.f32 %v6737_v4, %v604_v13  ;;  %v3164_v4 = vld [vmem:[%s9019_s1 + $0x360] sm:$0xff] }
  0xe2   : > { %5848 = vmatmul.msk.f32.gmra.mxu2 %vm1028_vm2, %v1018_v12  ;;  %v6821_v27 = vpop.permute.xlu0 %1460  ;;  %v6824_v31 = vpop.permute.xlu1 %1465 }
  0xe3   : > { %v859_v22 = vpop.f32.mrf.mxu1 }
  0xe4   : > { %v571_v15 = vpop.f32.mrf.mxu0  ;;  %v860_v23 = vadd.f32 %v6581_v36, %v859_v22  ;;  %v2733_v22 = vld [vmem:[%s9019_s1 + $0x2d0] sm:$0xff] }
  0xe5   : > { %5863 = vmatmul.msk.f32.gmra.mxu3 %vm1028_vm2, %v727_v19  ;;  %v572_v63 = vadd.f32 %v6581_v36, %v571_v15 }
  0xe6   : > { %v893_v3 = vmax.f32 %v860_v23, 0.0 }
  0xe7   : > { %5921 = vmatmul.msk.f32.gmra.mxu0 %vm465_vm1, %v1718_v21  ;;  %1961 = vperm.xlu2 %6197, %v1885_v20   ;;  %v605_v21 = vmax.f32 %v572_v63, 0.0 }
  0xe8   : > { %2392 = vperm.xlu1 %6196, %v2316_v25   ;;  %1956 = vperm.xlu0 %6195, %v1884_v52   ;;  %v1019_v29 = vmul.f32 %v6608_v51, %v893_v3  ;;  %v1886_v51 = vld [vmem:[%s9019_s1 + $0x228] sm:$0xff] }
  0xe9   : > { %v731_v3 = vmul.f32 %v6742_v30, %v605_v21 }
  0xea   : > { %5849 = vmatmul.msk.f32.gmra.mxu2 %vm1028_vm2, %v1019_v29  ;;  %v6845_v45 = vpop.permute.xlu0 %1475  ;;  %v6853_v54 = vpop.permute.xlu1 %1480 }
  0xeb   : > { %v862_v33 = vpop.f32.mrf.mxu1 }
  0xec   : > { %v574_v38 = vpop.f32.mrf.mxu0  ;;  %v863_v39 = vadd.f32 %v6581_v36, %v862_v33  ;;  %v6906_v33 = vpop.permute.xlu2 %1500 }
  0xed   : > { %5864 = vmatmul.msk.f32.gmra.mxu3 %vm1028_vm2, %v728_v34  ;;  %v575_v20 = vadd.f32 %v6581_v36, %v574_v38  ;;  %v2734_v38 = vld [vmem:[%s9019_s1 + $0x2d8] sm:$0xff] }
  0xee   : > { %v894_v7 = vmax.f32 %v863_v39, 0.0 }
  0xef   : > { %5922 = vmatmul.msk.f32.gmra.mxu0 %vm465_vm1, %v1719_v35  ;;  %2402 = vperm.xlu2 %6197, %v2318_v41   ;;  %v606_v35 = vmax.f32 %v575_v20, 0.0 }
  0xf0   : > { %1966 = vperm.xlu1 %6196, %v1886_v51   ;;  %2397 = vperm.xlu0 %6195, %v2317_v42   ;;  %v1020_v43 = vmul.f32 %v6604_v48, %v894_v7  ;;  %v1888_v48 = vld [vmem:[%s9019_s1 + $0x238] sm:$0xff]  ;;  %v1566_v51 = vld [vmem:[%s9023_s5 + $0x10] sm:$0xff] }
  0xf1   : > { %1636 = vmatpush.msrb.mxu3 %v1566_v51  ;;  %v1997_v42 = vld [vmem:[%s9023_s5 + $0x18] sm:$0xff]  ;;  %v732_v47 = vmul.f32 %v6757_v40, %v606_v35 }
  0xf2   : > { %5850 = vmatmul.msk.f32.gmra.mxu2 %vm1028_vm2, %v1020_v43  ;;  %v6876_v12 = vpop.permute.xlu0 %1490  ;;  %v6889_v15 = vpop.permute.xlu1 %1495  ;;  %2067 = vmatpush.msrb.mxu1 %v1997_v42 }
  0xf3   : > { %v865_v46 = vpop.f32.mrf.mxu1 }
  0xf4   : > { %v6849_v37 = vpop.f32.mrf.mxu0  ;;  %v866_v55 = vadd.f32 %v6581_v36, %v865_v46  ;;  %v6941_v40 = vpop.permute.xlu2 %1515 }
  0xf5   : > { %5865 = vmatmul.msk.f32.gmra.mxu3 %vm1028_vm2, %v729_v50  ;;  %v578_v7 = vadd.f32 %v6581_v36, %v6849_v37  ;;  %v3168_v50 = vld [vmem:[%s9019_s1 + $0x380] sm:$0xff]  ;;  %v3167_v37 = vld [vmem:[%s9019_s1 + $0x378] sm:$0xff] }
  0xf6   : > { %v895_v56 = vmax.f32 %v866_v55, 0.0 }
  0xf7   : > { %5923 = vmatmul.msk.f32.gmra.mxu0 %vm465_vm1, %v1720_v53  ;;  %1976 = vperm.xlu2 %6197, %v1888_v48   ;;  %v2736_v53 = vld [vmem:[%s9019_s1 + $0x2e8] sm:$0xff]  ;;  %v607_v48 = vmax.f32 %v578_v7, 0.0  ;;  %v1726_v7 = vld [vmem:[%s6336_s30 + $0x230] sm:$0xff] }
  0xf8   : > { %2407 = vperm.xlu1 %6196, %v2319_v57   ;;  %1971 = vperm.xlu0 %6195, %v1887_v24   ;;  %v1021_v58 = vmul.f32 %v6635_v1, %v895_v56  ;;  %v3165_v1 = vld [vmem:[%s9019_s1 + $0x368] sm:$0xff] }
  0xfa   : > { %5851 = vmatmul.msk.f32.gmra.mxu2 %vm1028_vm2, %v1021_v58  ;;  %v6912_v30 = vpop.permute.xlu0 %1505  ;;  %v6915_v39 = vpop.permute.xlu1 %1510 }
  0xfb   : > { %v868_v59 = vpop.f32.mrf.mxu1 }
  0xfc   : > { %v6872_v32 = vpop.f32.mrf.mxu0  ;;  %v869_v14 = vadd.f32 %v6581_v36, %v868_v59  ;;  %v733_v59 = vmul.f32 %v6763_v44, %v607_v48 }
  0xfd   : > { %5866 = vmatmul.msk.f32.gmra.mxu3 %vm1028_vm2, %v730_v9  ;;  %v581_v13 = vadd.f32 %v6581_v36, %v6872_v32  ;;  %v1724_v9 = vld [vmem:[%s6336_s30 + $0x220] sm:$0xff]  ;;  %v2737_v32 = vld [vmem:[%s9019_s1 + $0x2f0] sm:$0xff] }
  0xfe   : > { %v896_v19 = vmax.f32 %v869_v14, 0.0  ;;  %v2738_v14 = vld [vmem:[%s9019_s1 + $0x2f8] sm:$0xff] }
  0xff   : > { %5924 = vmatmul.msk.f32.gmra.mxu0 %vm465_vm1, %v1721_v10  ;;  %3189 = vperm.xlu2 %6197, %v3165_v1   ;;  %v608_v44 = vmax.f32 %v581_v13, 0.0 }
 0x100   : > { %2753 = vperm.xlu1 %6196, %v2733_v22   ;;  %3184 = vperm.xlu0 %6195, %v3164_v4   ;;  %v1022_v23 = vmul.f32 %v6633_v0, %v896_v19  ;;  %v3166_v0 = vld [vmem:[%s9019_s1 + $0x370] sm:$0xff]  ;;  %v6966_v4 = vpop.permute.xlu2 %1530 }
 0x102   : > { %5852 = vmatmul.msk.f32.gmra.mxu2 %vm1028_vm2, %v1022_v23  ;;  %v6943_v57 = vpop.permute.xlu0 %1520  ;;  %v6946_v56 = vpop.permute.xlu1 %1525 }
 0x103   : > { %v871_v52 = vpop.f32.mrf.mxu1 }
 0x104   : > { %v6895_v25 = vpop.f32.mrf.mxu0  ;;  %v872_v29 = vadd.f32 %v6581_v36, %v871_v52  ;;  %v734_v52 = vmul.f32 %v6776_v49, %v608_v44  ;;  %v3170_v49 = vld [vmem:[%s9019_s1 + $0x390] sm:$0xff] }
 0x105   : > { %5867 = vmatmul.msk.f32.gmra.mxu3 %vm1028_vm2, %v731_v3  ;;  %v584_v21 = vadd.f32 %v6581_v36, %v6895_v25  ;;  %v1725_v3 = vld [vmem:[%s6336_s30 + $0x228] sm:$0xff] }
 0x106   : > { %v897_v34 = vmax.f32 %v872_v29, 0.0  ;;  %v2739_v29 = vld [vmem:[%s9019_s1 + $0x300] sm:$0xff] }
 0x107   : > { %5925 = vmatmul.msk.f32.gmra.mxu0 %vm465_vm1, %v1722_v26  ;;  %2763 = vperm.xlu2 %6197, %v2735_v6  }
 0x108   : > { %3194 = vperm.xlu1 %6196, %v3166_v0   ;;  %2758 = vperm.xlu0 %6195, %v2734_v38   ;;  %v1023_v41 = vmul.f32 %v6630_v62, %v897_v34  ;;  %v1723_v62 = vld [vmem:[%s6336_s30 + $0x218] sm:$0xff]  ;;  %v609_v38 = vmax.f32 %v584_v21, 0.0  ;;  %v6995_v35 = vpop.permute.xlu2 %1545  ;;  %v1280_v21 = vld [vmem:[%s6336_s30 + $0x128] sm:$0xff] }
 0x10a   : > { %5853 = vmatmul.msk.f32.gmra.mxu2 %vm1028_vm2, %v1023_v41  ;;  %v6968_v19 = vpop.permute.xlu0 %1535  ;;  %v6984_v6 = vpop.permute.xlu1 %1540  ;;  %v735_v42 = vmul.f32 %v6784_v60, %v609_v38  ;;  %v2740_v60 = vld [vmem:[%s9019_s1 + $0x308] sm:$0xff] }
 0x10b   : > { %v874_v43 = vpop.f32.mrf.mxu1  ;;  %v2744_v38 = vld [vmem:[%s9019_s1 + $0x328] sm:$0xff] }
 0x10c   : > { %v586_v2 = vpop.f32.mrf.mxu0  ;;  %v875_v46 = vadd.f32 %v6581_v36, %v874_v43 }
 0x10d   : > { %5868 = vmatmul.msk.f32.gmra.mxu3 %vm1028_vm2, %v732_v47  ;;  %v587_v41 = vadd.f32 %v6581_v36, %v586_v2  ;;  %v2741_v47 = vld [vmem:[%s9019_s1 + $0x310] sm:$0xff] }
 0x10e   : > { %v898_v55 = vmax.f32 %v875_v46, 0.0 }
 0x10f   : > { %5926 = vmatmul.msk.f32.gmra.mxu0 %vm465_vm1, %v1723_v62  ;;  %3204 = vperm.xlu2 %6197, %v3168_v50   ;;  %v610_v50 = vmax.f32 %v587_v41, 0.0  ;;  %v2743_v41 = vld [vmem:[%s9019_s1 + $0x320] sm:$0xff] }
 0x110   : > { %2768 = vperm.xlu1 %6196, %v2736_v53   ;;  %3199 = vperm.xlu0 %6195, %v3167_v37   ;;  %v1024_v24 = vmul.f32 %v6658_v18, %v898_v55  ;;  %v3169_v18 = vld [vmem:[%s9019_s1 + $0x388] sm:$0xff]  ;;  %v1279_v37 = vld [vmem:[%s6336_s30 + $0x120] sm:$0xff] }
 0x111   : > { %v736_v13 = vmul.f32 %v6797_v8, %v610_v50  ;;  %v2742_v8 = vld [vmem:[%s9019_s1 + $0x318] sm:$0xff] }
 0x112   : > { %5854 = vmatmul.msk.f32.gmra.mxu2 %vm1028_vm2, %v1024_v24  ;;  %v7007_v62 = vpop.permute.xlu0 %2322  ;;  %v1892_v53 = vpop.permute.xlu1 %1891 }
 0x113   : > { %v877_v63 = vpop.f32.mrf.mxu1 }
 0x114   : > { %v589_v58 = vpop.f32.mrf.mxu0  ;;  %v878_v10 = vadd.f32 %v6581_v36, %v877_v63  ;;  %v1727_v63 = vld [vmem:[%s6336_s30 + $0x238] sm:$0xff] }
 0x115   : > { %5869 = vmatmul.msk.f32.gmra.mxu3 %vm1028_vm2, %v733_v59  ;;  %v590_v48 = vadd.f32 %v6581_v36, %v589_v58  ;;  %v7025_v59 = vld [vmem:[%s9021_s3 + $0x18] sm:$0x7]  ;;  %v7036_v58 = vpop.permute.xlu2 %2327 }
 0x116   : > { %v899_v1 = vmax.f32 %v878_v10, 0.0  ;;  %v3174_v10 = vld [vmem:[%s9019_s1 + $0x3b0] sm:$0xff] }
 0x117   : > { %5927 = vmatmul.msk.f32.gmra.mxu0 %vm465_vm1, %v1724_v9  ;;  %2778 = vperm.xlu2 %6197, %v2738_v14   ;;  %v611_v44 = vmax.f32 %v590_v48, 0.0 }
 0x118   : > { %3209 = vperm.xlu1 %6196, %v3169_v18   ;;  %2773 = vperm.xlu0 %6195, %v2737_v32   ;;  %v1025_v22 = vmul.f32 %v6654_v16, %v899_v1  ;;  %v3171_v16 = vld [vmem:[%s9019_s1 + $0x398] sm:$0xff]  ;;  %v3173_v18 = vld [vmem:[%s9019_s1 + $0x3a8] sm:$0xff]  ;;  %v7047_v32 = vld [vmem:[%s9021_s3 + $0x10] sm:$0xff] }
 0x11a   : > { %5855 = vmatmul.msk.f32.gmra.mxu2 %vm1028_vm2, %v1025_v22  ;;  %v1897_v22 = vpop.permute.xlu0 %1896 }
 0x11b   : > { %v880_v20 = vpop.f32.mrf.mxu1 }
 0x11c   : > { %v6973_v23 = vpop.f32.mrf.mxu0  ;;  %v881_v26 = vadd.f32 %v6581_v36, %v880_v20 }
 0x11d   : > { %5870 = vmatmul.msk.f32.gmra.mxu3 %vm1028_vm2, %v734_v52  ;;  %v6987_v25 = vpop.f32.mrf.mxu2  ;;  %v7055_v52 = vld [vmem:[%s9021_s3 + $0x8] sm:$0xff] }
 0x11e   : > { %v900_v0 = vmax.f32 %v881_v26, 0.0 }
 0x11f   : > { %5928 = vmatmul.msk.f32.gmra.mxu0 %vm465_vm1, %v1725_v3  ;;  %3219 = vperm.xlu2 %6197, %v3171_v16   ;;  %v593_v3 = vadd.f32 %v6581_v36, %v6973_v23  ;;  %v737_v16 = vmul.f32 %v6800_v11, %v611_v44  ;;  %v3175_v23 = vld [vmem:[%s9019_s1 + $0x3b8] sm:$0xff]  ;;  %v7077_v11 = vpop.permute.xlu1 %2332  ;;  %v3178_v44 = vld [vmem:[%s9019_s1 + $0x3d0] sm:$0xff] }
 0x120   : > { %2783 = vperm.xlu1 %6196, %v2739_v29   ;;  %3214 = vperm.xlu0 %6195, %v3170_v49   ;;  %v1026_v34 = vmul.f32 %v6656_v17, %v900_v0  ;;  %v3172_v17 = vld [vmem:[%s9019_s1 + $0x3a0] sm:$0xff]  ;;  %v2572_v29 = vld [vmem:[%s6336_s30 + $0x2d0] sm:$0xff] }
 0x121   : > { %v7067_v49 = vld [vmem:[%s9021_s3] sm:$0xff] }
 0x122   : > { %5856 = vmatmul.msk.f32.gmra.mxu2 %vm1028_vm2, %v1026_v34 }
 0x124   : > { %v1799_v51 = vpop.f32.mrf.mxu0 }
 0x125   : > { %v1800_v43 = vadd.f32 %v6581_v36, %v1799_v51  ;;  %5871 = vmatmul.msk.f32.gmra.mxu3 %vm1028_vm2, %v735_v42  ;;  %v7010_v2 = vpop.f32.mrf.mxu2  ;;  %v1902_v42 = vpop.permute.xlu2 %1901 }
 0x127   : > { %v1853_v46 = vmax.f32 %v1800_v43, 0.0  ;;  %5929 = vmatmul.msk.f32.gmra.mxu0 %vm465_vm1, %v1726_v7  ;;  %2793 = vperm.xlu2 %6197, %v2741_v47   ;;  %v612_v7 = vmax.f32 %v593_v3, 0.0  ;;  %v1281_v43 = vld [vmem:[%s6336_s30 + $0x130] sm:$0xff] }
 0x128   : > { %3224 = vperm.xlu1 %6196, %v3172_v17   ;;  %2788 = vperm.xlu0 %6195, %v2740_v60  }
 0x129   : > { %v1979_v55 = vmul.f32 %v1892_v53, %v1853_v46  ;;  %v738_v60 = vmul.f32 %v6818_v5, %v612_v7  ;;  %v2573_v46 = vld [vmem:[%s6336_s30 + $0x2d8] sm:$0xff]  ;;  %v3177_v53 = vld [vmem:[%s9019_s1 + $0x3c8] sm:$0xff]  ;;  %v3176_v5 = vld [vmem:[%s9019_s1 + $0x3c0] sm:$0xff] }
 0x12a   : > { %5876 = vmatmul.msk.f32.vlgmr.msrb.gmra.mxu2 %vm465_vm1, %v1279_v37  ;;  %v2745_v37 = vld [vmem:[%s9019_s1 + $0x330] sm:$0xff] }
 0x12b   : > { %5931 = vmatmul.msk.f32.vlgmr.msrb.gmra.mxu1 %vm1028_vm2, %v1979_v55  ;;  %6023 = vmatpush.msk.msrb.mxu2 %vm520_vm0, %v7025_v59  ;;  %v7098_v55 = vpop.permute.xlu0 %2337 }
 0x12c   : > { %v1802_v24 = vpop.f32.mrf.mxu0 }
 0x12d   : > { %v1803_v9 = vadd.f32 %v6581_v36, %v1802_v24  ;;  %5872 = vmatmul.msk.f32.gmra.mxu3 %vm1028_vm2, %v736_v13  ;;  %v7039_v14 = vpop.f32.mrf.mxu2  ;;  %3088 = vmatpush.msrb.mxu2 %v7047_v32  ;;  %v1907_v13 = vpop.permute.xlu1 %1906 }
 0x12f   : > { %v1854_v1 = vmax.f32 %v1803_v9, 0.0  ;;  %5930 = vmatmul.msk.f32.gmra.mxu0 %vm465_vm1, %v1727_v63  ;;  %3234 = vperm.xlu2 %6197, %v3174_v10   ;;  %v1282_v63 = vld [vmem:[%s6336_s30 + $0x138] sm:$0xff] }
 0x130   : > { %2798 = vperm.xlu1 %6196, %v2742_v8   ;;  %3229 = vperm.xlu0 %6195, %v3173_v18   ;;  %v2574_v8 = vld [vmem:[%s6336_s30 + $0x2e0] sm:$0xff] }
 0x131   : > { %v1980_v20 = vmul.f32 %v1897_v22, %v1854_v1  ;;  %3089 = vmatpush.msrb.mxu2 %v7055_v52  ;;  %v2747_v1 = vld [vmem:[%s9019_s1 + $0x340] sm:$0xff]  ;;  %v7118_v22 = vpop.permute.xlu2 %2342 }
 0x132   : > { %5877 = vmatmul.msk.f32.gmra.mxu2 %vm465_vm1, %v1280_v21 }
 0x133   : > { %5932 = vmatmul.msk.f32.gmra.mxu1 %vm1028_vm2, %v1980_v20  ;;  %3090 = vmatpush.msrb.mxu2 %v7067_v49  ;;  %v2746_v20 = vld [vmem:[%s9019_s1 + $0x338] sm:$0xff] }
 0x134   : > { %v1805_v26 = vpop.f32.mrf.mxu0 }
 0x135   : > { %v1806_v0 = vadd.f32 %v6581_v36, %v1805_v26  ;;  %5873 = vmatmul.msk.f32.gmra.mxu3 %vm1028_vm2, %v737_v16  ;;  %v7080_v34 = vpop.f32.mrf.mxu2  ;;  %v1912_v26 = vpop.permute.xlu0 %1911  ;;  %v1283_v16 = vld [vmem:[%s6336_s30 + $0x140] sm:$0xff] }
 0x137   : > { %v1855_v51 = vmax.f32 %v1806_v0, 0.0  ;;  %5987 = vmatmul.msk.f32.vlgmr.msra.gmra.mxu0 %vm465_vm1, %v2572_v29  ;;  %2808 = vperm.xlu2 %6197, %v2744_v38   ;;  %v2575_v38 = vld [vmem:[%s6336_s30 + $0x2e8] sm:$0xff] }
 0x138   : > { %3239 = vperm.xlu1 %6196, %v3175_v23   ;;  %2803 = vperm.xlu0 %6195, %v2743_v41   ;;  %v3180_v41 = vld [vmem:[%s9019_s1 + $0x3e0] sm:$0xff] }
 0x139   : > { %v1981_v47 = vmul.f32 %v1902_v42, %v1855_v51  ;;  %v2748_v51 = vld [vmem:[%s9019_s1 + $0x348] sm:$0xff]  ;;  %v7137_v42 = vpop.permute.xlu1 %2347 }
 0x13a   : > { %5878 = vmatmul.msk.f32.gmra.mxu2 %vm465_vm1, %v1281_v43  ;;  %v3179_v43 = vld [vmem:[%s9019_s1 + $0x3d8] sm:$0xff] }
 0x13b   : > { %5933 = vmatmul.msk.f32.gmra.mxu1 %vm1028_vm2, %v1981_v47 }
 0x13c   : > { %v1808_v17 = vpop.f32.mrf.mxu0 }
 0x13d   : > { %v1809_v50 = vadd.f32 %v6581_v36, %v1808_v17  ;;  %5874 = vmatmul.msk.f32.gmra.mxu3 %vm1028_vm2, %v738_v60  ;;  %v7101_v48 = vpop.f32.mrf.mxu2  ;;  %v1917_v17 = vpop.permute.xlu2 %1916  ;;  %v1284_v60 = vld [vmem:[%s6336_s30 + $0x148] sm:$0xff] }
 0x13f   : > { %v1856_v24 = vmax.f32 %v1809_v50, 0.0  ;;  %5988 = vmatmul.msk.f32.gmra.mxu0 %vm465_vm1, %v2573_v46  ;;  %3249 = vperm.xlu2 %6197, %v3177_v53   ;;  %v2576_v53 = vld [vmem:[%s6336_s30 + $0x2f0] sm:$0xff] }
 0x140   : > { %2813 = vperm.xlu1 %6196, %v2745_v37   ;;  %3244 = vperm.xlu0 %6195, %v3176_v5   ;;  %v2750_v5 = vld [vmem:[%s9019_s1 + $0x358] sm:$0xff] }
 0x141   : > { %v1982_v9 = vmul.f32 %v1907_v13, %v1856_v24  ;;  %v3181_v24 = vld [vmem:[%s9019_s1 + $0x3e8] sm:$0xff]  ;;  %v7156_v13 = vpop.permute.xlu0 %2352 }
 0x142   : > { %5879 = vmatmul.msk.f32.gmra.mxu2 %vm465_vm1, %v1282_v63 }
 0x143   : > { %5934 = vmatmul.msk.f32.gmra.mxu1 %vm1028_vm2, %v1982_v9  ;;  %v2749_v9 = vld [vmem:[%s9019_s1 + $0x350] sm:$0xff] }
 0x144   : > { %v1811_v10 = vpop.f32.mrf.mxu0 }
 0x145   : > { %v1812_v18 = vadd.f32 %v6581_v36, %v1811_v10  ;;  %v7120_v21 = vpop.f32.mrf.mxu2 }
 0x147   : > { %v1857_v3 = vmax.f32 %v1812_v18, 0.0  ;;  %5989 = vmatmul.msk.f32.gmra.mxu0 %vm465_vm1, %v2574_v8  ;;  %2823 = vperm.xlu2 %6197, %v2747_v1   ;;  %v1285_v8 = vld [vmem:[%s6336_s30 + $0x150] sm:$0xff] }
 0x148   : > { %3254 = vperm.xlu1 %6196, %v3178_v44   ;;  %2818 = vperm.xlu0 %6195, %v2746_v20   ;;  %v2577_v44 = vld [vmem:[%s6336_s30 + $0x2f8] sm:$0xff]  ;;  %v7171_v20 = vld [vmem:[%s9022_s4] ss:$0 sm:$0xff] }
 0x149   : > { %v1983_v29 = vmul.f32 %v1912_v26, %v1857_v3  ;;  %v4027_v26 = vld [vmem:[%s9019_s1 + $0x488] sm:$0xff] }
 0x14a   : > { %5880 = vmatmul.msk.f32.gmra.mxu2 %vm465_vm1, %v1283_v16  ;;  %v3595_v16 = vld [vmem:[%s9019_s1 + $0x3f0] sm:$0xff] }
 0x14b   : > { %5935 = vmatmul.msk.f32.gmra.mxu1 %vm1028_vm2, %v1983_v29  ;;  %v7180_v29 = vpop.permute.xlu2 %2357 }
 0x14c   : > { %v1814_v0 = vpop.f32.mrf.mxu0 }
 0x14d   : > { %v1815_v23 = vadd.f32 %v6581_v36, %v1814_v0  ;;  %v7139_v7 = vpop.f32.mrf.mxu2 }
 0x14f   : > { %v1858_v47 = vmax.f32 %v1815_v23, 0.0  ;;  %5990 = vmatmul.msk.f32.gmra.mxu0 %vm465_vm1, %v2575_v38  ;;  %3264 = vperm.xlu2 %6197, %v3180_v41   ;;  %v4026_v38 = vld [vmem:[%s9019_s1 + $0x480] sm:$0xff]  ;;  %v1927_v41 = vpop.permute.xlu0 %1926 }
 0x150   : > { %2828 = vperm.xlu1 %6196, %v2748_v51   ;;  %3259 = vperm.xlu0 %6195, %v3179_v43   ;;  %v1286_v51 = vld [vmem:[%s6336_s30 + $0x158] sm:$0xff] }
 0x151   : > { %v1984_v46 = vmul.f32 %v1917_v17, %v1858_v47  ;;  %v2578_v17 = vld [vmem:[%s6336_s30 + $0x300] sm:$0xff] }
 0x152   : > { %5881 = vmatmul.msk.f32.gmra.mxu2 %vm465_vm1, %v1284_v60 }
 0x153   : > { %5936 = vmatmul.msk.f32.gmra.mxu1 %vm1028_vm2, %v1984_v46  ;;  %v3597_v46 = vld [vmem:[%s9019_s1 + $0x400] sm:$0xff] }
 0x154   : > { %v1817_v50 = vpop.f32.mrf.mxu0 }
 0x155   : > { %v1818_v37 = vadd.f32 %v6581_v36, %v1817_v50  ;;  %v7158_v63 = vpop.f32.mrf.mxu2  ;;  %v1922_v36 = vpop.permute.xlu1 %1921  ;;  %v4028_v50 = vld [vmem:[%s9019_s1 + $0x490] sm:$0xff] }
 0x157   : > { %v1859_v10 = vmax.f32 %v1818_v37, 0.0  ;;  %5991 = vmatmul.msk.f32.gmra.mxu0 %vm465_vm1, %v2576_v53  ;;  %2838 = vperm.xlu2 %6197, %v2750_v5   ;;  %v3596_v5 = vld [vmem:[%s9019_s1 + $0x3f8] sm:$0xff] }
 0x158   : > { %3269 = vperm.xlu1 %6196, %v3181_v24   ;;  %2833 = vperm.xlu0 %6195, %v2749_v9   ;;  %v1932_v9 = vpop.permute.xlu2 %1931 }
 0x159   : > { %v1985_v18 = vmul.f32 %v1922_v36, %v1859_v10  ;;  %v1287_v10 = vld [vmem:[%s6336_s30 + $0x160] sm:$0xff] }
 0x15a   : > { %5882 = vmatmul.msk.f32.gmra.mxu2 %vm465_vm1, %v1285_v8 }
 0x15b   : > { %5937 = vmatmul.msk.f32.gmra.mxu1 %vm1028_vm2, %v1985_v18  ;;  %v2579_v18 = vld [vmem:[%s6336_s30 + $0x308] sm:$0xff] }
 0x15c   : > { %v1820_v1 = vpop.f32.mrf.mxu0 }
 0x15d   : > { %v1821_v3 = vadd.f32 %v7171_v20, %v1820_v1  ;;  %v7182_v0 = vpop.f32.mrf.mxu2  ;;  %v7199_v53 = vpop.permute.xlu1 %2362 }
 0x15f   : > { %v1860_v23 = vmax.f32 %v1821_v3, 0.0  ;;  %5992 = vmatmul.msk.f32.gmra.mxu0 %vm465_vm1, %v2577_v44  ;;  %4051 = vperm.xlu2 %6197, %v4027_v26   ;;  %v4030_v44 = vld [vmem:[%s9019_s1 + $0x4a0] sm:$0xff]  ;;  %v3598_v3 = vld [vmem:[%s9019_s1 + $0x408] sm:$0xff]  ;;  %v7218_v26 = vpop.permute.xlu0 %2367 }
 0x160   : > { %3615 = vperm.xlu1 %6196, %v3595_v16   ;;  %4046 = vperm.xlu0 %6195, %v4026_v38   ;;  %v4029_v38 = vld [vmem:[%s9019_s1 + $0x498] sm:$0xff] }
 0x161   : > { %v1986_v43 = vmul.f32 %v1927_v41, %v1860_v23 }
 0x162   : > { %5883 = vmatmul.msk.f32.gmra.mxu2 %vm465_vm1, %v1286_v51  ;;  %v1288_v51 = vld [vmem:[%s6336_s30 + $0x168] sm:$0xff] }
 0x163   : > { %5938 = vmatmul.msk.f32.gmra.mxu1 %vm1028_vm2, %v1986_v43 }
 0x164   : > { %v1823_v47 = vpop.f32.mrf.mxu0 }
 0x165   : > { %v1824_v60 = vadd.f32 %v7171_v20, %v1823_v47  ;;  %v7201_v37 = vpop.f32.mrf.mxu2  ;;  %v1937_v41 = vpop.permute.xlu1 %1936 }
 0x167   : > { %v1861_v24 = vmax.f32 %v1824_v60, 0.0  ;;  %5993 = vmatmul.msk.f32.gmra.mxu0 %vm465_vm1, %v2578_v17  ;;  %3625 = vperm.xlu2 %6197, %v3597_v46   ;;  %v2580_v17 = vld [vmem:[%s6336_s30 + $0x310] sm:$0xff]  ;;  %v3600_v46 = vld [vmem:[%s9019_s1 + $0x418] sm:$0xff] }
 0x168   : > { %4056 = vperm.xlu1 %6196, %v4028_v50   ;;  %3620 = vperm.xlu0 %6195, %v3596_v5   ;;  %v4031_v50 = vld [vmem:[%s9019_s1 + $0x4a8] sm:$0xff]  ;;  %v7237_v5 = vpop.permute.xlu2 %2372 }
 0x169   : > { %v1987_v36 = vmul.f32 %v1932_v9, %v1861_v24  ;;  %9032 = vst [vmem:[#allocation4_spill] sm:$0xff] %v7237_v5  ;;  %v3599_v9 = vld [vmem:[%s9019_s1 + $0x410] sm:$0xff] }
 0x16a   : > { %5884 = vmatmul.msk.f32.gmra.mxu2 %vm465_vm1, %v1287_v10 }
 0x16b   : > { %5939 = vmatmul.msk.f32.gmra.mxu1 %vm1028_vm2, %v1987_v36  ;;  %v1942_v36 = vpop.permute.xlu0 %1941 }
 0x16c   : > { %v1826_v8 = vpop.f32.mrf.mxu0 }
 0x16d   : > { %v1827_v1 = vadd.f32 %v7171_v20, %v1826_v8  ;;  %v7220_v16 = vpop.f32.mrf.mxu2  ;;  %v1289_v8 = vld [vmem:[%s6336_s30 + $0x170] sm:$0xff] }
 0x16f   : > { %v1862_v23 = vmax.f32 %v1827_v1, 0.0  ;;  %5994 = vmatmul.msk.f32.gmra.mxu0 %vm465_vm1, %v2579_v18  ;;  %4066 = vperm.xlu2 %6197, %v4030_v44   ;;  %v2581_v44 = vld [vmem:[%s6336_s30 + $0x318] sm:$0xff] }
 0x170   : > { %3630 = vperm.xlu1 %6196, %v3598_v3   ;;  %4061 = vperm.xlu0 %6195, %v4029_v38   ;;  %v4033_v38 = vld [vmem:[%s9019_s1 + $0x4b8] sm:$0xff] }
 0x171   : > { %v1988_v43 = vmul.f32 %v1937_v41, %v1862_v23  ;;  %v3601_v23 = vld [vmem:[%s9019_s1 + $0x420] sm:$0xff]  ;;  %v7256_v41 = vpop.permute.xlu1 %2377 }
 0x172   : > { %5885 = vmatmul.msk.f32.gmra.mxu2 %vm465_vm1, %v1288_v51  ;;  %9034 = vst [vmem:[#allocation6_spill] sm:$0xff] %v7256_v41 }
 0x173   : > { %5940 = vmatmul.msk.f32.gmra.mxu1 %vm1028_vm2, %v1988_v43  ;;  %v4032_v43 = vld [vmem:[%s9019_s1 + $0x4b0] sm:$0xff] }
 0x174   : > { %v1829_v47 = vpop.f32.mrf.mxu0 }
 0x175   : > { %v1830_v60 = vadd.f32 %v7171_v20, %v1829_v47  ;;  %v7239_v24 = vpop.f32.mrf.mxu2 }
 0x176   : > { %9033 = vst [vmem:[#allocation5_spill] sm:$0xff] %v7239_v24  ;;  %v2589_v24 = vld [vmem:[%s6336_s30 + $0x358] sm:$0xff] }
 0x177   : > { %v1863_v10 = vmax.f32 %v1830_v60, 0.0  ;;  %5995 = vmatmul.msk.f32.gmra.mxu0 %vm465_vm1, %v2580_v17  ;;  %3640 = vperm.xlu2 %6197, %v3600_v46   ;;  %v1947_v17 = vpop.permute.xlu2 %1946  ;;  %v1290_v60 = vld [vmem:[%s6336_s30 + $0x178] sm:$0xff] }
 0x178   : > { %4071 = vperm.xlu1 %6196, %v4031_v50   ;;  %3635 = vperm.xlu0 %6195, %v3599_v9   ;;  %v2582_v9 = vld [vmem:[%s6336_s30 + $0x320] sm:$0xff] }
 0x179   : > { %v1989_v18 = vmul.f32 %v1942_v36, %v1863_v10  ;;  %v7268_v10 = vpop.f32.mrf.mxu3 }
 0x17a   : > { %5886 = vmatmul.msk.f32.gmra.mxu2 %vm465_vm1, %v1289_v8  ;;  %v3603_v8 = vld [vmem:[%s9019_s1 + $0x430] sm:$0xff] }
 0x17b   : > { %5941 = vmatmul.msk.f32.gmra.mxu1 %vm1028_vm2, %v1989_v18  ;;  %v4034_v18 = vld [vmem:[%s9019_s1 + $0x4c0] sm:$0xff] }
 0x17c   : > { %v1832_v1 = vpop.f32.mrf.mxu0 }
 0x17d   : > { %v1833_v3 = vadd.f32 %v7171_v20, %v1832_v1  ;;  %v7258_v51 = vpop.f32.mrf.mxu2  ;;  %v7277_v1 = vpop.permute.xlu0 %2382 }
 0x17e   : > { %9035 = vst [vmem:[#allocation7_spill] sm:$0xff] %v7258_v51 }
 0x17f   : > { %v1864_v47 = vmax.f32 %v1833_v3, 0.0  ;;  %5996 = vmatmul.msk.f32.gmra.mxu0 %vm465_vm1, %v2581_v44  ;;  %4081 = vperm.xlu2 %6197, %v4033_v38   ;;  %9036 = vst [vmem:[#allocation8_spill] sm:$0xff] %v7277_v1  ;;  %v3602_v3 = vld [vmem:[%s9019_s1 + $0x428] sm:$0xff] }
 0x180   : > { %3645 = vperm.xlu1 %6196, %v3601_v23   ;;  %4076 = vperm.xlu0 %6195, %v4032_v43   ;;  %v1952_v23 = vpop.permute.xlu1 %1951  ;;  %v1291_v43 = vld [vmem:[%s6336_s30 + $0x180] sm:$0xff] }
 0x181   : > { %v1990_v46 = vmul.f32 %v1947_v17, %v1864_v47 }
 0x182   : > { %5887 = vmatmul.msk.f32.gmra.mxu2 %vm465_vm1, %v1290_v60  ;;  %v2583_v60 = vld [vmem:[%s6336_s30 + $0x328] sm:$0xff] }
 0x183   : > { %5942 = vmatmul.msk.f32.gmra.mxu1 %vm1028_vm2, %v1990_v46 }
 0x184   : > { %v1835_v50 = vpop.f32.mrf.mxu0 }
 0x185   : > { %v1836_v36 = vadd.f32 %v7171_v20, %v1835_v50  ;;  %v7279_v44 = vpop.f32.mrf.mxu2  ;;  %v4036_v50 = vld [vmem:[%s9019_s1 + $0x4d0] sm:$0xff] }
 0x186   : > { %9037 = vst [vmem:[#allocation9_spill] sm:$0xff] %v7279_v44 }
 0x187   : > { %v1865_v38 = vmax.f32 %v1836_v36, 0.0  ;;  %5997 = vmatmul.msk.f32.gmra.mxu0 %vm465_vm1, %v2582_v9  ;;  %3655 = vperm.xlu2 %6197, %v3603_v8   ;;  %v3604_v9 = vld [vmem:[%s9019_s1 + $0x438] sm:$0xff]  ;;  %v7296_v36 = vpop.permute.xlu2 %2387 }
 0x188   : > { %4086 = vperm.xlu1 %6196, %v4034_v18   ;;  %3650 = vperm.xlu0 %6195, %v3602_v3   ;;  %9038 = vst [vmem:[#allocation10_spill] sm:$0xff] %v7296_v36  ;;  %v4035_v18 = vld [vmem:[%s9019_s1 + $0x4c8] sm:$0xff]  ;;  %v7303_v3 = vpop.f32.mrf.mxu3  ;;  %v2584_v36 = vld [vmem:[%s6336_s30 + $0x330] sm:$0xff] }
 0x189   : > { %v1991_v47 = vmul.f32 %v1952_v23, %v1865_v38  ;;  %v1957_v23 = vpop.permute.xlu0 %1956 }
 0x18a   : > { %5888 = vmatmul.msk.f32.gmra.mxu2 %vm465_vm1, %v1291_v43  ;;  %v1292_v43 = vld [vmem:[%s6336_s30 + $0x188] sm:$0xff] }
 0x18b   : > { %5943 = vmatmul.msk.f32.gmra.mxu1 %vm1028_vm2, %v1991_v47 }
 0x18c   : > { %v1838_v17 = vpop.f32.mrf.mxu0 }
 0x18d   : > { %v1839_v46 = vadd.f32 %v7171_v20, %v1838_v17  ;;  %v7298_v8 = vpop.f32.mrf.mxu2 }
 0x18e   : > { %9039 = vst [vmem:[#allocation11_spill] sm:$0xff] %v7298_v8 }
 0x18f   : > { %v1866_v38 = vmax.f32 %v1839_v46, 0.0  ;;  %5998 = vmatmul.msk.f32.gmra.mxu0 %vm465_vm1, %v2583_v60  ;;  %4096 = vperm.xlu2 %6197, %v4036_v50   ;;  %v3606_v46 = vld [vmem:[%s9019_s1 + $0x448] sm:$0xff]  ;;  %v4037_v60 = vld [vmem:[%s9019_s1 + $0x4d8] sm:$0xff]  ;;  %v7317_v50 = vpop.permute.xlu1 %2392 }
 0x190   : > { %3660 = vperm.xlu1 %6196, %v3604_v9   ;;  %4091 = vperm.xlu0 %6195, %v4035_v18   ;;  %9040 = vst [vmem:[#allocation12_spill] sm:$0xff] %v7317_v50  ;;  %v3605_v18 = vld [vmem:[%s9019_s1 + $0x440] sm:$0xff] }
 0x191   : > { %v1992_v47 = vmul.f32 %v1957_v23, %v1866_v38  ;;  %v1962_v23 = vpop.permute.xlu2 %1961  ;;  %v2428_v50 = vld [vmem:[%s9023_s5 + $0x20] sm:$0xff] }
 0x192   : > { %5889 = vmatmul.msk.f32.gmra.mxu2 %vm465_vm1, %v1292_v43  ;;  %v1293_v43 = vld [vmem:[%s6336_s30 + $0x190] sm:$0xff]  ;;  %2498 = vmatpush.msra.mxu3 %v2428_v50 }
 0x193   : > { %5944 = vmatmul.msk.f32.gmra.mxu1 %vm1028_vm2, %v1992_v47  ;;  %v7326_v47 = vpop.f32.mrf.mxu3  ;;  %v3607_v50 = vld [vmem:[%s9019_s1 + $0x450] sm:$0xff] }
 0x194   : > { %v1841_v17 = vpop.f32.mrf.mxu0 }
 0x195   : > { %v1842_v8 = vadd.f32 %v7171_v20, %v1841_v17  ;;  %v7319_v9 = vpop.f32.mrf.mxu2 }
 0x196   : > { %9041 = vst [vmem:[#allocation13_spill] sm:$0xff] %v7319_v9  ;;  %v2859_v9 = vld [vmem:[%s9023_s5 + $0x28] sm:$0xff] }
 0x197   : > { %v1867_v38 = vmax.f32 %v1842_v8, 0.0  ;;  %5999 = vmatmul.msk.f32.gmra.mxu0 %vm465_vm1, %v2584_v36  ;;  %3670 = vperm.xlu2 %6197, %v3606_v46   ;;  %v2585_v8 = vld [vmem:[%s6336_s30 + $0x338] sm:$0xff] }
 0x198   : > { %4101 = vperm.xlu1 %6196, %v4037_v60   ;;  %3665 = vperm.xlu0 %6195, %v3605_v18   ;;  %v4039_v60 = vld [vmem:[%s9019_s1 + $0x4e8] sm:$0xff]  ;;  %v7344_v18 = vpop.permute.xlu0 %2397 }
 0x199   : > { %v1993_v17 = vmul.f32 %v1962_v23, %v1867_v38  ;;  %2929 = vmatpush.msra.mxu1 %v2859_v9  ;;  %9042 = vst [vmem:[#allocation14_spill] sm:$0xff] %v7344_v18  ;;  %v4038_v23 = vld [vmem:[%s9019_s1 + $0x4e0] sm:$0xff] }
 0x19a   : > { %5890 = vmatmul.msk.f32.gmra.mxu2 %vm465_vm1, %v1293_v43  ;;  %v1967_v43 = vpop.permute.xlu1 %1966 }
 0x19b   : > { %5945 = vmatmul.msk.f32.gmra.mxu1 %vm1028_vm2, %v1993_v17  ;;  %v1294_v17 = vld [vmem:[%s6336_s30 + $0x198] sm:$0xff]  ;;  %v7353_v1 = vpop.f32.mrf.mxu3 }
 0x19c   : > { %v1844_v36 = vpop.f32.mrf.mxu0 }
 0x19d   : > { %v1845_v46 = vadd.f32 %v7171_v20, %v1844_v36  ;;  %v7346_v38 = vpop.f32.mrf.mxu2 }
 0x19e   : > { %9043 = vst [vmem:[#allocation15_spill] sm:$0xff] %v7346_v38  ;;  %v2586_v38 = vld [vmem:[%s6336_s30 + $0x340] sm:$0xff] }
 0x19f   : > { %v1868_v9 = vmax.f32 %v1845_v46, 0.0  ;;  %6000 = vmatmul.msk.f32.gmra.mxu0 %vm465_vm1, %v2585_v8  ;;  %4111 = vperm.xlu2 %6197, %v4039_v60   ;;  %v3609_v8 = vld [vmem:[%s9019_s1 + $0x460] sm:$0xff]  ;;  %v4040_v46 = vld [vmem:[%s9019_s1 + $0x4f0] sm:$0xff]  ;;  %v7365_v60 = vpop.permute.xlu2 %2402 }
 0x1a0   : > { %3675 = vperm.xlu1 %6196, %v3607_v50   ;;  %4106 = vperm.xlu0 %6195, %v4038_v23   ;;  %9044 = vst [vmem:[#allocation16_spill] sm:$0xff] %v7365_v60  ;;  %v3608_v23 = vld [vmem:[%s9019_s1 + $0x458] sm:$0xff]  ;;  %v2587_v60 = vld [vmem:[%s6336_s30 + $0x348] sm:$0xff] }
 0x1a1   : > { %v1994_v36 = vmul.f32 %v1967_v43, %v1868_v9  ;;  %v1295_v43 = vld [vmem:[%s6336_s30 + $0x1a0] sm:$0xff] }
 0x1a2   : > { %5891 = vmatmul.msk.f32.gmra.mxu2 %vm465_vm1, %v1294_v17 }
 0x1a3   : > { %5946 = vmatmul.msk.f32.gmra.mxu1 %vm1028_vm2, %v1994_v36 }
 0x1a4   : > { %v1847_v18 = vpop.f32.mrf.mxu0 }
 0x1a5   : > { %v1848_v44 = vadd.f32 %v7171_v20, %v1847_v18  ;;  %v7367_v50 = vpop.f32.mrf.mxu2  ;;  %v1972_v18 = vpop.permute.xlu0 %1971 }
 0x1a6   : > { %9045 = vst [vmem:[#allocation17_spill] sm:$0xff] %v7367_v50  ;;  %v7377_v50 = vpop.f32.mrf.mxu3 }
 0x1a7   : > { %v1869_v9 = vmax.f32 %v1848_v44, 0.0  ;;  %6001 = vmatmul.msk.f32.gmra.mxu0 %vm465_vm1, %v2586_v38  ;;  %3685 = vperm.xlu2 %6197, %v3609_v8   ;;  %v4042_v44 = vld [vmem:[%s9019_s1 + $0x500] sm:$0xff]  ;;  %v3610_v38 = vld [vmem:[%s9019_s1 + $0x468] sm:$0xff]  ;;  %v7386_v8 = vpop.permute.xlu1 %2407 }
 0x1a8   : > { %4116 = vperm.xlu1 %6196, %v4040_v46   ;;  %3680 = vperm.xlu0 %6195, %v3608_v23   ;;  %9046 = vst [vmem:[#allocation18_spill] sm:$0xff] %v7386_v8  ;;  %v4041_v23 = vld [vmem:[%s9019_s1 + $0x4f8] sm:$0xff] }
 0x1a9   : > { %v1995_v17 = vmul.f32 %v1972_v18, %v1869_v9 }
 0x1aa   : > { %5892 = vmatmul.msk.f32.gmra.mxu2 %vm465_vm1, %v1295_v43  ;;  %v1977_v43 = vpop.permute.xlu2 %1976 }
 0x1ab   : > { %5947 = vmatmul.msk.f32.gmra.mxu1 %vm1028_vm2, %v1995_v17  ;;  %v1296_v17 = vld [vmem:[%s6336_s30 + $0x1a8] sm:$0xff] }
 0x1ac   : > { %v1850_v36 = vpop.f32.mrf.mxu0 }
 0x1ad   : > { %v1851_v41 = vadd.f32 %v7171_v20, %v1850_v36  ;;  %v1368_v46 = vpop.f32.mrf.mxu2  ;;  %v7394_v36 = vpop.f32.mrf.mxu1 }
 0x1ae   : > { %v1369_v18 = vadd.f32 %v7171_v20, %v1368_v46  ;;  %9047 = vst [vmem:[#allocation19_spill] sm:$0xff] %v7394_v36  ;;  %v2588_v46 = vld [vmem:[%s6336_s30 + $0x350] sm:$0xff] }
 0x1af   : > { %v1870_v9 = vmax.f32 %v1851_v41, 0.0  ;;  %6002 = vmatmul.msk.f32.gmra.mxu0 %vm465_vm1, %v2587_v60  ;;  %4126 = vperm.xlu2 %6197, %v4042_v44   ;;  %v3612_v44 = vld [vmem:[%s9019_s1 + $0x478] sm:$0xff] }
 0x1b0   : > { %3690 = vperm.xlu1 %6196, %v3610_v38   ;;  %v1422_v5 = vmax.f32 %v1369_v18, 0.0  ;;  %4121 = vperm.xlu0 %6195, %v4041_v23   ;;  %v4043_v38 = vld [vmem:[%s9019_s1 + $0x508] sm:$0xff]  ;;  %v7413_v23 = vpop.f32.mrf.mxu3  ;;  %v2754_v18 = vpop.permute.xlu1 %2753 }
 0x1b1   : > { %v1996_v51 = vmul.f32 %v1977_v43, %v1870_v9  ;;  %v2141_v43 = vld [vmem:[%s6336_s30 + $0x240] sm:$0xff] }
 0x1b2   : > { %v1548_v8 = vmul.f32 %v6821_v27, %v1422_v5  ;;  %5893 = vmatmul.msk.f32.gmra.mxu2 %vm465_vm1, %v1296_v17  ;;  %v7408_v27 = vpop.permute.xlu0 %3184 }
 0x1b3   : > { %5948 = vmatmul.msk.f32.gmra.mxu1 %vm1028_vm2, %v1996_v51  ;;  %9048 = vst [vmem:[#allocation20_spill] sm:$0xff] %v7408_v27  ;;  %v3611_v51 = vld [vmem:[%s9019_s1 + $0x470] sm:$0xff] }
 0x1b4   : > { %v2661_v41 = vpop.f32.mrf.mxu0  ;;  %5894 = vmatmul.msk.f32.vlgmr.msrb.gmra.mxu3 %vm1028_vm2, %v1548_v8 }
 0x1b5   : > { %v2662_v60 = vadd.f32 %v7171_v20, %v2661_v41  ;;  %v1371_v5 = vpop.f32.mrf.mxu2  ;;  %v7418_v27 = vpop.f32.mrf.mxu1 }
 0x1b6   : > { %v1372_v8 = vadd.f32 %v7171_v20, %v1371_v5  ;;  %v7434_v5 = vpop.permute.xlu2 %3189 }
 0x1b7   : > { %v2715_v9 = vmax.f32 %v2662_v60, 0.0  ;;  %6003 = vmatmul.msk.f32.gmra.mxu0 %vm465_vm1, %v2588_v46  ;;  %3700 = vperm.xlu2 %6197, %v3612_v44   ;;  %v4342_v44 = vld [vmem:[%s9020_s2 + $0x30] sm:$0xff] }
 0x1b8   : > { %4131 = vperm.xlu1 %6196, %v4043_v38   ;;  %v1423_v41 = vmax.f32 %v1372_v8, 0.0  ;;  %3695 = vperm.xlu0 %6195, %v3611_v51   ;;  %v4341_v38 = vld [vmem:[%s9020_s2 + $0x28] sm:$0xff]  ;;  %v4340_v51 = vld [vmem:[%s9020_s2 + $0x20] sm:$0xff] }
 0x1b9   : > { %v2841_v17 = vmul.f32 %v2754_v18, %v2715_v9  ;;  %v2142_v8 = vld [vmem:[%s6336_s30 + $0x248] sm:$0xff]  ;;  %v7443_v18 = vpop.f32.mrf.mxu3 }
 0x1ba   : > { %5950 = vmatmul.msk.f32.vlgmr.msra.gmra.mxu2 %vm465_vm1, %v2141_v43  ;;  %v1549_v36 = vmul.f32 %v6824_v31, %v1423_v41  ;;  %v2759_v9 = vpop.permute.xlu0 %2758 }
 0x1bb   : > { %6005 = vmatmul.msk.f32.vlgmr.msra.gmra.mxu1 %vm1028_vm2, %v2841_v17  ;;  %6097 = vmatpush.msk.msra.mxu2 %vm520_vm0, %v7025_v59 }
 0x1bc   : > { %v2664_v60 = vpop.f32.mrf.mxu0  ;;  %5895 = vmatmul.msk.f32.gmra.mxu3 %vm1028_vm2, %v1549_v36 }
 0x1bd   : > { %v2665_v46 = vadd.f32 %v7171_v20, %v2664_v60  ;;  %v1374_v31 = vpop.f32.mrf.mxu2  ;;  %3950 = vmatpush.msra.mxu2 %v7047_v32  ;;  %v3434_v60 = vld [vmem:[%s6336_s30 + $0x3f0] sm:$0xff] }
 0x1be   : > { %v1375_v36 = vadd.f32 %v7171_v20, %v1374_v31 }
 0x1bf   : > { %v2716_v59 = vmax.f32 %v2665_v46, 0.0  ;;  %6004 = vmatmul.msk.f32.gmra.mxu0 %vm465_vm1, %v2589_v24  ;;  %4386 = vperm.xlu2 %6197, %v4342_v44   ;;  %v7451_v24 = vpop.f32.mrf.mxu1  ;;  %v4343_v44 = vld [vmem:[%s9020_s2 + $0x38] sm:$0xff] }
 0x1c0   : > { %4381 = vperm.xlu1 %6196, %v4341_v38   ;;  %v1424_v17 = vmax.f32 %v1375_v36, 0.0  ;;  %4376 = vperm.xlu0 %6195, %v4340_v51   ;;  %v2143_v36 = vld [vmem:[%s6336_s30 + $0x250] sm:$0xff] }
 0x1c1   : > { %v2842_v43 = vmul.f32 %v2759_v9, %v2716_v59  ;;  %3951 = vmatpush.msra.mxu2 %v7055_v52  ;;  %v4345_v52 = vld [vmem:[%s9020_s2 + $0x48] sm:$0xff]  ;;  %v2764_v59 = vpop.permute.xlu2 %2763 }
 0x1c2   : > { %5951 = vmatmul.msk.f32.gmra.mxu2 %vm465_vm1, %v2142_v8  ;;  %v1550_v32 = vmul.f32 %v6842_v28, %v1424_v17  ;;  %v7461_v28 = vpop.permute.xlu1 %3194 }
 0x1c3   : > { %6006 = vmatmul.msk.f32.gmra.mxu1 %vm1028_vm2, %v2842_v43  ;;  %3952 = vmatpush.msra.mxu2 %v7067_v49  ;;  %v4344_v49 = vld [vmem:[%s9020_s2 + $0x40] sm:$0xff]  ;;  %v7469_v43 = vpop.f32.mrf.mxu3 }
 0x1c4   : > { %v2667_v41 = vpop.f32.mrf.mxu0  ;;  %5896 = vmatmul.msk.f32.gmra.mxu3 %vm1028_vm2, %v1550_v32 }
 0x1c5   : > { %v2668_v46 = vadd.f32 %v7171_v20, %v2667_v41  ;;  %v1377_v38 = vpop.f32.mrf.mxu2  ;;  %v3435_v41 = vld [vmem:[%s6336_s30 + $0x3f8] sm:$0xff] }
 0x1c6   : > { %v1378_v51 = vadd.f32 %v7171_v20, %v1377_v38 }
 0x1c7   : > { %v2717_v31 = vmax.f32 %v2668_v46, 0.0  ;;  %6061 = vmatmul.msk.f32.vlgmr.msrb.gmra.mxu0 %vm465_vm1, %v3434_v60  ;;  %4401 = vperm.xlu2 %6197, %v4345_v52   ;;  %v4346_v46 = vld [vmem:[%s9020_s2 + $0x50] sm:$0xff] }
 0x1c8   : > { %4391 = vperm.xlu1 %6196, %v4343_v44   ;;  %v1425_v8 = vmax.f32 %v1378_v51, 0.0  ;;  %4396 = vperm.xlu0 %6195, %v4344_v49   ;;  %v4338_v52 = vld [vmem:[%s9020_s2 + $0x10] sm:$0xff]  ;;  %v7483_v44 = vpop.permute.xlu0 %3199  ;;  %v7488_v49 = vpop.f32.mrf.mxu1 }
 0x1c9   : > { %v2843_v9 = vmul.f32 %v2764_v59, %v2717_v31  ;;  %9049 = vst [vmem:[#allocation21_spill] sm:$0xff] %v7483_v44 }
 0x1ca   : > { %5952 = vmatmul.msk.f32.gmra.mxu2 %vm465_vm1, %v2143_v36  ;;  %v1551_v17 = vmul.f32 %v6845_v45, %v1425_v8  ;;  %v4336_v45 = vld [vmem:[%s9020_s2] sm:$0xff]  ;;  %v2769_v59 = vpop.permute.xlu1 %2768  ;;  %v2144_v36 = vld [vmem:[%s6336_s30 + $0x258] sm:$0xff] }
 0x1cb   : > { %6007 = vmatmul.msk.f32.gmra.mxu1 %vm1028_vm2, %v2843_v9  ;;  %v7497_v44 = vpop.f32.mrf.mxu3 }
 0x1cc   : > { %v2670_v32 = vpop.f32.mrf.mxu0  ;;  %5897 = vmatmul.msk.f32.gmra.mxu3 %vm1028_vm2, %v1551_v17 }
 0x1cd   : > { %v2671_v60 = vadd.f32 %v7171_v20, %v2670_v32  ;;  %v1380_v38 = vpop.f32.mrf.mxu2 }
 0x1ce   : > { %v1381_v51 = vadd.f32 %v7171_v20, %v1380_v38  ;;  %v7507_v38 = vpop.permute.xlu2 %3204 }
 0x1cf   : > { %v2718_v31 = vmax.f32 %v2671_v60, 0.0  ;;  %6062 = vmatmul.msk.f32.gmra.mxu0 %vm465_vm1, %v3435_v41  ;;  %4406 = vperm.xlu2 %6197, %v4346_v46   ;;  %v3436_v60 = vld [vmem:[%s6336_s30 + $0x400] sm:$0xff]  ;;  %v4349_v46 = vld [vmem:[%s9020_s2 + $0x68] sm:$0xff]  ;;  %9050 = vst [vmem:[#allocation22_spill] sm:$0xff] %v7507_v38 }
 0x1d0   : > { %4366 = vperm.xlu1 %6196, %v4338_v52   ;;  %v1426_v8 = vmax.f32 %v1381_v51, 0.0  ;;  %4356 = vperm.xlu0 %6195, %v4336_v45   ;;  %v4347_v52 = vld [vmem:[%s9020_s2 + $0x58] sm:$0xff]  ;;  %v4348_v45 = vld [vmem:[%s9020_s2 + $0x60] sm:$0xff] }
 0x1d1   : > { %v2844_v9 = vmul.f32 %v2769_v59, %v2718_v31  ;;  %v2774_v59 = vpop.permute.xlu0 %2773 }
 0x1d2   : > { %5953 = vmatmul.msk.f32.gmra.mxu2 %vm465_vm1, %v2144_v36  ;;  %v1552_v17 = vmul.f32 %v6853_v54, %v1426_v8  ;;  %v2145_v36 = vld [vmem:[%s6336_s30 + $0x260] sm:$0xff] }
 0x1d3   : > { %6008 = vmatmul.msk.f32.gmra.mxu1 %vm1028_vm2, %v2844_v9  ;;  %v7515_v9 = vpop.f32.mrf.mxu1 }
 0x1d4   : > { %v2673_v32 = vpop.f32.mrf.mxu0  ;;  %5898 = vmatmul.msk.f32.gmra.mxu3 %vm1028_vm2, %v1552_v17 }
 0x1d5   : > { %v2674_v41 = vadd.f32 %v7171_v20, %v2673_v32  ;;  %v1383_v54 = vpop.f32.mrf.mxu2 }
 0x1d6   : > { %v1384_v51 = vadd.f32 %v7171_v20, %v1383_v54  ;;  %v3437_v54 = vld [vmem:[%s6336_s30 + $0x408] sm:$0xff] }
 0x1d7   : > { %v2719_v31 = vmax.f32 %v2674_v41, 0.0  ;;  %6063 = vmatmul.msk.f32.gmra.mxu0 %vm465_vm1, %v3436_v60  ;;  %4421 = vperm.xlu2 %6197, %v4349_v46   ;;  %v4337_v46 = vld [vmem:[%s9020_s2 + $0x8] sm:$0xff] }
 0x1d8   : > { %4411 = vperm.xlu1 %6196, %v4347_v52   ;;  %v1427_v17 = vmax.f32 %v1384_v51, 0.0  ;;  %4416 = vperm.xlu0 %6195, %v4348_v45   ;;  %v4352_v52 = vld [vmem:[%s9020_s2 + $0x80] sm:$0xff]  ;;  %v7529_v45 = vpop.permute.xlu1 %3209  ;;  %v7534_v51 = vpop.f32.mrf.mxu3 }
 0x1d9   : > { %v2845_v8 = vmul.f32 %v2774_v59, %v2719_v31  ;;  %9051 = vst [vmem:[#allocation23_spill] sm:$0xff] %v7529_v45 }
 0x1da   : > { %5954 = vmatmul.msk.f32.gmra.mxu2 %vm465_vm1, %v2145_v36  ;;  %v1553_v32 = vmul.f32 %v6868_v61, %v1427_v17  ;;  %v4350_v61 = vld [vmem:[%s9020_s2 + $0x70] sm:$0xff]  ;;  %v2146_v17 = vld [vmem:[%s6336_s30 + $0x268] sm:$0xff] }
 0x1db   : > { %6009 = vmatmul.msk.f32.gmra.mxu1 %vm1028_vm2, %v2845_v8  ;;  %v2779_v8 = vpop.permute.xlu2 %2778  ;;  %v7539_v45 = vpop.f32.mrf.mxu1 }
 0x1dc   : > { %v2676_v41 = vpop.f32.mrf.mxu0  ;;  %5899 = vmatmul.msk.f32.gmra.mxu3 %vm1028_vm2, %v1553_v32  ;;  %9052 = vst [vmem:[#allocation24_spill] sm:$0xff] %v7539_v45 }
 0x1dd   : > { %v2677_v60 = vadd.f32 %v7171_v20, %v2676_v41  ;;  %v1386_v31 = vpop.f32.mrf.mxu2 }
 0x1de   : > { %v1387_v36 = vadd.f32 %v7171_v20, %v1386_v31  ;;  %v3438_v31 = vld [vmem:[%s6336_s30 + $0x410] sm:$0xff] }
 0x1df   : > { %v2720_v59 = vmax.f32 %v2677_v60, 0.0  ;;  %6064 = vmatmul.msk.f32.gmra.mxu0 %vm465_vm1, %v3437_v54  ;;  %4361 = vperm.xlu2 %6197, %v4337_v46   ;;  %v4353_v46 = vld [vmem:[%s9020_s2 + $0x88] sm:$0xff] }
 0x1e0   : > { %4436 = vperm.xlu1 %6196, %v4352_v52   ;;  %v1428_v41 = vmax.f32 %v1387_v36, 0.0  ;;  %4426 = vperm.xlu0 %6195, %v4350_v61   ;;  %v4351_v52 = vld [vmem:[%s9020_s2 + $0x78] sm:$0xff] }
 0x1e1   : > { %v2846_v32 = vmul.f32 %v2779_v8, %v2720_v59  ;;  %v4339_v59 = vld [vmem:[%s9020_s2 + $0x18] sm:$0xff] }
 0x1e2   : > { %v1554_v38 = vmul.f32 %v6876_v12, %v1428_v41  ;;  %5955 = vmatmul.msk.f32.gmra.mxu2 %vm465_vm1, %v2146_v17  ;;  %v7553_v12 = vpop.permute.xlu0 %3214  ;;  %v2147_v17 = vld [vmem:[%s6336_s30 + $0x270] sm:$0xff] }
 0x1e3   : > { %6010 = vmatmul.msk.f32.gmra.mxu1 %vm1028_vm2, %v2846_v32  ;;  %9053 = vst [vmem:[#allocation25_spill] sm:$0xff] %v7553_v12  ;;  %v7561_v32 = vpop.f32.mrf.mxu3  ;;  %v7567_v45 = vpop.f32.mrf.mxu1 }
 0x1e4   : > { %v2679_v60 = vpop.f32.mrf.mxu0  ;;  %5900 = vmatmul.msk.f32.gmra.mxu3 %vm1028_vm2, %v1554_v38  ;;  %v2784_v38 = vpop.permute.xlu1 %2783 }
 0x1e5   : > { %v2680_v54 = vadd.f32 %v7171_v20, %v2679_v60  ;;  %v1389_v61 = vpop.f32.mrf.mxu2 }
 0x1e6   : > { %v1390_v8 = vadd.f32 %v7171_v20, %v1389_v61  ;;  %v3439_v61 = vld [vmem:[%s6336_s30 + $0x418] sm:$0xff] }
 0x1e7   : > { %v2721_v36 = vmax.f32 %v2680_v54, 0.0  ;;  %6065 = vmatmul.msk.f32.gmra.mxu0 %vm465_vm1, %v3438_v31  ;;  %4441 = vperm.xlu2 %6197, %v4353_v46   ;;  %v7571_v46 = vpop.permute.xlu2 %3219 }
 0x1e8   : > { %4431 = vperm.xlu1 %6196, %v4351_v52   ;;  %v1429_v60 = vmax.f32 %v1390_v8, 0.0  ;;  %4371 = vperm.xlu0 %6195, %v4339_v59   ;;  %9054 = vst [vmem:[#allocation26_spill] sm:$0xff] %v7571_v46  ;;  %v2148_v8 = vld [vmem:[%s6336_s30 + $0x278] sm:$0xff] }
 0x1e9   : > { %v2847_v41 = vmul.f32 %v2784_v38, %v2721_v36 }
 0x1ea   : > { %v1555_v12 = vmul.f32 %v6889_v15, %v1429_v60  ;;  %5956 = vmatmul.msk.f32.gmra.mxu2 %vm465_vm1, %v2147_v17  ;;  %v2789_v15 = vpop.permute.xlu0 %2788 }
 0x1eb   : > { %6011 = vmatmul.msk.f32.gmra.mxu1 %vm1028_vm2, %v2847_v41  ;;  %v7576_v41 = vpop.f32.mrf.mxu3 }
 0x1ec   : > { %v2682_v54 = vpop.f32.mrf.mxu0  ;;  %5901 = vmatmul.msk.f32.gmra.mxu3 %vm1028_vm2, %v1555_v12 }
 0x1ed   : > { %v2683_v31 = vadd.f32 %v7171_v20, %v2682_v54  ;;  %v1392_v52 = vpop.f32.mrf.mxu2  ;;  %v3440_v54 = vld [vmem:[%s6336_s30 + $0x420] sm:$0xff] }
 0x1ee   : > { %v1393_v59 = vadd.f32 %v7171_v20, %v1392_v52 }
 0x1ef   : > { %v2722_v36 = vmax.f32 %v2683_v31, 0.0  ;;  %6066 = vmatmul.msk.f32.gmra.mxu0 %vm465_vm1, %v3439_v61  ;;  %v7584_v61 = vpop.permute.xlu1 %3224 }
 0x1f0   : > { %v1430_v17 = vmax.f32 %v1393_v59, 0.0  ;;  %9055 = vst [vmem:[#allocation27_spill] sm:$0xff] %v7584_v61  ;;  %v3441_v61 = vld [vmem:[%s6336_s30 + $0x428] sm:$0xff] }
 0x1f1   : > { %v2848_v38 = vmul.f32 %v2789_v15, %v2722_v36  ;;  %v7586_v36 = vpop.f32.mrf.mxu1 }
 0x1f2   : > { %v1556_v60 = vmul.f32 %v6906_v33, %v1430_v17  ;;  %5957 = vmatmul.msk.f32.gmra.mxu2 %vm465_vm1, %v2148_v8  ;;  %v2794_v33 = vpop.permute.xlu2 %2793  ;;  %v2149_v8 = vld [vmem:[%s6336_s30 + $0x280] sm:$0xff] }
 0x1f3   : > { %6012 = vmatmul.msk.f32.gmra.mxu1 %vm1028_vm2, %v2848_v38  ;;  %v7595_v46 = vpop.f32.mrf.mxu3 }
 0x1f4   : > { %v2685_v12 = vpop.f32.mrf.mxu0  ;;  %5902 = vmatmul.msk.f32.gmra.mxu3 %vm1028_vm2, %v1556_v60 }
 0x1f5   : > { %v2686_v31 = vadd.f32 %v7171_v20, %v2685_v12  ;;  %v1395_v52 = vpop.f32.mrf.mxu2 }
 0x1f6   : > { %v1396_v15 = vadd.f32 %v7171_v20, %v1395_v52 }
 0x1f7   : > { %v2723_v59 = vmax.f32 %v2686_v31, 0.0  ;;  %6067 = vmatmul.msk.f32.gmra.mxu0 %vm465_vm1, %v3440_v54  ;;  %v7599_v54 = vpop.permute.xlu0 %3229 }
 0x1f8   : > { %v1431_v17 = vmax.f32 %v1396_v15, 0.0  ;;  %9056 = vst [vmem:[#allocation28_spill] sm:$0xff] %v7599_v54  ;;  %v3442_v54 = vld [vmem:[%s6336_s30 + $0x430] sm:$0xff] }
 0x1f9   : > { %v2849_v38 = vmul.f32 %v2794_v33, %v2723_v59  ;;  %v2150_v33 = vld [vmem:[%s6336_s30 + $0x288] sm:$0xff] }
 0x1fa   : > { %v1557_v12 = vmul.f32 %v6912_v30, %v1431_v17  ;;  %5958 = vmatmul.msk.f32.gmra.mxu2 %vm465_vm1, %v2149_v8  ;;  %v2799_v30 = vpop.permute.xlu1 %2798  ;;  %v7604_v8 = vpop.f32.mrf.mxu1 }
 0x1fb   : > { %6013 = vmatmul.msk.f32.gmra.mxu1 %vm1028_vm2, %v2849_v38  ;;  %9057 = vst [vmem:[#allocation29_spill] sm:$0xff] %v7604_v8  ;;  %v7614_v8 = vpop.f32.mrf.mxu3 }
 0x1fc   : > { %v2688_v60 = vpop.f32.mrf.mxu0  ;;  %5903 = vmatmul.msk.f32.gmra.mxu3 %vm1028_vm2, %v1557_v12 }
 0x1fd   : > { %v2689_v31 = vadd.f32 %v7171_v20, %v2688_v60  ;;  %v1398_v52 = vpop.f32.mrf.mxu2 }
 0x1fe   : > { %v1399_v15 = vadd.f32 %v7171_v20, %v1398_v52 }
 0x1ff   : > { %v2724_v59 = vmax.f32 %v2689_v31, 0.0  ;;  %6068 = vmatmul.msk.f32.gmra.mxu0 %vm465_vm1, %v3441_v61  ;;  %v7612_v61 = vpop.permute.xlu2 %3234 }
 0x200   : > { %v1432_v17 = vmax.f32 %v1399_v15, 0.0  ;;  %9058 = vst [vmem:[#allocation30_spill] sm:$0xff] %v7612_v61  ;;  %v3443_v61 = vld [vmem:[%s6336_s30 + $0x438] sm:$0xff] }
 0x201   : > { %v2850_v38 = vmul.f32 %v2799_v30, %v2724_v59  ;;  %v2151_v30 = vld [vmem:[%s6336_s30 + $0x290] sm:$0xff] }
 0x202   : > { %v1558_v60 = vmul.f32 %v6915_v39, %v1432_v17  ;;  %5959 = vmatmul.msk.f32.gmra.mxu2 %vm465_vm1, %v2150_v33  ;;  %v2804_v39 = vpop.permute.xlu0 %2803  ;;  %v7619_v17 = vpop.f32.mrf.mxu1 }
 0x203   : > { %6014 = vmatmul.msk.f32.gmra.mxu1 %vm1028_vm2, %v2850_v38  ;;  %9059 = vst [vmem:[#allocation31_spill] sm:$0xff] %v7619_v17 }
 0x204   : > { %v2691_v12 = vpop.f32.mrf.mxu0  ;;  %5904 = vmatmul.msk.f32.gmra.mxu3 %vm1028_vm2, %v1558_v60 }
 0x205   : > { %v2692_v31 = vadd.f32 %v7171_v20, %v2691_v12  ;;  %v1401_v52 = vpop.f32.mrf.mxu2 }
 0x206   : > { %v1402_v15 = vadd.f32 %v7171_v20, %v1401_v52 }
 0x207   : > { %v2725_v59 = vmax.f32 %v2692_v31, 0.0  ;;  %6069 = vmatmul.msk.f32.gmra.mxu0 %vm465_vm1, %v3442_v54  ;;  %v7627_v54 = vpop.permute.xlu1 %3239 }
 0x208   : > { %v1433_v38 = vmax.f32 %v1402_v15, 0.0  ;;  %9060 = vst [vmem:[#allocation32_spill] sm:$0xff] %v7627_v54  ;;  %v3444_v54 = vld [vmem:[%s6336_s30 + $0x440] sm:$0xff] }
 0x209   : > { %v2851_v33 = vmul.f32 %v2804_v39, %v2725_v59  ;;  %v2152_v39 = vld [vmem:[%s6336_s30 + $0x298] sm:$0xff] }
 0x20a   : > { %v1559_v60 = vmul.f32 %v6941_v40, %v1433_v38  ;;  %5960 = vmatmul.msk.f32.gmra.mxu2 %vm465_vm1, %v2151_v30  ;;  %v2809_v40 = vpop.permute.xlu2 %2808  ;;  %v7632_v30 = vpop.f32.mrf.mxu3 }
 0x20b   : > { %6015 = vmatmul.msk.f32.gmra.mxu1 %vm1028_vm2, %v2851_v33 }
 0x20c   : > { %v2694_v12 = vpop.f32.mrf.mxu0  ;;  %5905 = vmatmul.msk.f32.gmra.mxu3 %vm1028_vm2, %v1559_v60 }
 0x20d   : > { %v2695_v31 = vadd.f32 %v7171_v20, %v2694_v12  ;;  %v1404_v52 = vpop.f32.mrf.mxu2 }
 0x20e   : > { %v1405_v15 = vadd.f32 %v7171_v20, %v1404_v52 }
 0x20f   : > { %v2726_v59 = vmax.f32 %v2695_v31, 0.0  ;;  %6070 = vmatmul.msk.f32.gmra.mxu0 %vm465_vm1, %v3443_v61  ;;  %v7638_v31 = vpop.f32.mrf.mxu1  ;;  %v7642_v61 = vpop.permute.xlu0 %3244 }
 0x210   : > { %v1434_v38 = vmax.f32 %v1405_v15, 0.0  ;;  %9061 = vst [vmem:[#allocation33_spill] sm:$0xff] %v7638_v31 }
 0x211   : > { %v2852_v33 = vmul.f32 %v2809_v40, %v2726_v59  ;;  %9062 = vst [vmem:[#allocation34_spill] sm:$0xff] %v7642_v61  ;;  %v3445_v61 = vld [vmem:[%s6336_s30 + $0x448] sm:$0xff] }
 0x212   : > { %v1560_v12 = vmul.f32 %v6943_v57, %v1434_v38  ;;  %5961 = vmatmul.msk.f32.gmra.mxu2 %vm465_vm1, %v2152_v39  ;;  %v2814_v57 = vpop.permute.xlu1 %2813  ;;  %v2153_v39 = vld [vmem:[%s6336_s30 + $0x2a0] sm:$0xff]  ;;  %v7647_v17 = vpop.f32.mrf.mxu3 }
 0x213   : > { %6016 = vmatmul.msk.f32.gmra.mxu1 %vm1028_vm2, %v2852_v33 }
 0x214   : > { %v2697_v60 = vpop.f32.mrf.mxu0  ;;  %5906 = vmatmul.msk.f32.gmra.mxu3 %vm1028_vm2, %v1560_v12 }
 0x215   : > { %v2698_v52 = vadd.f32 %v7171_v20, %v2697_v60  ;;  %v1407_v59 = vpop.f32.mrf.mxu2 }
 0x216   : > { %v1408_v15 = vadd.f32 %v7171_v20, %v1407_v59 }
 0x217   : > { %v2727_v40 = vmax.f32 %v2698_v52, 0.0  ;;  %6071 = vmatmul.msk.f32.gmra.mxu0 %vm465_vm1, %v3444_v54  ;;  %v7655_v54 = vpop.permute.xlu2 %3249 }
 0x218   : > { %v1435_v38 = vmax.f32 %v1408_v15, 0.0  ;;  %9063 = vst [vmem:[#allocation35_spill] sm:$0xff] %v7655_v54  ;;  %v3446_v54 = vld [vmem:[%s6336_s30 + $0x450] sm:$0xff] }
 0x219   : > { %v2853_v33 = vmul.f32 %v2814_v57, %v2727_v40  ;;  %v7657_v40 = vpop.f32.mrf.mxu1 }
 0x21a   : > { %v1561_v60 = vmul.f32 %v6946_v56, %v1435_v38  ;;  %5962 = vmatmul.msk.f32.gmra.mxu2 %vm465_vm1, %v2153_v39  ;;  %v2819_v56 = vpop.permute.xlu0 %2818  ;;  %v2154_v39 = vld [vmem:[%s6336_s30 + $0x2a8] sm:$0xff]  ;;  %v7666_v31 = vpop.f32.mrf.mxu3 }
 0x21b   : > { %6017 = vmatmul.msk.f32.gmra.mxu1 %vm1028_vm2, %v2853_v33 }
 0x21c   : > { %v2700_v12 = vpop.f32.mrf.mxu0  ;;  %5907 = vmatmul.msk.f32.gmra.mxu3 %vm1028_vm2, %v1561_v60 }
 0x21d   : > { %v2701_v52 = vadd.f32 %v7171_v20, %v2700_v12  ;;  %v1410_v59 = vpop.f32.mrf.mxu2 }
 0x21e   : > { %v1411_v57 = vadd.f32 %v7171_v20, %v1410_v59 }
 0x21f   : > { %v2728_v15 = vmax.f32 %v2701_v52, 0.0  ;;  %6072 = vmatmul.msk.f32.gmra.mxu0 %vm465_vm1, %v3445_v61  ;;  %v7670_v61 = vpop.permute.xlu1 %3254 }
 0x220   : > { %v1436_v38 = vmax.f32 %v1411_v57, 0.0  ;;  %9064 = vst [vmem:[#allocation36_spill] sm:$0xff] %v7670_v61 }
 0x221   : > { %v2854_v33 = vmul.f32 %v2819_v56, %v2728_v15  ;;  %v2155_v56 = vld [vmem:[%s6336_s30 + $0x2b0] sm:$0xff] }
 0x222   : > { %v1562_v12 = vmul.f32 %v6966_v4, %v1436_v38  ;;  %5963 = vmatmul.msk.f32.gmra.mxu2 %vm465_vm1, %v2154_v39  ;;  %v2824_v4 = vpop.permute.xlu2 %2823  ;;  %v7675_v39 = vpop.f32.mrf.mxu1 }
 0x223   : > { %6018 = vmatmul.msk.f32.gmra.mxu1 %vm1028_vm2, %v2854_v33  ;;  %9065 = vst [vmem:[#allocation37_spill] sm:$0xff] %v7675_v39 }
 0x224   : > { %v2703_v60 = vpop.f32.mrf.mxu0  ;;  %5908 = vmatmul.msk.f32.gmra.mxu3 %vm1028_vm2, %v1562_v12  ;;  %v3721_v12 = vld [vmem:[%s9023_s5 + $0x38] sm:$0xff] }
 0x225   : > { %v2704_v52 = vadd.f32 %v7171_v20, %v2703_v60  ;;  %v1413_v59 = vpop.f32.mrf.mxu2  ;;  %v3290_v60 = vld [vmem:[%s9023_s5 + $0x30] sm:$0xff]  ;;  %3791 = vmatpush.msrb.mxu1 %v3721_v12 }
 0x226   : > { %v1414_v57 = vadd.f32 %v7171_v20, %v1413_v59  ;;  %3360 = vmatpush.msrb.mxu3 %v3290_v60  ;;  %v7690_v59 = vld [vmem:[%s9022_s4] ss:$0 sm:$0xff]  ;;  %v2156_v60 = vld [vmem:[%s6336_s30 + $0x2b8] sm:$0xff] }
 0x227   : > { %v2729_v15 = vmax.f32 %v2704_v52, 0.0  ;;  %6073 = vmatmul.msk.f32.gmra.mxu0 %vm465_vm1, %v3446_v54  ;;  %v3447_v54 = vld [vmem:[%s6336_s30 + $0x458] sm:$0xff] }
 0x228   : > { %v1437_v38 = vmax.f32 %v1414_v57, 0.0  ;;  %v7694_v57 = vpop.permute.xlu0 %3259 }
 0x229   : > { %v2855_v33 = vmul.f32 %v2824_v4, %v2729_v15  ;;  %9066 = vst [vmem:[#allocation38_spill] sm:$0xff] %v7694_v57 }
 0x22a   : > { %v1563_v52 = vmul.f32 %v6968_v19, %v1437_v38  ;;  %5964 = vmatmul.msk.f32.gmra.mxu2 %vm465_vm1, %v2155_v56  ;;  %v2829_v38 = vpop.permute.xlu1 %2828  ;;  %v7701_v39 = vpop.f32.mrf.mxu1 }
 0x22b   : > { %6019 = vmatmul.msk.f32.gmra.mxu1 %vm1028_vm2, %v2855_v33  ;;  %v7698_v33 = vpop.f32.mrf.mxu3  ;;  %9067 = vst [vmem:[#allocation39_spill] sm:$0xff] %v7701_v39 }
 0x22c   : > { %v2706_v20 = vpop.f32.mrf.mxu0  ;;  %5909 = vmatmul.msk.f32.gmra.mxu3 %vm1028_vm2, %v1563_v52 }
 0x22d   : > { %v2707_v15 = vadd.f32 %v7690_v59, %v2706_v20  ;;  %v1416_v19 = vpop.f32.mrf.mxu2 }
 0x22e   : > { %v1417_v56 = vadd.f32 %v7690_v59, %v1416_v19 }
 0x22f   : > { %v2730_v4 = vmax.f32 %v2707_v15, 0.0  ;;  %6074 = vmatmul.msk.f32.gmra.mxu0 %vm465_vm1, %v3447_v54  ;;  %v3448_v15 = vld [vmem:[%s6336_s30 + $0x460] sm:$0xff]  ;;  %v7709_v54 = vpop.permute.xlu2 %3264 }
 0x230   : > { %v1438_v61 = vmax.f32 %v1417_v56, 0.0  ;;  %v1226_v56 = vadd.f32 %v7268_v10, %v6987_v25  ;;  %v3449_v10 = vld [vmem:[%s6336_s30 + $0x468] sm:$0xff] }
 0x231   : > { %v2856_v12 = vmul.f32 %v2829_v38, %v2730_v4 }
 0x232   : > { %v1564_v52 = vmul.f32 %v6984_v6, %v1438_v61  ;;  %5965 = vmatmul.msk.f32.gmra.mxu2 %vm465_vm1, %v2156_v60  ;;  %v2834_v61 = vpop.permute.xlu0 %2833 }
 0x233   : > { %6020 = vmatmul.msk.f32.gmra.mxu1 %vm1028_vm2, %v2856_v12  ;;  %v2157_v12 = vld [vmem:[%s6336_s30 + $0x2c0] sm:$0xff] }
 0x234   : > { %v2709_v20 = vpop.f32.mrf.mxu0  ;;  %5910 = vmatmul.msk.f32.gmra.mxu3 %vm1028_vm2, %v1564_v52 }
 0x235   : > { %v2710_v19 = vadd.f32 %v7690_v59, %v2709_v20  ;;  %v1419_v4 = vpop.f32.mrf.mxu2 }
 0x236   : > { %v1420_v6 = vadd.f32 %v7690_v59, %v1419_v4  ;;  %v7726_v4 = vpop.permute.xlu1 %3269 }
 0x237   : > { %v2731_v38 = vmax.f32 %v2710_v19, 0.0  ;;  %6075 = vmatmul.msk.f32.gmra.mxu0 %vm465_vm1, %v3448_v15  ;;  %v1638_v60 = vpop.f32.mrf.mxu3  ;;  %v7722_v19 = vpop.f32.mrf.mxu1 }
 0x238   : > { %v1439_v39 = vmax.f32 %v1420_v6, 0.0  ;;  %v7716_v20 = vadd.f32 %v1638_v60, %v1226_v56 }
 0x239   : > { %v2857_v57 = vmul.f32 %v2834_v61, %v2731_v38  ;;  %v2158_v61 = vld [vmem:[%s6336_s30 + $0x2c8] sm:$0xff] }
 0x23a   : > { %v1565_v52 = vmul.f32 %v6995_v35, %v1439_v39  ;;  %5966 = vmatmul.msk.f32.gmra.mxu2 %vm465_vm1, %v2157_v12  ;;  %v1229_v35 = vadd.f32 %v7303_v3, %v7010_v2  ;;  %v3450_v3 = vld [vmem:[%s6336_s30 + $0x470] sm:$0xff] }
 0x23b   : > { %6021 = vmatmul.msk.f32.gmra.mxu1 %vm1028_vm2, %v2857_v57  ;;  %v2839_v57 = vpop.permute.xlu2 %2838 }
 0x23c   : > { %v2712_v25 = vpop.f32.mrf.mxu0  ;;  %5911 = vmatmul.msk.f32.gmra.mxu3 %vm1028_vm2, %v1565_v52 }
 0x23d   : > { %v2713_v15 = vadd.f32 %v7690_v59, %v2712_v25  ;;  %v2230_v56 = vpop.f32.mrf.mxu2 }
 0x23e   : > { %v2231_v38 = vadd.f32 %v7690_v59, %v2230_v56 }
 0x23f   : > { %v2732_v39 = vmax.f32 %v2713_v15, 0.0  ;;  %6076 = vmatmul.msk.f32.gmra.mxu0 %vm465_vm1, %v3449_v10  ;;  %v1641_v6 = vpop.f32.mrf.mxu3  ;;  %v7741_v10 = vpop.permute.xlu0 %4046 }
 0x240   : > { %v2284_v12 = vmax.f32 %v2231_v38, 0.0  ;;  %v7733_v25 = vadd.f32 %v1641_v6, %v1229_v35  ;;  %v1232_v35 = vadd.f32 %v7326_v47, %v7039_v14  ;;  %v3451_v47 = vld [vmem:[%s6336_s30 + $0x478] sm:$0xff] }
 0x241   : > { %v2858_v60 = vmul.f32 %v2839_v57, %v2732_v39  ;;  %v7745_v39 = vpop.f32.mrf.mxu1  ;;  %v3616_v57 = vpop.permute.xlu1 %3615 }
 0x242   : > { %v2410_v52 = vmul.f32 %v7007_v62, %v2284_v12  ;;  %5967 = vmatmul.msk.f32.gmra.mxu2 %vm465_vm1, %v2158_v61  ;;  %v3003_v61 = vld [vmem:[%s6336_s30 + $0x360] sm:$0xff] }
 0x243   : > { %6022 = vmatmul.msk.f32.gmra.mxu1 %vm1028_vm2, %v2858_v60 }
 0x244   : > { %v3523_v2 = vpop.f32.mrf.mxu0  ;;  %5968 = vmatmul.msk.f32.vlgmr.msra.gmra.mxu3 %vm1028_vm2, %v2410_v52 }
 0x245   : > { %v3524_v15 = vadd.f32 %v7690_v59, %v3523_v2  ;;  %v2233_v56 = vpop.f32.mrf.mxu2 }
 0x246   : > { %v2234_v38 = vadd.f32 %v7690_v59, %v2233_v56 }
 0x247   : > { %v3577_v62 = vmax.f32 %v3524_v15, 0.0  ;;  %6077 = vmatmul.msk.f32.gmra.mxu0 %vm465_vm1, %v3450_v3  ;;  %v1644_v6 = vpop.f32.mrf.mxu3  ;;  %v7758_v3 = vpop.permute.xlu2 %4051 }
 0x248   : > { %v2285_v12 = vmax.f32 %v2234_v38, 0.0  ;;  %v7750_v52 = vadd.f32 %v1644_v6, %v1232_v35  ;;  %v1235_v35 = vadd.f32 %v7353_v1, %v7080_v34  ;;  %v3004_v6 = vld [vmem:[%s6336_s30 + $0x368] sm:$0xff] }
 0x249   : > { %v3703_v60 = vmul.f32 %v3616_v57, %v3577_v62 }
 0x24a   : > { %v2411_v2 = vmul.f32 %v7036_v58, %v2285_v12  ;;  %6024 = vmatmul.msk.f32.vlgmr.msrb.gmra.mxu2 %vm465_vm1, %v3003_v61  ;;  %v3621_v58 = vpop.permute.xlu0 %3620  ;;  %v7765_v61 = vpop.f32.mrf.mxu1 }
 0x24b   : > { %6079 = vmatmul.msk.f32.vlgmr.msrb.gmra.mxu1 %vm1028_vm2, %v3703_v60 }
 0x24c   : > { %v3526_v14 = vpop.f32.mrf.mxu0  ;;  %5969 = vmatmul.msk.f32.gmra.mxu3 %vm1028_vm2, %v2411_v2 }
 0x24d   : > { %v3527_v15 = vadd.f32 %v7690_v59, %v3526_v14  ;;  %v2236_v56 = vpop.f32.mrf.mxu2 }
 0x24e   : > { %v2237_v38 = vadd.f32 %v7690_v59, %v2236_v56  ;;  %v1238_v56 = vadd.f32 %v7377_v50, %v7101_v48 }
 0x24f   : > { %v3578_v62 = vmax.f32 %v3527_v15, 0.0  ;;  %6078 = vmatmul.msk.f32.gmra.mxu0 %vm465_vm1, %v3451_v47  ;;  %v1647_v57 = vpop.f32.mrf.mxu3  ;;  %v7774_v47 = vpop.permute.xlu1 %4056 }
 0x250   : > { %v2286_v12 = vmax.f32 %v2237_v38, 0.0  ;;  %v7767_v2 = vadd.f32 %v1647_v57, %v1235_v35  ;;  %v3626_v38 = vpop.permute.xlu2 %3625 }
 0x251   : > { %v3704_v60 = vmul.f32 %v3621_v58, %v3578_v62  ;;  %v3005_v58 = vld [vmem:[%s6336_s30 + $0x370] sm:$0xff] }
 0x252   : > { %v2412_v14 = vmul.f32 %v7077_v11, %v2286_v12  ;;  %6025 = vmatmul.msk.f32.gmra.mxu2 %vm465_vm1, %v3004_v6  ;;  %v7782_v12 = vpop.f32.mrf.mxu1 }
 0x253   : > { %6080 = vmatmul.msk.f32.gmra.mxu1 %vm1028_vm2, %v3704_v60 }
 0x254   : > { %v3529_v34 = vpop.f32.mrf.mxu0  ;;  %5970 = vmatmul.msk.f32.gmra.mxu3 %vm1028_vm2, %v2412_v14 }
 0x255   : > { %v3530_v1 = vadd.f32 %v7690_v59, %v3529_v34  ;;  %v2239_v15 = vpop.f32.mrf.mxu2  ;;  %v7789_v34 = vpop.permute.xlu0 %4061 }
 0x256   : > { %v2240_v35 = vadd.f32 %v7690_v59, %v2239_v15  ;;  %v1241_v15 = vadd.f32 %v7413_v23, %v7120_v21 }
 0x257   : > { %v3579_v62 = vmax.f32 %v3530_v1, 0.0  ;;  %v1650_v11 = vpop.f32.mrf.mxu3 }
 0x258   : > { %v2287_v6 = vmax.f32 %v2240_v35, 0.0  ;;  %v7780_v60 = vadd.f32 %v1650_v11, %v1238_v56  ;;  %v3631_v35 = vpop.permute.xlu1 %3630  ;;  %v7804_v23 = vpop.permute.xlu2 %4066 }
 0x259   : > { %v3705_v57 = vmul.f32 %v3626_v38, %v3579_v62  ;;  %v3006_v38 = vld [vmem:[%s6336_s30 + $0x378] sm:$0xff] }
 0x25a   : > { %v2413_v14 = vmul.f32 %v7098_v55, %v2287_v6  ;;  %6026 = vmatmul.msk.f32.gmra.mxu2 %vm465_vm1, %v3005_v58 }
 0x25b   : > { %6081 = vmatmul.msk.f32.gmra.mxu1 %vm1028_vm2, %v3705_v57 }
 0x25c   : > { %v3532_v48 = vpop.f32.mrf.mxu0  ;;  %5971 = vmatmul.msk.f32.gmra.mxu3 %vm1028_vm2, %v2413_v14 }
 0x25d   : > { %v3533_v50 = vadd.f32 %v7690_v59, %v3532_v48  ;;  %v2242_v1 = vpop.f32.mrf.mxu2  ;;  %v7800_v48 = vpop.f32.mrf.mxu1 }
 0x25e   : > { %v2243_v62 = vadd.f32 %v7690_v59, %v2242_v1  ;;  %v1244_v1 = vadd.f32 %v7443_v18, %v7139_v7 }
 0x25f   : > { %v3580_v56 = vmax.f32 %v3533_v50, 0.0  ;;  %v1653_v55 = vpop.f32.mrf.mxu3 }
 0x260   : > { %v2288_v58 = vmax.f32 %v2243_v62, 0.0  ;;  %v7795_v57 = vadd.f32 %v1653_v55, %v1241_v15  ;;  %v7817_v18 = vpop.permute.xlu1 %4071 }
 0x261   : > { %v3706_v11 = vmul.f32 %v3631_v35, %v3580_v56  ;;  %v3636_v56 = vpop.permute.xlu0 %3635  ;;  %v3007_v35 = vld [vmem:[%s6336_s30 + $0x380] sm:$0xff] }
 0x262   : > { %v2414_v6 = vmul.f32 %v7118_v22, %v2288_v58  ;;  %6027 = vmatmul.msk.f32.gmra.mxu2 %vm465_vm1, %v3006_v38 }
 0x263   : > { %6082 = vmatmul.msk.f32.gmra.mxu1 %vm1028_vm2, %v3706_v11 }
 0x264   : > { %v3535_v14 = vpop.f32.mrf.mxu0  ;;  %5972 = vmatmul.msk.f32.gmra.mxu3 %vm1028_vm2, %v2414_v6 }
 0x265   : > { %v3536_v21 = vadd.f32 %v7690_v59, %v3535_v14  ;;  %v2245_v50 = vpop.f32.mrf.mxu2 }
 0x266   : > { %v2246_v22 = vadd.f32 %v7690_v59, %v2245_v50  ;;  %v7821_v50 = vpop.f32.mrf.mxu1 }
 0x267   : > { %v3581_v15 = vmax.f32 %v3536_v21, 0.0  ;;  %v1656_v62 = vpop.f32.mrf.mxu3  ;;  %v1247_v21 = vadd.f32 %v7469_v43, %v7158_v63 }
 0x268   : > { %v2289_v38 = vmax.f32 %v2246_v22, 0.0  ;;  %v7810_v11 = vadd.f32 %v1656_v62, %v1244_v1 }
 0x269   : > { %v3707_v55 = vmul.f32 %v3636_v56, %v3581_v15  ;;  %v3641_v15 = vpop.permute.xlu2 %3640  ;;  %v3008_v56 = vld [vmem:[%s6336_s30 + $0x388] sm:$0xff] }
 0x26a   : > { %v2415_v58 = vmul.f32 %v7137_v42, %v2289_v38  ;;  %6028 = vmatmul.msk.f32.gmra.mxu2 %vm465_vm1, %v3007_v35 }
 0x26b   : > { %6083 = vmatmul.msk.f32.gmra.mxu1 %vm1028_vm2, %v3707_v55 }
 0x26c   : > { %v3538_v6 = vpop.f32.mrf.mxu0  ;;  %5973 = vmatmul.msk.f32.gmra.mxu3 %vm1028_vm2, %v2415_v58  ;;  %v7832_v58 = vpop.permute.xlu0 %4076 }
 0x26d   : > { %v3539_v7 = vadd.f32 %v7690_v59, %v3538_v6  ;;  %v2248_v14 = vpop.f32.mrf.mxu2  ;;  %9068 = vst [vmem:[#allocation40_spill] sm:$0xff] %v7832_v58  ;;  %v9085_v58 = vld [vmem:[#allocation12_spill] sm:$0xff] }
 0x26e   : > { %v2249_v42 = vadd.f32 %v7690_v59, %v2248_v14 }
 0x26f   : > { %v3582_v1 = vmax.f32 %v3539_v7, 0.0  ;;  %v1659_v22 = vpop.f32.mrf.mxu3  ;;  %v1250_v7 = vadd.f32 %v7497_v44, %v7182_v0 }
 0x270   : > { %v2290_v35 = vmax.f32 %v2249_v42, 0.0  ;;  %v7825_v55 = vadd.f32 %v1659_v22, %v1247_v21  ;;  %v3009_v42 = vld [vmem:[%s6336_s30 + $0x390] sm:$0xff] }
 0x271   : > { %v3708_v62 = vmul.f32 %v3641_v15, %v3582_v1  ;;  %v3646_v1 = vpop.permute.xlu1 %3645  ;;  %v7838_v15 = vpop.f32.mrf.mxu1 }
 0x272   : > { %v2416_v38 = vmul.f32 %v7156_v13, %v2290_v35  ;;  %6029 = vmatmul.msk.f32.gmra.mxu2 %vm465_vm1, %v3008_v56 }
 0x273   : > { %6084 = vmatmul.msk.f32.gmra.mxu1 %vm1028_vm2, %v3708_v62 }
 0x274   : > { %v3541_v63 = vpop.f32.mrf.mxu0  ;;  %5974 = vmatmul.msk.f32.gmra.mxu3 %vm1028_vm2, %v2416_v38  ;;  %v7847_v38 = vpop.permute.xlu2 %4081 }
 0x275   : > { %v3542_v43 = vadd.f32 %v7690_v59, %v3541_v63  ;;  %v2251_v6 = vpop.f32.mrf.mxu2  ;;  %9069 = vst [vmem:[#allocation41_spill] sm:$0xff] %v7847_v38 }
 0x276   : > { %v2252_v21 = vadd.f32 %v7690_v59, %v2251_v6 }
 0x277   : > { %v3583_v14 = vmax.f32 %v3542_v43, 0.0  ;;  %v1662_v13 = vpop.f32.mrf.mxu3  ;;  %v1253_v43 = vadd.f32 %v7534_v51, %v7201_v37 }
 0x278   : > { %v2291_v56 = vmax.f32 %v2252_v21, 0.0  ;;  %v7840_v62 = vadd.f32 %v1662_v13, %v1250_v7  ;;  %v3010_v21 = vld [vmem:[%s6336_s30 + $0x398] sm:$0xff] }
 0x279   : > { %v3709_v22 = vmul.f32 %v3646_v1, %v3583_v14  ;;  %v3651_v14 = vpop.permute.xlu0 %3650 }
 0x27a   : > { %v2417_v35 = vmul.f32 %v7180_v29, %v2291_v56  ;;  %6030 = vmatmul.msk.f32.gmra.mxu2 %vm465_vm1, %v3009_v42 }
 0x27b   : > { %6085 = vmatmul.msk.f32.gmra.mxu1 %vm1028_vm2, %v3709_v22  ;;  %v7855_v22 = vpop.f32.mrf.mxu1 }
 0x27c   : > { %v3544_v0 = vpop.f32.mrf.mxu0  ;;  %5975 = vmatmul.msk.f32.gmra.mxu3 %vm1028_vm2, %v2417_v35  ;;  %v7862_v35 = vpop.permute.xlu1 %4086 }
 0x27d   : > { %v3545_v44 = vadd.f32 %v7690_v59, %v3544_v0  ;;  %v2254_v63 = vpop.f32.mrf.mxu2  ;;  %9070 = vst [vmem:[#allocation42_spill] sm:$0xff] %v7862_v35 }
 0x27e   : > { %v2255_v7 = vadd.f32 %v7690_v59, %v2254_v63 }
 0x27f   : > { %v3584_v6 = vmax.f32 %v3545_v44, 0.0  ;;  %v1665_v29 = vpop.f32.mrf.mxu3  ;;  %v1256_v44 = vadd.f32 %v7561_v32, %v7220_v16 }
 0x280   : > { %v2292_v13 = vmax.f32 %v2255_v7, 0.0  ;;  %v7853_v42 = vadd.f32 %v1665_v29, %v1253_v43  ;;  %v3011_v7 = vld [vmem:[%s6336_s30 + $0x3a0] sm:$0xff] }
 0x281   : > { %v3710_v1 = vmul.f32 %v3651_v14, %v3584_v6  ;;  %v3656_v6 = vpop.permute.xlu2 %3655  ;;  %v7877_v32 = vpop.permute.xlu0 %4091 }
 0x282   : > { %v2418_v56 = vmul.f32 %v7199_v53, %v2292_v13  ;;  %6031 = vmatmul.msk.f32.gmra.mxu2 %vm465_vm1, %v3010_v21  ;;  %9071 = vst [vmem:[#allocation43_spill] sm:$0xff] %v7877_v32 }
 0x283   : > { %6086 = vmatmul.msk.f32.gmra.mxu1 %vm1028_vm2, %v3710_v1 }
 0x284   : > { %v3547_v37 = vpop.f32.mrf.mxu0  ;;  %5976 = vmatmul.msk.f32.gmra.mxu3 %vm1028_vm2, %v2418_v56  ;;  %v7873_v56 = vpop.f32.mrf.mxu1 }
 0x285   : > { %v3548_v51 = vadd.f32 %v7690_v59, %v3547_v37  ;;  %v2257_v0 = vpop.f32.mrf.mxu2 }
 0x286   : > { %v2258_v43 = vadd.f32 %v7690_v59, %v2257_v0 }
 0x287   : > { %v3585_v63 = vmax.f32 %v3548_v51, 0.0  ;;  %v1668_v53 = vpop.f32.mrf.mxu3  ;;  %v9072_v51 = vld [vmem:[#allocation5_spill] sm:$0xff] }
 0x288   : > { %v2293_v29 = vmax.f32 %v2258_v43, 0.0  ;;  %v7868_v21 = vadd.f32 %v1668_v53, %v1256_v44  ;;  %v1259_v0 = vadd.f32 %v7576_v41, %v9072_v51  ;;  %v9075_v51 = vld [vmem:[#allocation7_spill] sm:$0xff] }
 0x289   : > { %v3711_v14 = vmul.f32 %v3656_v6, %v3585_v63  ;;  %v3661_v63 = vpop.permute.xlu1 %3660  ;;  %v3012_v6 = vld [vmem:[%s6336_s30 + $0x3a8] sm:$0xff] }
 0x28a   : > { %v2419_v1 = vmul.f32 %v7218_v26, %v2293_v29  ;;  %6032 = vmatmul.msk.f32.gmra.mxu2 %vm465_vm1, %v3011_v7  ;;  %v9073_v29 = vld [vmem:[#allocation4_spill] sm:$0xff] }
 0x28b   : > { %6087 = vmatmul.msk.f32.gmra.mxu1 %vm1028_vm2, %v3711_v14 }
 0x28c   : > { %v3550_v13 = vpop.f32.mrf.mxu0  ;;  %5977 = vmatmul.msk.f32.gmra.mxu3 %vm1028_vm2, %v2419_v1 }
 0x28d   : > { %v3551_v16 = vadd.f32 %v7690_v59, %v3550_v13  ;;  %v2260_v37 = vpop.f32.mrf.mxu2 }
 0x28e   : > { %v2261_v26 = vadd.f32 %v7690_v59, %v2260_v37 }
 0x28f   : > { %v3586_v44 = vmax.f32 %v3551_v16, 0.0  ;;  %v1671_v43 = vpop.f32.mrf.mxu3  ;;  %v7890_v16 = vpop.permute.xlu2 %4096 }
 0x290   : > { %v2294_v7 = vmax.f32 %v2261_v26, 0.0  ;;  %v7883_v14 = vadd.f32 %v1671_v43, %v1259_v0  ;;  %9074 = vst [vmem:[#allocation5_spill] sm:$0xff] %v7890_v16  ;;  %v7894_v26 = vpop.f32.mrf.mxu1  ;;  %v3666_v43 = vpop.permute.xlu0 %3665  ;;  %v9078_v16 = vld [vmem:[#allocation9_spill] sm:$0xff] }
 0x291   : > { %v3712_v53 = vmul.f32 %v3661_v63, %v3586_v44  ;;  %v1262_v44 = vadd.f32 %v7595_v46, %v9075_v51 }
 0x292   : > { %v2420_v13 = vmul.f32 %v9073_v29, %v2294_v7  ;;  %6033 = vmatmul.msk.f32.gmra.mxu2 %vm465_vm1, %v3012_v6  ;;  %v3013_v7 = vld [vmem:[%s6336_s30 + $0x3b0] sm:$0xff] }
 0x293   : > { %6088 = vmatmul.msk.f32.gmra.mxu1 %vm1028_vm2, %v3712_v53 }
 0x294   : > { %v3553_v1 = vpop.f32.mrf.mxu0  ;;  %5978 = vmatmul.msk.f32.gmra.mxu3 %vm1028_vm2, %v2420_v13  ;;  %v9076_v13 = vld [vmem:[#allocation6_spill] sm:$0xff] }
 0x295   : > { %v3554_v41 = vadd.f32 %v7690_v59, %v3553_v1  ;;  %v2263_v37 = vpop.f32.mrf.mxu2 }
 0x296   : > { %v2264_v63 = vadd.f32 %v7690_v59, %v2263_v37 }
 0x297   : > { %v3587_v0 = vmax.f32 %v3554_v41, 0.0  ;;  %v1674_v6 = vpop.f32.mrf.mxu3  ;;  %v7905_v41 = vpop.permute.xlu1 %4101 }
 0x298   : > { %v2295_v29 = vmax.f32 %v2264_v63, 0.0  ;;  %v7898_v1 = vadd.f32 %v1674_v6, %v1262_v44  ;;  %9077 = vst [vmem:[#allocation4_spill] sm:$0xff] %v7905_v41  ;;  %v9081_v41 = vld [vmem:[#allocation11_spill] sm:$0xff] }
 0x299   : > { %v3713_v53 = vmul.f32 %v3666_v43, %v3587_v0  ;;  %v1265_v0 = vadd.f32 %v7614_v8, %v9078_v16  ;;  %v3671_v43 = vpop.permute.xlu2 %3670 }
 0x29a   : > { %v2421_v32 = vmul.f32 %v9076_v13, %v2295_v29  ;;  %6034 = vmatmul.msk.f32.gmra.mxu2 %vm465_vm1, %v3013_v7  ;;  %v3014_v29 = vld [vmem:[%s6336_s30 + $0x3b8] sm:$0xff]  ;;  %v7911_v7 = vpop.f32.mrf.mxu1 }
 0x29b   : > { %6089 = vmatmul.msk.f32.gmra.mxu1 %vm1028_vm2, %v3713_v53 }
 0x29c   : > { %v3556_v46 = vpop.f32.mrf.mxu0  ;;  %5979 = vmatmul.msk.f32.gmra.mxu3 %vm1028_vm2, %v2421_v32  ;;  %v9079_v32 = vld [vmem:[#allocation8_spill] sm:$0xff] }
 0x29d   : > { %v3557_v51 = vadd.f32 %v7690_v59, %v3556_v46  ;;  %v2266_v37 = vpop.f32.mrf.mxu2 }
 0x29e   : > { %v2267_v44 = vadd.f32 %v7690_v59, %v2266_v37 }
 0x29f   : > { %v3588_v63 = vmax.f32 %v3557_v51, 0.0  ;;  %v1677_v6 = vpop.f32.mrf.mxu3  ;;  %v7920_v51 = vpop.permute.xlu0 %4106 }
 0x2a0   : > { %v2296_v13 = vmax.f32 %v2267_v44, 0.0  ;;  %v7913_v46 = vadd.f32 %v1677_v6, %v1265_v0  ;;  %9080 = vst [vmem:[#allocation7_spill] sm:$0xff] %v7920_v51 }
 0x2a1   : > { %v3714_v53 = vmul.f32 %v3671_v43, %v3588_v63  ;;  %v1268_v63 = vadd.f32 %v7632_v30, %v9081_v41  ;;  %v3676_v43 = vpop.permute.xlu1 %3675 }
 0x2a2   : > { %v2422_v35 = vmul.f32 %v9079_v32, %v2296_v13  ;;  %6035 = vmatmul.msk.f32.gmra.mxu2 %vm465_vm1, %v3014_v29  ;;  %v3015_v13 = vld [vmem:[%s6336_s30 + $0x3c0] sm:$0xff] }
 0x2a3   : > { %6090 = vmatmul.msk.f32.gmra.mxu1 %vm1028_vm2, %v3714_v53 }
 0x2a4   : > { %v3559_v8 = vpop.f32.mrf.mxu0  ;;  %5980 = vmatmul.msk.f32.gmra.mxu3 %vm1028_vm2, %v2422_v35  ;;  %v9082_v35 = vld [vmem:[#allocation10_spill] sm:$0xff] }
 0x2a5   : > { %v3560_v16 = vadd.f32 %v7690_v59, %v3559_v8  ;;  %v2269_v37 = vpop.f32.mrf.mxu2  ;;  %v7928_v8 = vpop.f32.mrf.mxu1 }
 0x2a6   : > { %v2270_v0 = vadd.f32 %v7690_v59, %v2269_v37 }
 0x2a7   : > { %v3589_v44 = vmax.f32 %v3560_v16, 0.0  ;;  %v1680_v6 = vpop.f32.mrf.mxu3  ;;  %v7935_v16 = vpop.permute.xlu2 %4111 }
 0x2a8   : > { %v2297_v32 = vmax.f32 %v2270_v0, 0.0  ;;  %v7926_v53 = vadd.f32 %v1680_v6, %v1268_v63  ;;  %9083 = vst [vmem:[#allocation6_spill] sm:$0xff] %v7935_v16  ;;  %v3681_v6 = vpop.permute.xlu0 %3680 }
 0x2a9   : > { %v3715_v29 = vmul.f32 %v3676_v43, %v3589_v44  ;;  %v9084_v44 = vld [vmem:[#allocation13_spill] sm:$0xff] }
 0x2aa   : > { %v2423_v38 = vmul.f32 %v9082_v35, %v2297_v32  ;;  %6036 = vmatmul.msk.f32.gmra.mxu2 %vm465_vm1, %v3015_v13  ;;  %v1271_v63 = vadd.f32 %v7647_v17, %v9084_v44  ;;  %v3016_v35 = vld [vmem:[%s6336_s30 + $0x3c8] sm:$0xff] }
 0x2ab   : > { %6091 = vmatmul.msk.f32.gmra.mxu1 %vm1028_vm2, %v3715_v29 }
 0x2ac   : > { %v3562_v30 = vpop.f32.mrf.mxu0  ;;  %5981 = vmatmul.msk.f32.gmra.mxu3 %vm1028_vm2, %v2423_v38 }
 0x2ad   : > { %v3563_v41 = vadd.f32 %v7690_v59, %v3562_v30  ;;  %v2272_v37 = vpop.f32.mrf.mxu2  ;;  %v7946_v16 = vpop.f32.mrf.mxu1 }
 0x2ae   : > { %v2273_v43 = vadd.f32 %v7690_v59, %v2272_v37  ;;  %9086 = vst [vmem:[#allocation9_spill] sm:$0xff] %v7946_v16  ;;  %v7953_v37 = vpop.permute.xlu1 %4116 }
 0x2af   : > { %v3590_v0 = vmax.f32 %v3563_v41, 0.0  ;;  %v1683_v32 = vpop.f32.mrf.mxu3  ;;  %v4152_v41 = vld [vmem:[%s9023_s5 + $0x40] sm:$0xff]  ;;  %9087 = vst [vmem:[#allocation8_spill] sm:$0xff] %v7953_v37 }
 0x2b0   : > { %v2298_v51 = vmax.f32 %v2273_v43, 0.0  ;;  %v7941_v29 = vadd.f32 %v1683_v32, %v1271_v63  ;;  %4222 = vmatpush.msra.mxu3 %v4152_v41  ;;  %v3686_v43 = vpop.permute.xlu2 %3685  ;;  %v3017_v32 = vld [vmem:[%s6336_s30 + $0x3d0] sm:$0xff] }
 0x2b1   : > { %v3716_v13 = vmul.f32 %v3681_v6, %v3590_v0 }
 0x2b2   : > { %v2424_v30 = vmul.f32 %v9085_v58, %v2298_v51  ;;  %6037 = vmatmul.msk.f32.gmra.mxu2 %vm465_vm1, %v3016_v35  ;;  %v9088_v58 = vld [vmem:[#allocation15_spill] sm:$0xff] }
 0x2b3   : > { %6092 = vmatmul.msk.f32.gmra.mxu1 %vm1028_vm2, %v3716_v13  ;;  %v1274_v51 = vadd.f32 %v7666_v31, %v9088_v58  ;;  %v9091_v58 = vld [vmem:[#allocation17_spill] sm:$0xff] }
 0x2b4   : > { %v3565_v38 = vpop.f32.mrf.mxu0  ;;  %5982 = vmatmul.msk.f32.gmra.mxu3 %vm1028_vm2, %v2424_v30 }
 0x2b5   : > { %v3566_v17 = vadd.f32 %v7690_v59, %v3565_v38  ;;  %v2275_v44 = vpop.f32.mrf.mxu2  ;;  %v9089_v38 = vld [vmem:[#allocation14_spill] sm:$0xff] }
 0x2b6   : > { %v2276_v0 = vadd.f32 %v7690_v59, %v2275_v44 }
 0x2b7   : > { %v3591_v63 = vmax.f32 %v3566_v17, 0.0  ;;  %v1686_v6 = vpop.f32.mrf.mxu3  ;;  %v7966_v17 = vpop.permute.xlu0 %4121 }
 0x2b8   : > { %v2299_v13 = vmax.f32 %v2276_v0, 0.0  ;;  %v7959_v30 = vadd.f32 %v1686_v6, %v1274_v51  ;;  %9090 = vst [vmem:[#allocation11_spill] sm:$0xff] %v7966_v17  ;;  %v7970_v0 = vpop.f32.mrf.mxu1  ;;  %v3691_v6 = vpop.permute.xlu1 %3690 }
 0x2b9   : > { %v3717_v35 = vmul.f32 %v3686_v43, %v3591_v63  ;;  %v1277_v63 = vadd.f32 %v7698_v33, %v9091_v58  ;;  %9092 = vst [vmem:[#allocation10_spill] sm:$0xff] %v7970_v0 }
 0x2ba   : > { %v2425_v16 = vmul.f32 %v9089_v38, %v2299_v13  ;;  %6038 = vmatmul.msk.f32.gmra.mxu2 %vm465_vm1, %v3017_v32  ;;  %v3018_v13 = vld [vmem:[%s6336_s30 + $0x3d8] sm:$0xff] }
 0x2bb   : > { %6093 = vmatmul.msk.f32.gmra.mxu1 %vm1028_vm2, %v3717_v35 }
 0x2bc   : > { %v3568_v41 = vpop.f32.mrf.mxu0  ;;  %5983 = vmatmul.msk.f32.gmra.mxu3 %vm1028_vm2, %v2425_v16  ;;  %v9093_v16 = vld [vmem:[#allocation16_spill] sm:$0xff] }
 0x2bd   : > { %v3569_v31 = vadd.f32 %v7690_v59, %v3568_v41  ;;  %v2278_v44 = vpop.f32.mrf.mxu2 }
 0x2be   : > { %v2279_v43 = vadd.f32 %v7690_v59, %v2278_v44 }
 0x2bf   : > { %v3592_v51 = vmax.f32 %v3569_v31, 0.0  ;;  %v1689_v32 = vpop.f32.mrf.mxu3  ;;  %v7981_v31 = vpop.permute.xlu2 %4126 }
 0x2c0   : > { %v2300_v38 = vmax.f32 %v2279_v43, 0.0  ;;  %v7974_v41 = vadd.f32 %v1689_v32, %v1277_v63  ;;  %9094 = vst [vmem:[#allocation13_spill] sm:$0xff] %v7981_v31  ;;  %v9095_v63 = vld [vmem:[#allocation19_spill] sm:$0xff] }
 0x2c1   : > { %v3718_v35 = vmul.f32 %v3691_v6, %v3592_v51  ;;  %v2123_v43 = vadd.f32 %v9095_v63, %v7716_v20  ;;  %v3696_v6 = vpop.permute.xlu0 %3695 }
 0x2c2   : > { %v2426_v37 = vmul.f32 %v9093_v16, %v2300_v38  ;;  %6039 = vmatmul.msk.f32.gmra.mxu2 %vm465_vm1, %v3018_v13  ;;  %v3019_v38 = vld [vmem:[%s6336_s30 + $0x3e0] sm:$0xff]  ;;  %v7987_v13 = vpop.f32.mrf.mxu1 }
 0x2c3   : > { %6094 = vmatmul.msk.f32.gmra.mxu1 %vm1028_vm2, %v3718_v35 }
 0x2c4   : > { %v3571_v33 = vpop.f32.mrf.mxu0  ;;  %5984 = vmatmul.msk.f32.gmra.mxu3 %vm1028_vm2, %v2426_v37  ;;  %v9096_v37 = vld [vmem:[#allocation18_spill] sm:$0xff] }
 0x2c5   : > { %v3572_v58 = vadd.f32 %v7690_v59, %v3571_v33  ;;  %v2281_v44 = vpop.f32.mrf.mxu2 }
 0x2c6   : > { %v2282_v51 = vadd.f32 %v7690_v59, %v2281_v44 }
 0x2c7   : > { %v3593_v17 = vmax.f32 %v3572_v58, 0.0  ;;  %v2500_v32 = vpop.f32.mrf.mxu3 }
 0x2c8   : > { %v2301_v16 = vmax.f32 %v2282_v51, 0.0  ;;  %v7989_v33 = vadd.f32 %v2500_v32, %v2123_v43  ;;  %v3701_v51 = vpop.permute.xlu2 %3700 }
 0x2c9   : > { %v3719_v35 = vmul.f32 %v3696_v6, %v3593_v17  ;;  %v2124_v17 = vadd.f32 %v7418_v27, %v7733_v25  ;;  %v3020_v6 = vld [vmem:[%s6336_s30 + $0x3e8] sm:$0xff] }
 0x2ca   : > { %v2427_v0 = vmul.f32 %v9096_v37, %v2301_v16  ;;  %6040 = vmatmul.msk.f32.gmra.mxu2 %vm465_vm1, %v3019_v38  ;;  %v9097_v37 = vld [vmem:[#allocation20_spill] sm:$0xff] }
 0x2cb   : > { %6095 = vmatmul.msk.f32.gmra.mxu1 %vm1028_vm2, %v3719_v35  ;;  %v8002_v35 = vpop.f32.mrf.mxu1 }
 0x2cc   : > { %v3574_v58 = vpop.f32.mrf.mxu0  ;;  %5985 = vmatmul.msk.f32.gmra.mxu3 %vm1028_vm2, %v2427_v0  ;;  %v2125_v0 = vadd.f32 %v7451_v24, %v7750_v52  ;;  %v3866_v24 = vld [vmem:[%s6336_s30 + $0x488] sm:$0xff] }
 0x2cd   : > { %v3575_v44 = vadd.f32 %v7690_v59, %v3574_v58  ;;  %v3092_v20 = vpop.f32.mrf.mxu2 }
 0x2ce   : > { %v3093_v31 = vadd.f32 %v7690_v59, %v3092_v20 }
 0x2cf   : > { %v3594_v63 = vmax.f32 %v3575_v44, 0.0  ;;  %v2503_v43 = vpop.f32.mrf.mxu3  ;;  %v3865_v44 = vld [vmem:[%s6336_s30 + $0x480] sm:$0xff] }
 0x2d0   : > { %v3146_v38 = vmax.f32 %v3093_v31, 0.0  ;;  %v8000_v16 = vadd.f32 %v2503_v43, %v2124_v17 }
 0x2d1   : > { %v3720_v32 = vmul.f32 %v3701_v51, %v3594_v63 }
 0x2d2   : > { %v3272_v58 = vmul.f32 %v9097_v37, %v3146_v38  ;;  %6041 = vmatmul.msk.f32.gmra.mxu2 %vm465_vm1, %v3020_v6  ;;  %v2126_v6 = vadd.f32 %v7488_v49, %v7767_v2  ;;  %v3867_v49 = vld [vmem:[%s6336_s30 + $0x490] sm:$0xff] }
 0x2d3   : > { %6096 = vmatmul.msk.f32.gmra.mxu1 %vm1028_vm2, %v3720_v32 }
 0x2d4   : > { %6042 = vmatmul.msk.f32.vlgmr.msrb.gmra.mxu3 %vm1028_vm2, %v3272_v58 }
 0x2d5   : > { %v3095_v27 = vpop.f32.mrf.mxu2 }
 0x2d6   : > { %v3096_v25 = vadd.f32 %v7690_v59, %v3095_v27  ;;  %v2127_v27 = vadd.f32 %v7515_v9, %v7780_v60  ;;  %v3868_v9 = vld [vmem:[%s6336_s30 + $0x498] sm:$0xff] }
 0x2d7   : > { %v2506_v31 = vpop.f32.mrf.mxu3 }
 0x2d8   : > { %v3147_v20 = vmax.f32 %v3096_v25, 0.0  ;;  %v8012_v63 = vadd.f32 %v2506_v31, %v2125_v0  ;;  %v9098_v31 = vld [vmem:[#allocation21_spill] sm:$0xff] }
 0x2da   : > { %v3273_v17 = vmul.f32 %v7434_v5, %v3147_v20  ;;  %6098 = vmatmul.msk.f32.vlgmr.msra.gmra.mxu2 %vm465_vm1, %v3865_v44 }
 0x2dc   : > { %6043 = vmatmul.msk.f32.gmra.mxu3 %vm1028_vm2, %v3273_v17  ;;  %v9099_v17 = vld [vmem:[#allocation24_spill] sm:$0xff] }
 0x2dd   : > { %v3098_v51 = vpop.f32.mrf.mxu2 }
 0x2de   : > { %v3099_v43 = vadd.f32 %v7690_v59, %v3098_v51  ;;  %v2128_v51 = vadd.f32 %v9099_v17, %v7795_v57  ;;  %v3869_v57 = vld [vmem:[%s6336_s30 + $0x4a0] sm:$0xff] }
 0x2df   : > { %v2509_v32 = vpop.f32.mrf.mxu3 }
 0x2e0   : > { %v3148_v52 = vmax.f32 %v3099_v43, 0.0  ;;  %v8021_v38 = vadd.f32 %v2509_v32, %v2126_v6  ;;  %v9100_v32 = vld [vmem:[#allocation22_spill] sm:$0xff] }
 0x2e2   : > { %v3274_v37 = vmul.f32 %v7461_v28, %v3148_v52  ;;  %6099 = vmatmul.msk.f32.gmra.mxu2 %vm465_vm1, %v3866_v24 }
 0x2e4   : > { %6044 = vmatmul.msk.f32.gmra.mxu3 %vm1028_vm2, %v3274_v37 }
 0x2e5   : > { %v3101_v5 = vpop.f32.mrf.mxu2 }
 0x2e6   : > { %v3102_v58 = vadd.f32 %v7690_v59, %v3101_v5  ;;  %v2129_v5 = vadd.f32 %v7567_v45, %v7810_v11  ;;  %v3870_v45 = vld [vmem:[%s6336_s30 + $0x4a8] sm:$0xff] }
 0x2e7   : > { %v2512_v25 = vpop.f32.mrf.mxu3 }
 0x2e8   : > { %v3149_v2 = vmax.f32 %v3102_v58, 0.0  ;;  %v8030_v0 = vadd.f32 %v2512_v25, %v2127_v27 }
 0x2ea   : > { %v3275_v44 = vmul.f32 %v9098_v31, %v3149_v2  ;;  %6100 = vmatmul.msk.f32.gmra.mxu2 %vm465_vm1, %v3867_v49  ;;  %v9101_v49 = vld [vmem:[#allocation23_spill] sm:$0xff] }
 0x2ec   : > { %6045 = vmatmul.msk.f32.gmra.mxu3 %vm1028_vm2, %v3275_v44 }
 0x2ed   : > { %v3104_v28 = vpop.f32.mrf.mxu2 }
 0x2ee   : > { %v3105_v20 = vadd.f32 %v7690_v59, %v3104_v28  ;;  %v2130_v28 = vadd.f32 %v7586_v36, %v7825_v55  ;;  %v3871_v36 = vld [vmem:[%s6336_s30 + $0x4b0] sm:$0xff] }
 0x2ef   : > { %v2515_v43 = vpop.f32.mrf.mxu3 }
 0x2f0   : > { %v3150_v60 = vmax.f32 %v3105_v20, 0.0  ;;  %v8039_v6 = vadd.f32 %v2515_v43, %v2128_v51  ;;  %v9102_v51 = vld [vmem:[#allocation25_spill] sm:$0xff] }
 0x2f2   : > { %v3276_v24 = vmul.f32 %v9100_v32, %v3150_v60  ;;  %6101 = vmatmul.msk.f32.gmra.mxu2 %vm465_vm1, %v3868_v9  ;;  %v9103_v32 = vld [vmem:[#allocation29_spill] sm:$0xff] }
 0x2f4   : > { %6046 = vmatmul.msk.f32.gmra.mxu3 %vm1028_vm2, %v3276_v24  ;;  %v2131_v24 = vadd.f32 %v9103_v32, %v7840_v62  ;;  %v3872_v62 = vld [vmem:[%s6336_s30 + $0x4b8] sm:$0xff] }
 0x2f5   : > { %v3107_v52 = vpop.f32.mrf.mxu2 }
 0x2f6   : > { %v3108_v37 = vadd.f32 %v7690_v59, %v3107_v52 }
 0x2f7   : > { %v2518_v58 = vpop.f32.mrf.mxu3 }
 0x2f8   : > { %v3151_v27 = vmax.f32 %v3108_v37, 0.0  ;;  %v8048_v25 = vadd.f32 %v2518_v58, %v2129_v5  ;;  %v9104_v5 = vld [vmem:[#allocation26_spill] sm:$0xff] }
 0x2fa   : > { %v3277_v2 = vmul.f32 %v9101_v49, %v3151_v27  ;;  %6102 = vmatmul.msk.f32.gmra.mxu2 %vm465_vm1, %v3869_v57  ;;  %v9105_v49 = vld [vmem:[#allocation31_spill] sm:$0xff] }
 0x2fc   : > { %6047 = vmatmul.msk.f32.gmra.mxu3 %vm1028_vm2, %v3277_v2  ;;  %v2132_v2 = vadd.f32 %v9105_v49, %v7853_v42  ;;  %v3873_v42 = vld [vmem:[%s6336_s30 + $0x4c0] sm:$0xff] }
 0x2fd   : > { %v3110_v31 = vpop.f32.mrf.mxu2 }
 0x2fe   : > { %v3111_v44 = vadd.f32 %v7690_v59, %v3110_v31 }
 0x2ff   : > { %v2521_v20 = vpop.f32.mrf.mxu3 }
 0x300   : > { %v3152_v11 = vmax.f32 %v3111_v44, 0.0  ;;  %v8057_v17 = vadd.f32 %v2521_v20, %v2130_v28  ;;  %v9106_v20 = vld [vmem:[#allocation27_spill] sm:$0xff] }
 0x302   : > { %v3278_v43 = vmul.f32 %v9102_v51, %v3152_v11  ;;  %6103 = vmatmul.msk.f32.gmra.mxu2 %vm465_vm1, %v3870_v45 }
 0x304   : > { %6048 = vmatmul.msk.f32.gmra.mxu3 %vm1028_vm2, %v3278_v43  ;;  %v9107_v43 = vld [vmem:[#allocation33_spill] sm:$0xff] }
 0x305   : > { %v3113_v9 = vpop.f32.mrf.mxu2 }
 0x306   : > { %v3114_v60 = vadd.f32 %v7690_v59, %v3113_v9  ;;  %v2133_v9 = vadd.f32 %v9107_v43, %v7868_v21  ;;  %v3874_v21 = vld [vmem:[%s6336_s30 + $0x4c8] sm:$0xff]  ;;  %v9111_v43 = vld [vmem:[#allocation32_spill] sm:$0xff] }
 0x307   : > { %v2524_v52 = vpop.f32.mrf.mxu3 }
 0x308   : > { %v3153_v55 = vmax.f32 %v3114_v60, 0.0  ;;  %v8066_v37 = vadd.f32 %v2524_v52, %v2131_v24  ;;  %v9108_v52 = vld [vmem:[#allocation28_spill] sm:$0xff] }
 0x30a   : > { %v3279_v58 = vmul.f32 %v9104_v5, %v3153_v55  ;;  %6104 = vmatmul.msk.f32.gmra.mxu2 %vm465_vm1, %v3871_v36 }
 0x30c   : > { %6049 = vmatmul.msk.f32.gmra.mxu3 %vm1028_vm2, %v3279_v58  ;;  %v2134_v58 = vadd.f32 %v7657_v40, %v7883_v14  ;;  %v3875_v40 = vld [vmem:[%s6336_s30 + $0x4d0] sm:$0xff] }
 0x30d   : > { %v3116_v57 = vpop.f32.mrf.mxu2 }
 0x30e   : > { %v3117_v27 = vadd.f32 %v7690_v59, %v3116_v57 }
 0x30f   : > { %v2527_v31 = vpop.f32.mrf.mxu3 }
 0x310   : > { %v3154_v44 = vmax.f32 %v3117_v27, 0.0  ;;  %v8075_v28 = vadd.f32 %v2527_v31, %v2132_v2  ;;  %v9109_v2 = vld [vmem:[#allocation30_spill] sm:$0xff] }
 0x312   : > { %v3280_v45 = vmul.f32 %v9106_v20, %v3154_v44  ;;  %6105 = vmatmul.msk.f32.gmra.mxu2 %vm465_vm1, %v3872_v62  ;;  %v9110_v20 = vld [vmem:[#allocation37_spill] sm:$0xff] }
 0x314   : > { %6050 = vmatmul.msk.f32.gmra.mxu3 %vm1028_vm2, %v3280_v45  ;;  %v2135_v45 = vadd.f32 %v9110_v20, %v7898_v1  ;;  %v3876_v1 = vld [vmem:[%s6336_s30 + $0x4d8] sm:$0xff] }
 0x315   : > { %v3119_v11 = vpop.f32.mrf.mxu2  ;;  %v9114_v20 = vld [vmem:[#allocation35_spill] sm:$0xff] }
 0x316   : > { %v3120_v51 = vadd.f32 %v7690_v59, %v3119_v11 }
 0x317   : > { %v2530_v60 = vpop.f32.mrf.mxu3 }
 0x318   : > { %v3155_v32 = vmax.f32 %v3120_v51, 0.0  ;;  %v8084_v24 = vadd.f32 %v2530_v60, %v2133_v9 }
 0x31a   : > { %v3281_v36 = vmul.f32 %v9108_v52, %v3155_v32  ;;  %6106 = vmatmul.msk.f32.gmra.mxu2 %vm465_vm1, %v3873_v42  ;;  %v9112_v32 = vld [vmem:[#allocation39_spill] sm:$0xff] }
 0x31b   : > { %v2136_v52 = vadd.f32 %v9112_v32, %v7913_v46  ;;  %v3877_v46 = vld [vmem:[%s6336_s30 + $0x4e0] sm:$0xff] }
 0x31c   : > { %6051 = vmatmul.msk.f32.gmra.mxu3 %vm1028_vm2, %v3281_v36 }
 0x31d   : > { %v3122_v55 = vpop.f32.mrf.mxu2 }
 0x31e   : > { %v3123_v5 = vadd.f32 %v7690_v59, %v3122_v55 }
 0x31f   : > { %v2533_v57 = vpop.f32.mrf.mxu3 }
 0x320   : > { %v3156_v27 = vmax.f32 %v3123_v5, 0.0  ;;  %v8093_v49 = vadd.f32 %v2533_v57, %v2134_v58  ;;  %v9113_v58 = vld [vmem:[#allocation34_spill] sm:$0xff] }
 0x322   : > { %v3282_v31 = vmul.f32 %v9109_v2, %v3156_v27  ;;  %6107 = vmatmul.msk.f32.gmra.mxu2 %vm465_vm1, %v3874_v21  ;;  %v2137_v2 = vadd.f32 %v7722_v19, %v7926_v53  ;;  %v2138_v53 = vadd.f32 %v7745_v39, %v7941_v29  ;;  %v3879_v39 = vld [vmem:[%s6336_s30 + $0x4f0] sm:$0xff] }
 0x324   : > { %6052 = vmatmul.msk.f32.gmra.mxu3 %vm1028_vm2, %v3282_v31 }
 0x325   : > { %v3125_v62 = vpop.f32.mrf.mxu2 }
 0x326   : > { %v3126_v44 = vadd.f32 %v7690_v59, %v3125_v62 }
 0x327   : > { %v2536_v11 = vpop.f32.mrf.mxu3 }
 0x328   : > { %v3157_v14 = vmax.f32 %v3126_v44, 0.0  ;;  %v8102_v51 = vadd.f32 %v2536_v11, %v2135_v45 }
 0x32a   : > { %v3283_v9 = vmul.f32 %v9111_v43, %v3157_v14  ;;  %6108 = vmatmul.msk.f32.gmra.mxu2 %vm465_vm1, %v3875_v40  ;;  %v3878_v14 = vld [vmem:[%s6336_s30 + $0x4e8] sm:$0xff] }
 0x32c   : > { %6053 = vmatmul.msk.f32.gmra.mxu3 %vm1028_vm2, %v3283_v9 }
 0x32d   : > { %v3128_v60 = vpop.f32.mrf.mxu2 }
 0x32e   : > { %v3129_v42 = vadd.f32 %v7690_v59, %v3128_v60  ;;  %v9115_v60 = vld [vmem:[#allocation36_spill] sm:$0xff] }
 0x32f   : > { %v2539_v36 = vpop.f32.mrf.mxu3 }
 0x330   : > { %v3158_v55 = vmax.f32 %v3129_v42, 0.0  ;;  %v8111_v5 = vadd.f32 %v2539_v36, %v2136_v52  ;;  %v2139_v36 = vadd.f32 %v7765_v61, %v7959_v30  ;;  %v3880_v61 = vld [vmem:[%s6336_s30 + $0x4f8] sm:$0xff] }
 0x332   : > { %v3284_v57 = vmul.f32 %v9113_v58, %v3158_v55  ;;  %6109 = vmatmul.msk.f32.gmra.mxu2 %vm465_vm1, %v3876_v1  ;;  %v9116_v58 = vld [vmem:[#allocation38_spill] sm:$0xff] }
 0x334   : > { %6054 = vmatmul.msk.f32.gmra.mxu3 %vm1028_vm2, %v3284_v57 }
 0x335   : > { %v3131_v21 = vpop.f32.mrf.mxu2 }
 0x336   : > { %v3132_v27 = vadd.f32 %v7690_v59, %v3131_v21  ;;  %v8128_v59 = vld [vmem:[%s9022_s4] ss:$0 sm:$0xff] }
 0x337   : > { %v2542_v31 = vpop.f32.mrf.mxu3 }
 0x338   : > { %v3159_v62 = vmax.f32 %v3132_v27, 0.0  ;;  %v8120_v44 = vadd.f32 %v2542_v31, %v2137_v2  ;;  %v2140_v2 = vadd.f32 %v7782_v12, %v7974_v41  ;;  %v3881_v12 = vld [vmem:[%s6336_s30 + $0x500] sm:$0xff] }
 0x33a   : > { %v3285_v45 = vmul.f32 %v9114_v20, %v3159_v62  ;;  %6110 = vmatmul.msk.f32.gmra.mxu2 %vm465_vm1, %v3877_v46 }
 0x33c   : > { %6055 = vmatmul.msk.f32.gmra.mxu3 %vm1028_vm2, %v3285_v45 }
 0x33d   : > { %v3134_v11 = vpop.f32.mrf.mxu2 }
 0x33e   : > { %v3135_v19 = vadd.f32 %v8128_v59, %v3134_v11  ;;  %v2985_v11 = vadd.f32 %v7800_v48, %v7989_v33 }
 0x33f   : > { %v2545_v40 = vpop.f32.mrf.mxu3 }
 0x340   : > { %v3160_v43 = vmax.f32 %v3135_v19, 0.0  ;;  %v8134_v9 = vadd.f32 %v2545_v40, %v2138_v53 }
 0x342   : > { %v3286_v42 = vmul.f32 %v9115_v60, %v3160_v43  ;;  %6111 = vmatmul.msk.f32.gmra.mxu2 %vm465_vm1, %v3878_v14  ;;  %v2986_v43 = vadd.f32 %v7821_v50, %v8000_v16 }
 0x344   : > { %6056 = vmatmul.msk.f32.gmra.mxu3 %vm1028_vm2, %v3286_v42  ;;  %v3882_v42 = vld [vmem:[%s6336_s30 + $0x508] sm:$0xff] }
 0x345   : > { %v3137_v32 = vpop.f32.mrf.mxu2 }
 0x346   : > { %v3138_v52 = vadd.f32 %v8128_v59, %v3137_v32 }
 0x347   : > { %v2548_v1 = vpop.f32.mrf.mxu3 }
 0x348   : > { %v3161_v29 = vmax.f32 %v3138_v52, 0.0  ;;  %v8143_v55 = vadd.f32 %v2548_v1, %v2139_v36  ;;  %v2987_v36 = vadd.f32 %v7838_v15, %v8012_v63 }
 0x34a   : > { %v3287_v57 = vmul.f32 %v9116_v58, %v3161_v29  ;;  %6112 = vmatmul.msk.f32.gmra.mxu2 %vm465_vm1, %v3879_v39  ;;  %v2988_v58 = vadd.f32 %v7855_v22, %v8021_v38 }
 0x34c   : > { %6057 = vmatmul.msk.f32.gmra.mxu3 %vm1028_vm2, %v3287_v57 }
 0x34d   : > { %v3140_v21 = vpop.f32.mrf.mxu2 }
 0x34e   : > { %v3141_v27 = vadd.f32 %v8128_v59, %v3140_v21 }
 0x34f   : > { %v2551_v31 = vpop.f32.mrf.mxu3 }
 0x350   : > { %v3162_v30 = vmax.f32 %v3141_v27, 0.0  ;;  %v8152_v46 = vadd.f32 %v2551_v31, %v2140_v2 }
 0x352   : > { %v3288_v62 = vmul.f32 %v7709_v54, %v3162_v30  ;;  %6113 = vmatmul.msk.f32.gmra.mxu2 %vm465_vm1, %v3880_v61 }
 0x354   : > { %6058 = vmatmul.msk.f32.gmra.mxu3 %vm1028_vm2, %v3288_v62 }
 0x355   : > { %v3143_v20 = vpop.f32.mrf.mxu2 }
 0x356   : > { %v3144_v45 = vadd.f32 %v8128_v59, %v3143_v20 }
 0x357   : > { %v3362_v19 = vpop.f32.mrf.mxu3 }
 0x358   : > { %v3163_v41 = vmax.f32 %v3144_v45, 0.0  ;;  %v8161_v53 = vadd.f32 %v3362_v19, %v2985_v11 }
 0x35a   : > { %v3289_v40 = vmul.f32 %v7726_v4, %v3163_v41  ;;  %6114 = vmatmul.msk.f32.gmra.mxu2 %vm465_vm1, %v3881_v12  ;;  %v2967_v12 = vpop.f32.mrf.mxu1 }
 0x35c   : > { %6059 = vmatmul.msk.f32.gmra.mxu3 %vm1028_vm2, %v3289_v40 }
 0x35d   : > { %v3954_v54 = vpop.f32.mrf.mxu2 }
 0x35e   : > { %v3955_v14 = vadd.f32 %v8128_v59, %v3954_v54 }
 0x35f   : > { %v3365_v60 = vpop.f32.mrf.mxu3 }
 0x360   : > { %v4008_v48 = vmax.f32 %v3955_v14, 0.0  ;;  %v8170_v33 = vadd.f32 %v3365_v60, %v2986_v43  ;;  %v2992_v14 = vadd.f32 %v7928_v8, %v8057_v17  ;;  %v9119_v8 = vld [vmem:[#allocation41_spill] sm:$0xff] }
 0x362   : > { %v4134_v32 = vmul.f32 %v7741_v10, %v4008_v48  ;;  %6115 = vmatmul.msk.f32.gmra.mxu2 %vm465_vm1, %v3882_v42 }
 0x364   : > { %6116 = vmatmul.msk.f32.vlgmr.msra.gmra.mxu3 %vm1028_vm2, %v4134_v32 }
 0x365   : > { %v3957_v4 = vpop.f32.mrf.mxu2 }
 0x366   : > { %v3958_v52 = vadd.f32 %v8128_v59, %v3957_v4  ;;  %v9118_v4 = vld [vmem:[#allocation9_spill] sm:$0xff] }
 0x367   : > { %v3368_v1 = vpop.f32.mrf.mxu3 }
 0x368   : > { %v4009_v39 = vmax.f32 %v3958_v52, 0.0  ;;  %v8178_v50 = vadd.f32 %v3368_v1, %v2987_v36  ;;  %v2993_v52 = vadd.f32 %v9118_v4, %v8066_v37  ;;  %v9120_v37 = vld [vmem:[#allocation10_spill] sm:$0xff] }
 0x36a   : > { %v4135_v16 = vmul.f32 %v7758_v3, %v4009_v39  ;;  %v2989_v3 = vadd.f32 %v7873_v56, %v8030_v0 }
 0x36c   : > { %6117 = vmatmul.msk.f32.gmra.mxu3 %vm1028_vm2, %v4135_v16  ;;  %v4550_v16 = vld [vmem:[%s9025_s7 + $0x28] sm:$0xff] }
 0x36d   : > { %v3960_v29 = vpop.f32.mrf.mxu2  ;;  %4571 = vmatpush.msra.mxu0 %v4550_v16 }
 0x36e   : > { %v3961_v10 = vadd.f32 %v8128_v59, %v3960_v29 }
 0x36f   : > { %v3371_v57 = vpop.f32.mrf.mxu3 }
 0x370   : > { %v4010_v21 = vmax.f32 %v3961_v10, 0.0  ;;  %v8185_v27 = vadd.f32 %v3371_v57, %v2988_v58  ;;  %v2994_v57 = vadd.f32 %v9120_v37, %v8075_v28  ;;  %v9122_v28 = vld [vmem:[#allocation43_spill] sm:$0xff] }
 0x372   : > { %v4136_v15 = vmul.f32 %v7774_v47, %v4010_v21  ;;  %v2990_v47 = vadd.f32 %v7894_v26, %v8039_v6 }
 0x374   : > { %6118 = vmatmul.msk.f32.gmra.mxu3 %vm1028_vm2, %v4136_v15 }
 0x375   : > { %v3963_v63 = vpop.f32.mrf.mxu2 }
 0x376   : > { %v3964_v2 = vadd.f32 %v8128_v59, %v3963_v63 }
 0x377   : > { %v3374_v31 = vpop.f32.mrf.mxu3 }
 0x378   : > { %v4011_v61 = vmax.f32 %v3964_v2, 0.0  ;;  %v8192_v30 = vadd.f32 %v3374_v31, %v2989_v3  ;;  %v9121_v2 = vld [vmem:[#allocation42_spill] sm:$0xff] }
 0x37a   : > { %v4137_v22 = vmul.f32 %v7789_v34, %v4011_v61  ;;  %v2991_v34 = vadd.f32 %v7911_v7, %v8048_v25  ;;  %v2970_v7 = vpop.f32.mrf.mxu1  ;;  %v9117_v25 = vld [vmem:[#allocation40_spill] sm:$0xff] }
 0x37c   : > { %6119 = vmatmul.msk.f32.gmra.mxu3 %vm1028_vm2, %v4137_v22 }
 0x37d   : > { %v3966_v38 = vpop.f32.mrf.mxu2 }
 0x37e   : > { %v3967_v62 = vadd.f32 %v8128_v59, %v3966_v38  ;;  %v2995_v38 = vadd.f32 %v7987_v13, %v8084_v24 }
 0x37f   : > { %v3377_v20 = vpop.f32.mrf.mxu3 }
 0x380   : > { %v4012_v45 = vmax.f32 %v3967_v62, 0.0  ;;  %v8199_v11 = vadd.f32 %v3377_v20, %v2990_v47 }
 0x382   : > { %v4138_v56 = vmul.f32 %v7804_v23, %v4012_v45  ;;  %v8226_v29 = vpop.f32.mrf.mxu1 }
 0x384   : > { %6120 = vmatmul.msk.f32.gmra.mxu3 %vm1028_vm2, %v4138_v56  ;;  %v4585_v56 = vld [vmem:[%s9025_s7 + $0x38] sm:$0xff] }
 0x385   : > { %v3969_v0 = vpop.f32.mrf.mxu2  ;;  %4606 = vmatpush.msra.mxu1 %v4585_v56 }
 0x386   : > { %v3970_v19 = vadd.f32 %v8128_v59, %v3969_v0 }
 0x387   : > { %v3380_v41 = vpop.f32.mrf.mxu3 }
 0x388   : > { %v4013_v40 = vmax.f32 %v3970_v19, 0.0  ;;  %v8206_v54 = vadd.f32 %v3380_v41, %v2991_v34  ;;  %v2996_v34 = vadd.f32 %v8002_v35, %v8093_v49  ;;  %v2997_v49 = vadd.f32 %v2967_v12, %v8102_v51  ;;  %v9125_v51 = vld [vmem:[#allocation7_spill] sm:$0xff] }
 0x38a   : > { %v4139_v26 = vmul.f32 %v7817_v18, %v4013_v40  ;;  %v8236_v31 = vpop.f32.mrf.mxu1 }
 0x38c   : > { %6121 = vmatmul.msk.f32.gmra.mxu3 %vm1028_vm2, %v4139_v26  ;;  %v9123_v26 = vld [vmem:[#allocation5_spill] sm:$0xff] }
 0x38d   : > { %v3972_v6 = vpop.f32.mrf.mxu2 }
 0x38e   : > { %v3973_v23 = vadd.f32 %v8128_v59, %v3972_v6 }
 0x38f   : > { %v3383_v43 = vpop.f32.mrf.mxu3 }
 0x390   : > { %v4014_v60 = vmax.f32 %v3973_v23, 0.0  ;;  %v8213_v42 = vadd.f32 %v3383_v43, %v2992_v14  ;;  %v4488_v23 = vld [vmem:[%s9025_s7 + $0x18] sm:$0xff]  ;;  %v4484_v14 = vld [vmem:[%s9025_s7 + $0x8] sm:$0xff] }
 0x391   : > { %4509 = vmatpush.msrb.mxu2 %v4488_v23  ;;  %4538 = vmatpush.msrb.mxu3 %v4484_v14 }
 0x392   : > { %v4140_v48 = vmul.f32 %v9117_v25, %v4014_v60  ;;  %v8251_v13 = vpop.f32.mrf.mxu1 }
 0x394   : > { %6122 = vmatmul.msk.f32.gmra.mxu3 %vm1028_vm2, %v4140_v48 }
 0x395   : > { %v3975_v32 = vpop.f32.mrf.mxu2 }
 0x396   : > { %v3976_v18 = vadd.f32 %v8128_v59, %v3975_v32 }
 0x397   : > { %v3386_v36 = vpop.f32.mrf.mxu3 }
 0x398   : > { %v4015_v1 = vmax.f32 %v3976_v18, 0.0  ;;  %v8220_v39 = vadd.f32 %v3386_v36, %v2993_v52  ;;  %v9124_v18 = vld [vmem:[#allocation4_spill] sm:$0xff] }
 0x39a   : > { %v4141_v17 = vmul.f32 %v9119_v8, %v4015_v1  ;;  %v8267_v32 = vpop.f32.mrf.mxu1  ;;  %v2998_v1 = vadd.f32 %v2970_v7, %v8111_v5 }
 0x39c   : > { %6123 = vmatmul.msk.f32.gmra.mxu3 %vm1028_vm2, %v4141_v17 }
 0x39d   : > { %v3978_v10 = vpop.f32.mrf.mxu2 }
 0x39e   : > { %v3979_v58 = vadd.f32 %v8128_v59, %v3978_v10 }
 0x39f   : > { %v3389_v21 = vpop.f32.mrf.mxu3 }
 0x3a0   : > { %v4016_v15 = vmax.f32 %v3979_v58, 0.0  ;;  %v8232_v63 = vadd.f32 %v3389_v21, %v2994_v57 }
 0x3a2   : > { %v4142_v3 = vmul.f32 %v9121_v2, %v4016_v15  ;;  %v3793_v10 = vpop.f32.mrf.mxu1  ;;  %v9126_v15 = vld [vmem:[#allocation6_spill] sm:$0xff] }
 0x3a4   : > { %6124 = vmatmul.msk.f32.gmra.mxu3 %vm1028_vm2, %v4142_v3  ;;  %v8281_v3 = vpop.permute.xlu2 %4386 }
 0x3a5   : > { %v3981_v61 = vpop.f32.mrf.mxu2 }
 0x3a6   : > { %v3982_v22 = vadd.f32 %v8128_v59, %v3981_v61 }
 0x3a7   : > { %v3392_v62 = vpop.f32.mrf.mxu3 }
 0x3a8   : > { %v4017_v47 = vmax.f32 %v3982_v22, 0.0  ;;  %v8241_v20 = vadd.f32 %v3392_v62, %v2995_v38  ;;  %v9127_v62 = vld [vmem:[#allocation8_spill] sm:$0xff] }
 0x3aa   : > { %v4143_v45 = vmul.f32 %v9122_v28, %v4017_v47  ;;  %v3796_v5 = vpop.f32.mrf.mxu1  ;;  %v8288_v28 = vpop.permute.xlu0 %4376 }
 0x3ac   : > { %6125 = vmatmul.msk.f32.gmra.mxu3 %vm1028_vm2, %v4143_v45  ;;  %v8291_v56 = vpop.permute.xlu2 %4401 }
 0x3ad   : > { %v3984_v0 = vpop.f32.mrf.mxu2 }
 0x3ae   : > { %v3985_v19 = vadd.f32 %v8128_v59, %v3984_v0 }
 0x3af   : > { %v3395_v24 = vpop.f32.mrf.mxu3 }
 0x3b0   : > { %v4018_v41 = vmax.f32 %v3985_v19, 0.0  ;;  %v8253_v40 = vadd.f32 %v3395_v24, %v2996_v34  ;;  %v4483_v24 = vld [vmem:[%s9025_s7] sm:$0xff] }
 0x3b1   : > { %4539 = vmatpush.msrb.mxu3 %v4483_v24 }
 0x3b2   : > { %v4144_v6 = vmul.f32 %v9123_v26, %v4018_v41  ;;  %v3799_v19 = vpop.f32.mrf.mxu1  ;;  %v9128_v26 = vld [vmem:[#allocation11_spill] sm:$0xff]  ;;  %v8301_v23 = vpop.permute.xlu0 %4396 }
 0x3b4   : > { %6126 = vmatmul.msk.f32.gmra.mxu3 %vm1028_vm2, %v4144_v6 }
 0x3b5   : > { %v3987_v43 = vpop.f32.mrf.mxu2 }
 0x3b6   : > { %v3988_v35 = vadd.f32 %v8128_v59, %v3987_v43 }
 0x3b7   : > { %v3398_v60 = vpop.f32.mrf.mxu3 }
 0x3b8   : > { %v4019_v25 = vmax.f32 %v3988_v35, 0.0  ;;  %v8265_v48 = vadd.f32 %v3398_v60, %v2997_v49  ;;  %v4132_v35 = vpop.permute.xlu1 %4131 }
 0x3ba   : > { %v4145_v4 = vmul.f32 %v9124_v18, %v4019_v25  ;;  %v8306_v25 = vpop.permute.xlu2 %4406  ;;  %v3802_v18 = vpop.f32.mrf.mxu1 }
 0x3bc   : > { %6127 = vmatmul.msk.f32.gmra.mxu3 %vm1028_vm2, %v4145_v4  ;;  %v9129_v4 = vld [vmem:[#allocation13_spill] sm:$0xff] }
 0x3bd   : > { %v3990_v52 = vpop.f32.mrf.mxu2 }
 0x3be   : > { %v3991_v36 = vadd.f32 %v8128_v59, %v3990_v52 }
 0x3bf   : > { %v3401_v8 = vpop.f32.mrf.mxu3 }
 0x3c0   : > { %v4020_v17 = vmax.f32 %v3991_v36, 0.0  ;;  %v8273_v16 = vadd.f32 %v3401_v8, %v2998_v1  ;;  %v3847_v8 = vadd.f32 %v3793_v10, %v8161_v53 }
 0x3c2   : > { %v4146_v12 = vmul.f32 %v9125_v51, %v4020_v17  ;;  %v8315_v17 = vld [vmem:[%s9024_s6] ss:$0 sm:$0xff]  ;;  %v4357_v51 = vpop.permute.xlu0 %4356 }
 0x3c4   : > { %6128 = vmatmul.msk.f32.gmra.mxu3 %vm1028_vm2, %v4146_v12 }
 0x3c5   : > { %v3993_v58 = vpop.f32.mrf.mxu2 }
 0x3c6   : > { %v3994_v37 = vadd.f32 %v8128_v59, %v3993_v58  ;;  %v4487_v58 = vld [vmem:[%s9025_s7 + $0x10] sm:$0xff] }
 0x3c7   : > { %v8278_v57 = vpop.f32.mrf.mxu3  ;;  %4510 = vmatpush.msrb.mxu2 %v4487_v58 }
 0x3c8   : > { %v4021_v21 = vmax.f32 %v3994_v37, 0.0 }
 0x3ca   : > { %v4147_v2 = vmul.f32 %v9126_v15, %v4021_v21  ;;  %v4549_v15 = vld [vmem:[%s9025_s7 + $0x20] sm:$0xff]  ;;  %v8334_v24 = vpop.permute.xlu0 %4416 }
 0x3cb   : > { %4572 = vmatpush.msra.mxu0 %v4549_v15 }
 0x3cc   : > { %6129 = vmatmul.msk.f32.gmra.mxu3 %vm1028_vm2, %v4147_v2  ;;  %v8326_v2 = vpop.permute.xlu2 %4421 }
 0x3cd   : > { %v3996_v7 = vpop.f32.mrf.mxu2 }
 0x3ce   : > { %v3997_v61 = vadd.f32 %v8128_v59, %v3996_v7  ;;  %v3805_v7 = vpop.f32.mrf.mxu1 }
 0x3cf   : > { %v8285_v22 = vpop.f32.mrf.mxu3 }
 0x3d0   : > { %v4022_v38 = vmax.f32 %v3997_v61, 0.0 }
 0x3d2   : > { %v4148_v47 = vmul.f32 %v9127_v62, %v4022_v38  ;;  %v3848_v62 = vadd.f32 %v3796_v5, %v8170_v33  ;;  %v3849_v33 = vadd.f32 %v3799_v19, %v8178_v50 }
 0x3d4   : > { %6130 = vmatmul.msk.f32.gmra.mxu3 %vm1028_vm2, %v4148_v47 }
 0x3d5   : > { %v3999_v45 = vpop.f32.mrf.mxu2 }
 0x3d6   : > { %v4000_v0 = vadd.f32 %v8128_v59, %v3999_v45 }
 0x3d7   : > { %v8294_v34 = vpop.f32.mrf.mxu3 }
 0x3d8   : > { %v4023_v41 = vmax.f32 %v4000_v0, 0.0  ;;  %v4584_v0 = vld [vmem:[%s9025_s7 + $0x30] sm:$0xff] }
 0x3d9   : > { %4607 = vmatpush.msra.mxu1 %v4584_v0 }
 0x3da   : > { %v4149_v6 = vmul.f32 %v9128_v26, %v4023_v41 }
 0x3dc   : > { %6131 = vmatmul.msk.f32.gmra.mxu3 %vm1028_vm2, %v4149_v6 }
 0x3dd   : > { %v4002_v14 = vpop.f32.mrf.mxu2 }
 0x3de   : > { %v4003_v43 = vadd.f32 %v8128_v59, %v4002_v14  ;;  %v4362_v14 = vpop.permute.xlu2 %4361 }
 0x3df   : > { %v8304_v49 = vpop.f32.mrf.mxu3 }
 0x3e0   : > { %v4024_v60 = vmax.f32 %v4003_v43, 0.0  ;;  %v3808_v43 = vpop.f32.mrf.mxu1 }
 0x3e2   : > { %v4150_v52 = vmul.f32 %v9129_v4, %v4024_v60 }
 0x3e4   : > { %6132 = vmatmul.msk.f32.gmra.mxu3 %vm1028_vm2, %v4150_v52 }
 0x3e5   : > { %v4005_v36 = vpop.f32.mrf.mxu2 }
 0x3e6   : > { %v4006_v1 = vadd.f32 %v8128_v59, %v4005_v36  ;;  %v8323_v59 = vpop.permute.xlu1 %4381  ;;  %v8343_v36 = vpop.permute.xlu0 %4426 }
 0x3e7   : > { %v4224_v12 = vpop.f32.mrf.mxu3 }
 0x3e8   : > { %v4025_v37 = vmax.f32 %v4006_v1, 0.0  ;;  %v4278_v21 = vadd.f32 %v4224_v12, %v3847_v8  ;;  %v3850_v12 = vadd.f32 %v3802_v18, %v8185_v27  ;;  %v3811_v58 = vpop.f32.mrf.mxu1 }
 0x3ea   : > { %v4151_v53 = vmul.f32 %v4132_v35, %v4025_v37  ;;  %v4300_v10 = vadd.f32 %v8315_v17, %v4278_v21 }
 0x3ec   : > { %v4318_v61 = vmax.f32 %v4300_v10, 0.0  ;;  %6133 = vmatmul.msk.f32.gmra.mxu3 %vm1028_vm2, %v4151_v53 }
 0x3ee   : > { %v4444_v38 = vmul.f32 %v4357_v51, %v4318_v61  ;;  %v8337_v26 = vpop.permute.xlu1 %4391  ;;  %v4372_v53 = vpop.permute.xlu0 %4371  ;;  %v3851_v61 = vadd.f32 %v3805_v7, %v8192_v30 }
 0x3ef   : > { %v4227_v47 = vpop.f32.mrf.mxu3 }
 0x3f0   : > { %4463 = vst.msk [vmem:[#allocation2] sm:$0xff] %vm4462_vm3, %v4444_v38  ;;  %v4279_v45 = vadd.f32 %v4227_v47, %v3848_v62  ;;  %v3814_v18 = vpop.f32.mrf.mxu1 }
 0x3f2   : > { %v4301_v41 = vadd.f32 %v8315_v17, %v4279_v45 }
 0x3f4   : > { %v4319_v6 = vmax.f32 %v4301_v41, 0.0  ;;  %v3852_v41 = vadd.f32 %v3808_v43, %v8199_v11 }
 0x3f6   : > { %v4445_v35 = vmul.f32 %v4362_v14, %v4319_v6  ;;  %v4367_v8 = vpop.permute.xlu1 %4366 }
 0x3f7   : > { %v4230_v5 = vpop.f32.mrf.mxu3  ;;  %v4481_v60 = vld [vmem:[#allocation2] sm:$0xff] }
 0x3f8   : > { %4464 = vst.msk [vmem:[#allocation2 + $0x8] sm:$0xff] %vm4462_vm3, %v4445_v35  ;;  %v4280_v4 = vadd.f32 %v4230_v5, %v3849_v33  ;;  %6136 = vmatmul.msk.f32.vlgmr.msrb.gmra.mxu3 %vm4462_vm3, %v4481_v60  ;;  %v3817_v35 = vpop.f32.mrf.mxu1  ;;  %v4620_v5 = vld [vmem:[%s9025_s7 + $0x48] sm:$0xff] }
 0x3f9   : > { %4641 = vmatpush.msrb.mxu0 %v4620_v5 }
 0x3fa   : > { %v4302_v52 = vadd.f32 %v8315_v17, %v4280_v4  ;;  %v4619_v4 = vld [vmem:[%s9025_s7 + $0x40] sm:$0xff] }
 0x3fb   : > { %4642 = vmatpush.msrb.mxu0 %v4619_v4 }
 0x3fc   : > { %v4320_v1 = vmax.f32 %v4302_v52, 0.0 }
 0x3fe   : > { %v4446_v51 = vmul.f32 %v4367_v8, %v4320_v1 }
 0x3ff   : > { %v4233_v37 = vpop.f32.mrf.mxu3  ;;  %v4482_v21 = vld [vmem:[#allocation2 + $0x8] sm:$0xff] }
 0x400   : > { %4465 = vst.msk [vmem:[#allocation2 + $0x10] sm:$0xff] %vm4462_vm3, %v4446_v51  ;;  %v4281_v50 = vadd.f32 %v4233_v37, %v3850_v12  ;;  %6137 = vmatmul.msk.f32.gmra.mxu3 %vm4462_vm3, %v4482_v21  ;;  %v3820_v51 = vpop.f32.mrf.mxu1 }
 0x402   : > { %v4303_v19 = vadd.f32 %v8315_v17, %v4281_v50 }
 0x404   : > { %v4321_v15 = vmax.f32 %v4303_v19, 0.0  ;;  %v4655_v19 = vld [vmem:[%s9025_s7 + $0x58] sm:$0xff] }
 0x405   : > { %4676 = vmatpush.msrb.mxu1 %v4655_v19 }
 0x406   : > { %v4447_v10 = vmul.f32 %v4372_v53, %v4321_v15 }
 0x407   : > { %v4236_v38 = vpop.f32.mrf.mxu3  ;;  %v4485_v62 = vld [vmem:[#allocation2 + $0x10] sm:$0xff] }
 0x408   : > { %4466 = vst.msk [vmem:[#allocation2 + $0x18] sm:$0xff] %vm4462_vm3, %v4447_v10  ;;  %v4282_v27 = vadd.f32 %v4236_v38, %v3851_v61  ;;  %6134 = vmatmul.msk.f32.vlgmr.msrb.gmra.mxu2 %vm4462_vm3, %v4485_v62  ;;  %v4654_v61 = vld [vmem:[%s9025_s7 + $0x50] sm:$0xff] }
 0x409   : > { %4677 = vmatpush.msrb.mxu1 %v4654_v61  ;;  %v4760_v61 = vld [vmem:[%s9025_s7 + $0x88] sm:$0xff] }
 0x40a   : > { %v4304_v47 = vadd.f32 %v8315_v17, %v4282_v27 }
 0x40c   : > { %v4322_v45 = vmax.f32 %v4304_v47, 0.0 }
 0x40e   : > { %v4448_v0 = vmul.f32 %v8288_v28, %v4322_v45  ;;  %v3853_v28 = vadd.f32 %v3811_v58, %v8206_v54  ;;  %v3854_v54 = vadd.f32 %v3814_v18, %v8213_v42  ;;  %v3823_v42 = vpop.f32.mrf.mxu1 }
 0x40f   : > { %v4239_v6 = vpop.f32.mrf.mxu3  ;;  %v4486_v14 = vld [vmem:[#allocation2 + $0x18] sm:$0xff] }
 0x410   : > { %4467 = vst.msk [vmem:[#allocation2 + $0x20] sm:$0xff] %vm4462_vm3, %v4448_v0  ;;  %v4283_v30 = vadd.f32 %v4239_v6, %v3852_v41  ;;  %6135 = vmatmul.msk.f32.gmra.mxu2 %vm4462_vm3, %v4486_v14  ;;  %v4690_v14 = vld [vmem:[%s9025_s7 + $0x68] sm:$0xff] }
 0x412   : > { %v4305_v7 = vadd.f32 %v8315_v17, %v4283_v30 }
 0x414   : > { %v4323_v33 = vmax.f32 %v4305_v7, 0.0 }
 0x416   : > { %v4449_v60 = vmul.f32 %v8323_v59, %v4323_v33  ;;  %v3826_v0 = vpop.f32.mrf.mxu1 }
 0x417   : > { %v4242_v11 = vpop.f32.mrf.mxu3  ;;  %v4547_v43 = vld [vmem:[#allocation2 + $0x20] sm:$0xff] }
 0x418   : > { %4468 = vst.msk [vmem:[#allocation2 + $0x28] sm:$0xff] %vm4462_vm3, %v4449_v60  ;;  %v4284_v52 = vadd.f32 %v4242_v11, %v3853_v28  ;;  %6138 = vmatmul.msk.f32.vlgmr.msra.gmra.mxu0 %vm4462_vm3, %v4547_v43 }
 0x419   : > { %4711 = vmatpush.msra.mxu0 %v4690_v14 }
 0x41a   : > { %v4306_v1 = vadd.f32 %v8315_v17, %v4284_v52 }
 0x41c   : > { %v4324_v8 = vmax.f32 %v4306_v1, 0.0 }
 0x41e   : > { %v4450_v59 = vmul.f32 %v8281_v3, %v4324_v8  ;;  %v3855_v3 = vadd.f32 %v3817_v35, %v8220_v39  ;;  %v3856_v39 = vadd.f32 %v3820_v51, %v8232_v63  ;;  %v4689_v35 = vld [vmem:[%s9025_s7 + $0x60] sm:$0xff]  ;;  %v3829_v60 = vpop.f32.mrf.mxu1  ;;  %v4412_v8 = vpop.permute.xlu1 %4411 }
 0x41f   : > { %v4245_v12 = vpop.f32.mrf.mxu3  ;;  %v4548_v58 = vld [vmem:[#allocation2 + $0x28] sm:$0xff]  ;;  %4712 = vmatpush.msra.mxu0 %v4689_v35 }
 0x420   : > { %4469 = vst.msk [vmem:[#allocation2 + $0x30] sm:$0xff] %vm4462_vm3, %v4450_v59  ;;  %v4285_v37 = vadd.f32 %v4245_v12, %v3854_v54  ;;  %6139 = vmatmul.msk.f32.gmra.mxu0 %vm4462_vm3, %v4548_v58  ;;  %v4725_v59 = vld [vmem:[%s9025_s7 + $0x78] sm:$0xff]  ;;  %v4724_v58 = vld [vmem:[%s9025_s7 + $0x70] sm:$0xff] }
 0x422   : > { %v4307_v21 = vadd.f32 %v8315_v17, %v4285_v37 }
 0x424   : > { %v4325_v50 = vmax.f32 %v4307_v21, 0.0 }
 0x426   : > { %v4451_v15 = vmul.f32 %v8337_v26, %v4325_v50  ;;  %v3832_v51 = vpop.f32.mrf.mxu1 }
 0x427   : > { %v4248_v53 = vpop.f32.mrf.mxu3  ;;  %v4582_v10 = vld [vmem:[#allocation2 + $0x30] sm:$0xff] }
 0x428   : > { %4470 = vst.msk [vmem:[#allocation2 + $0x38] sm:$0xff] %vm4462_vm3, %v4451_v15  ;;  %v4286_v38 = vadd.f32 %v4248_v53, %v3855_v3  ;;  %6140 = vmatmul.msk.f32.vlgmr.msra.gmra.mxu1 %vm4462_vm3, %v4582_v10  ;;  %v2999_v53 = vadd.f32 %v8226_v29, %v8120_v44  ;;  %v4759_v29 = vld [vmem:[%s9025_s7 + $0x80] sm:$0xff] }
 0x429   : > { %4746 = vmatpush.msra.mxu1 %v4725_v59 }
 0x42a   : > { %v4308_v62 = vadd.f32 %v8315_v17, %v4286_v38 }
 0x42b   : > { %4747 = vmatpush.msra.mxu1 %v4724_v58 }
 0x42c   : > { %v4326_v27 = vmax.f32 %v4308_v62, 0.0 }
 0x42e   : > { %v4452_v26 = vmul.f32 %v8301_v23, %v4326_v27  ;;  %v3857_v23 = vadd.f32 %v3823_v42, %v8241_v20  ;;  %v3858_v20 = vadd.f32 %v3826_v0, %v8253_v40  ;;  %v3835_v15 = vpop.f32.mrf.mxu1 }
 0x42f   : > { %v4251_v18 = vpop.f32.mrf.mxu3  ;;  %v4583_v47 = vld [vmem:[#allocation2 + $0x38] sm:$0xff] }
 0x430   : > { %4471 = vst.msk [vmem:[#allocation2 + $0x40] sm:$0xff] %vm4462_vm3, %v4452_v26  ;;  %v4287_v45 = vadd.f32 %v4251_v18, %v3856_v39  ;;  %6141 = vmatmul.msk.f32.gmra.mxu1 %vm4462_vm3, %v4583_v47  ;;  %v3000_v39 = vadd.f32 %v8236_v31, %v8134_v9  ;;  %v3001_v9 = vadd.f32 %v8251_v13, %v8143_v55 }
 0x432   : > { %v4309_v41 = vadd.f32 %v8315_v17, %v4287_v45  ;;  %v3431_v47 = vadd.f32 %v8285_v22, %v3000_v39  ;;  %v4437_v45 = vpop.permute.xlu1 %4436  ;;  %v5291_v39 = vld [vmem:[%s9027_s9 + $0x268] sm:$0xff] }
 0x434   : > { %v4327_v6 = vmax.f32 %v4309_v41, 0.0 }
 0x436   : > { %v4453_v30 = vmul.f32 %v8291_v56, %v4327_v6 }
 0x437   : > { %v4254_v63 = vpop.f32.mrf.mxu3  ;;  %v4617_v7 = vld [vmem:[#allocation2 + $0x40] sm:$0xff] }
 0x438   : > { %4472 = vst.msk [vmem:[#allocation2 + $0x48] sm:$0xff] %vm4462_vm3, %v4453_v30  ;;  %v4288_v33 = vadd.f32 %v4254_v63, %v3857_v23  ;;  %6142 = vmatmul.msk.f32.vlgmr.msrb.gmra.mxu0 %vm4462_vm3, %v4617_v7  ;;  %v3432_v23 = vadd.f32 %v8294_v34, %v3001_v9 }
 0x439   : > { %4781 = vmatpush.msrb.mxu0 %v4760_v61  ;;  %v4804_v61 = vld [vmem:[%s9027_s9] sm:$0xff] }
 0x43a   : > { %v4310_v5 = vadd.f32 %v8315_v17, %v4288_v33  ;;  %v4432_v35 = vpop.permute.xlu1 %4431 }
 0x43b   : > { %4782 = vmatpush.msrb.mxu0 %v4759_v29  ;;  %v5290_v29 = vld [vmem:[%s9027_s9 + $0x260] sm:$0xff] }
 0x43c   : > { %v4328_v28 = vmax.f32 %v4310_v5, 0.0 }
 0x43e   : > { %v4454_v56 = vmul.f32 %v8306_v25, %v4328_v28  ;;  %v3859_v25 = vadd.f32 %v3829_v60, %v8265_v48  ;;  %v3860_v48 = vadd.f32 %v3832_v51, %v8273_v16  ;;  %v3002_v28 = vadd.f32 %v8267_v32, %v8152_v46 }
 0x43f   : > { %v4257_v11 = vpop.f32.mrf.mxu3  ;;  %v4618_v43 = vld [vmem:[#allocation2 + $0x48] sm:$0xff] }
 0x440   : > { %4473 = vst.msk [vmem:[#allocation2 + $0x50] sm:$0xff] %vm4462_vm3, %v4454_v56  ;;  %v4289_v4 = vadd.f32 %v4257_v11, %v3858_v20  ;;  %6143 = vmatmul.msk.f32.gmra.mxu0 %vm4462_vm3, %v4618_v43  ;;  %v3433_v13 = vadd.f32 %v8304_v49, %v3002_v28 }
 0x442   : > { %v4311_v52 = vadd.f32 %v8315_v17, %v4289_v4 }
 0x444   : > { %v4329_v1 = vmax.f32 %v4311_v52, 0.0 }
 0x446   : > { %v4455_v54 = vmul.f32 %v4412_v8, %v4329_v1  ;;  %v4442_v8 = vpop.permute.xlu2 %4441 }
 0x447   : > { %v4260_v40 = vpop.f32.mrf.mxu3  ;;  %v4652_v12 = vld [vmem:[#allocation2 + $0x50] sm:$0xff] }
 0x448   : > { %4474 = vst.msk [vmem:[#allocation2 + $0x58] sm:$0xff] %vm4462_vm3, %v4455_v54  ;;  %v4290_v37 = vadd.f32 %v4260_v40, %v3859_v25  ;;  %6144 = vmatmul.msk.f32.vlgmr.msrb.gmra.mxu1 %vm4462_vm3, %v4652_v12  ;;  %v4819_v12 = vld [vmem:[%s9027_s9 + $0x70] sm:$0xff] }
 0x449   : > { %4836 = vmatpush.msrb.mxu1 %v4819_v12 }
 0x44a   : > { %v4312_v21 = vadd.f32 %v8315_v17, %v4290_v37 }
 0x44c   : > { %v4330_v50 = vmax.f32 %v4312_v21, 0.0  ;;  %v4817_v21 = vld [vmem:[%s9027_s9 + $0x60] sm:$0xff] }
 0x44d   : > { %4837 = vmatpush.msrb.mxu1 %v4817_v21 }
 0x44e   : > { %v4456_v19 = vmul.f32 %v8334_v24, %v4330_v50  ;;  %v3430_v24 = vadd.f32 %v8278_v57, %v2999_v53  ;;  %v3838_v57 = vpop.f32.mrf.mxu1  ;;  %v4815_v50 = vld [vmem:[%s9027_s9 + $0x50] sm:$0xff] }
 0x44f   : > { %v4263_v3 = vpop.f32.mrf.mxu3  ;;  %v4653_v42 = vld [vmem:[#allocation2 + $0x58] sm:$0xff]  ;;  %v3862_v6 = vadd.f32 %v3838_v57, %v3431_v47  ;;  %4838 = vmatpush.msrb.mxu1 %v4815_v50  ;;  %v4910_v47 = vld [vmem:[%s9027_s9 + $0x90] sm:$0xff] }
 0x450   : > { %4475 = vst.msk [vmem:[#allocation2 + $0x60] sm:$0xff] %vm4462_vm3, %v4456_v19  ;;  %v4291_v10 = vadd.f32 %v4263_v3, %v3860_v48  ;;  %6145 = vmatmul.msk.f32.gmra.mxu1 %vm4462_vm3, %v4653_v42  ;;  %v3861_v27 = vadd.f32 %v3835_v15, %v3430_v24  ;;  %v4810_v48 = vld [vmem:[%s9027_s9 + $0x30] sm:$0xff]  ;;  %v4808_v15 = vld [vmem:[%s9027_s9 + $0x20] sm:$0xff]  ;;  %v4820_v24 = vld [vmem:[%s9027_s9 + $0x78] sm:$0xff] }
 0x451   : > { %v4806_v3 = vld [vmem:[%s9027_s9 + $0x10] sm:$0xff]  ;;  %v4811_v50 = vld [vmem:[%s9027_s9 + $0x38] sm:$0xff] }
 0x452   : > { %v4313_v16 = vadd.f32 %v8315_v17, %v4291_v10  ;;  %v4813_v10 = vld [vmem:[%s9027_s9 + $0x40] sm:$0xff] }
 0x453   : > { %4839 = vmatpush.msrb.mxu1 %v4813_v10  ;;  %v4805_v10 = vld [vmem:[%s9027_s9 + $0x8] sm:$0xff] }
 0x454   : > { %v4331_v38 = vmax.f32 %v4313_v16, 0.0  ;;  %v4914_v16 = vld [vmem:[%s9027_s9 + $0xb0] sm:$0xff] }
 0x456   : > { %v4457_v62 = vmul.f32 %v8326_v2, %v4331_v38  ;;  %v3841_v63 = vpop.f32.mrf.mxu1  ;;  %v5292_v38 = vld [vmem:[%s9027_s9 + $0x270] sm:$0xff] }
 0x457   : > { %v4266_v26 = vpop.f32.mrf.mxu3  ;;  %v4687_v44 = vld [vmem:[#allocation2 + $0x60] sm:$0xff]  ;;  %5309 = vmatpush.msra.mxu2 %v5292_v38 }
 0x458   : > { %4476 = vst.msk [vmem:[#allocation2 + $0x68] sm:$0xff] %vm4462_vm3, %v4457_v62  ;;  %v4292_v18 = vadd.f32 %v4266_v26, %v3861_v27  ;;  %6146 = vmatmul.msk.f32.vlgmr.msra.gmra.mxu0 %vm4462_vm3, %v4687_v44  ;;  %v5293_v27 = vld [vmem:[%s9027_s9 + $0x278] sm:$0xff]  ;;  %v4818_v26 = vld [vmem:[%s9027_s9 + $0x68] sm:$0xff]  ;;  %v4912_v44 = vld [vmem:[%s9027_s9 + $0xa0] sm:$0xff] }
 0x459   : > { %4879 = vmatpush.msra.mxu0 %v4810_v48  ;;  %5329 = vmatpush.msra.mxu3 %v5293_v27  ;;  %v5508_v27 = vld [vmem:[%s9027_s9 + $0x370] sm:$0xff] }
 0x45a   : > { %v4314_v2 = vadd.f32 %v8315_v17, %v4292_v18  ;;  %v4816_v18 = vld [vmem:[%s9027_s9 + $0x58] sm:$0xff]  ;;  %5310 = vmatpush.msra.mxu2 %v5290_v29  ;;  %v5020_v29 = vld [vmem:[%s9027_s9 + $0x120] sm:$0xff] }
 0x45b   : > { %4880 = vmatpush.msra.mxu0 %v4808_v15  ;;  %5330 = vmatpush.msra.mxu3 %v5291_v39  ;;  %v4809_v15 = vld [vmem:[%s9027_s9 + $0x28] sm:$0xff]  ;;  %v5506_v39 = vld [vmem:[%s9027_s9 + $0x360] sm:$0xff] }
 0x45c   : > { %v4332_v0 = vmax.f32 %v4314_v2, 0.0  ;;  %v5288_v2 = vld [vmem:[%s9027_s9 + $0x250] sm:$0xff] }
 0x45d   : > { %4881 = vmatpush.msra.mxu0 %v4806_v3  ;;  %5311 = vmatpush.msra.mxu2 %v5288_v2  ;;  %v4966_v3 = vld [vmem:[%s9027_s9 + $0xe0] sm:$0xff]  ;;  %v5504_v2 = vld [vmem:[%s9027_s9 + $0x350] sm:$0xff] }
 0x45e   : > { %v4458_v41 = vmul.f32 %v8343_v36, %v4332_v0  ;;  %v3863_v36 = vadd.f32 %v3841_v63, %v3432_v23  ;;  %v3844_v20 = vpop.f32.mrf.mxu1  ;;  %v5400_v63 = vld [vmem:[%s9027_s9 + $0x2f0] sm:$0xff] }
 0x45f   : > { %v4269_v14 = vpop.f32.mrf.mxu3  ;;  %v4688_v30 = vld [vmem:[#allocation2 + $0x68] sm:$0xff]  ;;  %v3864_v43 = vadd.f32 %v3844_v20, %v3433_v13  ;;  %4882 = vmatpush.msra.mxu0 %v4804_v61  ;;  %v5396_v13 = vld [vmem:[%s9027_s9 + $0x2d0] sm:$0xff]  ;;  %v4962_v61 = vld [vmem:[%s9027_s9 + $0xc0] sm:$0xff] }
 0x460   : > { %4477 = vst.msk [vmem:[#allocation2 + $0x70] sm:$0xff] %vm4462_vm3, %v4458_v41  ;;  %v4293_v31 = vadd.f32 %v4269_v14, %v3862_v6  ;;  %6147 = vmatmul.msk.f32.gmra.mxu0 %vm4462_vm3, %v4688_v30  ;;  %v4814_v41 = vld [vmem:[%s9027_s9 + $0x48] sm:$0xff]  ;;  %v4908_v6 = vld [vmem:[%s9027_s9 + $0x80] sm:$0xff] }
 0x461   : > { %v5286_v14 = vld [vmem:[%s9027_s9 + $0x240] sm:$0xff]  ;;  %v5287_v30 = vld [vmem:[%s9027_s9 + $0x248] sm:$0xff] }
 0x462   : > { %v4315_v22 = vadd.f32 %v8315_v17, %v4293_v31  ;;  %5312 = vmatpush.msra.mxu2 %v5286_v14  ;;  %v5395_v20 = vld [vmem:[%s9027_s9 + $0x2c8] sm:$0xff] }
 0x464   : > { %v4333_v7 = vmax.f32 %v4315_v22, 0.0  ;;  %5417 = vmatpush.msrb.mxu2 %v5400_v63  ;;  %v5617_v63 = vld [vmem:[%s9027_s9 + $0x3f8] sm:$0xff] }
 0x466   : > { %v4459_v33 = vmul.f32 %v4432_v35, %v4333_v7  ;;  %v5401_v7 = vld [vmem:[%s9027_s9 + $0x2f8] sm:$0xff] }
 0x467   : > { %v4272_v5 = vpop.f32.mrf.mxu3  ;;  %v4722_v60 = vld [vmem:[#allocation2 + $0x70] sm:$0xff] }
 0x468   : > { %4478 = vst.msk [vmem:[#allocation2 + $0x78] sm:$0xff] %vm4462_vm3, %v4459_v33  ;;  %v4294_v55 = vadd.f32 %v4272_v5, %v3863_v36  ;;  %6148 = vmatmul.msk.f32.vlgmr.msra.gmra.mxu1 %vm4462_vm3, %v4722_v60  ;;  %v5398_v33 = vld [vmem:[%s9027_s9 + $0x2e0] sm:$0xff]  ;;  %v5399_v60 = vld [vmem:[%s9027_s9 + $0x2e8] sm:$0xff] }
 0x469   : > { %4856 = vmatpush.msra.mxu1 %v4820_v24  ;;  %5418 = vmatpush.msrb.mxu2 %v5398_v33  ;;  %v4915_v24 = vld [vmem:[%s9027_s9 + $0xb8] sm:$0xff]  ;;  %v5614_v33 = vld [vmem:[%s9027_s9 + $0x3e0] sm:$0xff] }
 0x46a   : > { %v4316_v34 = vadd.f32 %v8315_v17, %v4294_v55 }
 0x46b   : > { %4857 = vmatpush.msra.mxu1 %v4818_v26  ;;  %5419 = vmatpush.msrb.mxu2 %v5396_v13  ;;  %v5509_v26 = vld [vmem:[%s9027_s9 + $0x378] sm:$0xff]  ;;  %v5612_v13 = vld [vmem:[%s9027_s9 + $0x3d0] sm:$0xff] }
 0x46c   : > { %v4334_v56 = vmax.f32 %v4316_v34, 0.0  ;;  %v5397_v34 = vld [vmem:[%s9027_s9 + $0x2d8] sm:$0xff] }
 0x46d   : > { %4858 = vmatpush.msra.mxu1 %v4816_v18  ;;  %v5507_v18 = vld [vmem:[%s9027_s9 + $0x368] sm:$0xff] }
 0x46e   : > { %v4460_v11 = vmul.f32 %v4437_v45, %v4334_v56  ;;  %v5289_v45 = vld [vmem:[%s9027_s9 + $0x258] sm:$0xff]  ;;  %v5394_v56 = vld [vmem:[%s9027_s9 + $0x2c0] sm:$0xff] }
 0x46f   : > { %v4275_v4 = vpop.f32.mrf.mxu3  ;;  %v4723_v52 = vld [vmem:[#allocation2 + $0x78] sm:$0xff]  ;;  %5331 = vmatpush.msra.mxu3 %v5289_v45  ;;  %4859 = vmatpush.msra.mxu1 %v4814_v41  ;;  %v4909_v41 = vld [vmem:[%s9027_s9 + $0x88] sm:$0xff] }
 0x470   : > { %4479 = vst.msk [vmem:[#allocation2 + $0x80] sm:$0xff] %vm4462_vm3, %v4460_v11  ;;  %v4295_v1 = vadd.f32 %v4275_v4, %v3864_v43  ;;  %6149 = vmatmul.msk.f32.gmra.mxu1 %vm4462_vm3, %v4723_v52  ;;  %5420 = vmatpush.msrb.mxu2 %v5394_v56  ;;  %v5505_v45 = vld [vmem:[%s9027_s9 + $0x358] sm:$0xff]  ;;  %v4963_v56 = vld [vmem:[%s9027_s9 + $0xc8] sm:$0xff] }
 0x471   : > { %5332 = vmatpush.msra.mxu3 %v5287_v30  ;;  %v5502_v30 = vld [vmem:[%s9027_s9 + $0x340] sm:$0xff] }
 0x472   : > { %v4317_v46 = vadd.f32 %v8315_v17, %v4295_v1  ;;  %v6200_v1 = vld [vmem:[%s9026_s8] ss:$0 sm:$0xff] }
 0x473   : > { %5437 = vmatpush.msrb.mxu3 %v5401_v7  ;;  %v4967_v7 = vld [vmem:[%s9027_s9 + $0xe8] sm:$0xff] }
 0x474   : > { %v4335_v32 = vmax.f32 %v4317_v46, 0.0 }
 0x475   : > { %5438 = vmatpush.msrb.mxu3 %v5399_v60  ;;  %v4965_v60 = vld [vmem:[%s9027_s9 + $0xd8] sm:$0xff] }
 0x476   : > { %v4461_v51 = vmul.f32 %v4442_v8, %v4335_v32 }
 0x477   : > { %v4757_v59 = vld [vmem:[#allocation2 + $0x80] sm:$0xff]  ;;  %5439 = vmatpush.msrb.mxu3 %v5397_v34  ;;  %v5613_v34 = vld [vmem:[%s9027_s9 + $0x3d8] sm:$0xff] }
 0x478   : > { %4480 = vst.msk [vmem:[#allocation2 + $0x88] sm:$0xff] %vm4462_vm3, %v4461_v51  ;;  %6150 = vmatmul.msk.f32.vlgmr.msrb.gmra.mxu0 %vm4462_vm3, %v4757_v59 }
 0x479   : > { %4931 = vmatpush.msrb.mxu0 %v4914_v16  ;;  %5440 = vmatpush.msrb.mxu3 %v5395_v20  ;;  %v5070_v20 = vld [vmem:[%s9027_s9 + $0x140] sm:$0xff] }
 0x47b   : > { %v4541_v62 = vpop.f32.mrf.mxu3  ;;  %4932 = vmatpush.msrb.mxu0 %v4912_v44  ;;  %v4913_v44 = vld [vmem:[%s9027_s9 + $0xa8] sm:$0xff] }
 0x47d   : > { %4933 = vmatpush.msrb.mxu0 %v4910_v47  ;;  %v5018_v47 = vld [vmem:[%s9027_s9 + $0x110] sm:$0xff] }
 0x47f   : > { %v4758_v49 = vld [vmem:[#allocation2 + $0x88] sm:$0xff]  ;;  %4934 = vmatpush.msrb.mxu0 %v4908_v6  ;;  %v5016_v6 = vld [vmem:[%s9027_s9 + $0x100] sm:$0xff] }
 0x480   : > { %6151 = vmatmul.msk.f32.gmra.mxu0 %vm4462_vm3, %v4758_v49 }
 0x483   : > { %v4544_v36 = vpop.f32.mrf.mxu3 }
 0x48b   : > { %v4512_v42 = vpop.f32.mrf.mxu2 }
 0x48c   : > { %v4542_v0 = vadd.f32 %v4541_v62, %v4512_v42  ;;  %v4807_v42 = vld [vmem:[%s9027_s9 + $0x18] sm:$0xff]  ;;  %v5022_v62 = vld [vmem:[%s9027_s9 + $0x130] sm:$0xff] }
 0x493   : > { %v4515_v23 = vpop.f32.mrf.mxu2 }
 0x494   : > { %v4545_v28 = vadd.f32 %v4544_v36, %v4515_v23  ;;  %v5076_v23 = vld [vmem:[%s9027_s9 + $0x170] sm:$0xff]  ;;  %v5615_v36 = vld [vmem:[%s9027_s9 + $0x3e8] sm:$0xff] }
 0x495   : > { %v4574_v54 = vpop.f32.mrf.mxu0 }
 0x496   : > { %v4580_v9 = vadd.f32 %v4574_v54, %v4542_v0 }
 0x49d   : > { %v8456_v25 = vpop.f32.mrf.mxu0 }
 0x49e   : > { %v4581_v11 = vadd.f32 %v8456_v25, %v4545_v28  ;;  %v5072_v28 = vld [vmem:[%s9027_s9 + $0x150] sm:$0xff] }
 0x4a5   : > { %v4609_v40 = vpop.f32.mrf.mxu1 }
 0x4a6   : > { %v4615_v31 = vadd.f32 %v4609_v40, %v4580_v9  ;;  %v5503_v9 = vld [vmem:[%s9027_s9 + $0x348] sm:$0xff] }
 0x4ad   : > { %v8461_v58 = vpop.f32.mrf.mxu1 }
 0x4ae   : > { %v4616_v4 = vadd.f32 %v8461_v58, %v4581_v11  ;;  %v5610_v11 = vld [vmem:[%s9027_s9 + $0x3c0] sm:$0xff] }
 0x4b5   : > { %v4644_v17 = vpop.f32.mrf.mxu0 }
 0x4b6   : > { %v4650_v35 = vadd.f32 %v4644_v17, %v4615_v31  ;;  %v4969_v31 = vld [vmem:[%s9027_s9 + $0xf8] sm:$0xff] }
 0x4bd   : > { %v8463_v37 = vpop.f32.mrf.mxu0 }
 0x4be   : > { %v4651_v32 = vadd.f32 %v8463_v37, %v4616_v4  ;;  %v4968_v37 = vld [vmem:[%s9027_s9 + $0xf0] sm:$0xff]  ;;  %v5023_v4 = vld [vmem:[%s9027_s9 + $0x138] sm:$0xff] }
 0x4c5   : > { %v8471_v19 = vpop.f32.mrf.mxu1 }
 0x4c6   : > { %v4685_v55 = vadd.f32 %v8471_v19, %v4650_v35  ;;  %v5074_v35 = vld [vmem:[%s9027_s9 + $0x160] sm:$0xff] }
 0x4cd   : > { %v4682_v57 = vpop.f32.mrf.mxu1 }
 0x4ce   : > { %v4686_v51 = vadd.f32 %v4682_v57, %v4651_v32  ;;  %v4911_v57 = vld [vmem:[%s9027_s9 + $0x98] sm:$0xff]  ;;  %v5128_v32 = vld [vmem:[%s9027_s9 + $0x1a0] sm:$0xff] }
 0x4d5   : > { %v4714_v53 = vpop.f32.mrf.mxu0 }
 0x4d6   : > { %v4720_v43 = vadd.f32 %v4714_v53, %v4685_v55  ;;  %v4964_v53 = vld [vmem:[%s9027_s9 + $0xd0] sm:$0xff] }
 0x4dd   : > { %v4717_v22 = vpop.f32.mrf.mxu0 }
 0x4de   : > { %v4721_v54 = vadd.f32 %v4717_v22, %v4686_v51  ;;  %v5616_v22 = vld [vmem:[%s9027_s9 + $0x3f0] sm:$0xff]  ;;  %v5019_v51 = vld [vmem:[%s9027_s9 + $0x118] sm:$0xff] }
 0x4e5   : > { %v4749_v5 = vpop.f32.mrf.mxu1 }
 0x4e6   : > { %v4755_v52 = vadd.f32 %v4749_v5, %v4720_v43  ;;  %v5611_v43 = vld [vmem:[%s9027_s9 + $0x3c8] sm:$0xff] }
 0x4ed   : > { %v4752_v49 = vpop.f32.mrf.mxu1 }
 0x4ee   : > { %v4756_v40 = vadd.f32 %v4752_v49, %v4721_v54  ;;  %v5017_v49 = vld [vmem:[%s9027_s9 + $0x108] sm:$0xff]  ;;  %v5124_v54 = vld [vmem:[%s9027_s9 + $0x180] sm:$0xff] }
 0x4f5   : > { %v4784_v46 = vpop.f32.mrf.mxu0 }
 0x4f6   : > { %v4790_v8 = vadd.f32 %v4784_v46, %v4755_v52  ;;  %v5130_v52 = vld [vmem:[%s9027_s9 + $0x1b0] sm:$0xff]  ;;  %v5021_v46 = vld [vmem:[%s9027_s9 + $0x128] sm:$0xff] }
 0x4f8   : > { %v4796_v59 = vadd.f32 %v6200_v1, %v4790_v8 }
 0x4fa   : > { %v4798_v25 = vmax.f32 %v4796_v59, 0.0  ;;  %v5126_v59 = vld [vmem:[%s9027_s9 + $0x190] sm:$0xff] }
 0x4fc   : > { %4801 = vst.msk [vmem:[#allocation3] sm:$0xff] %vm4800_vm4, %v4798_v25  ;;  %v5077_v25 = vld [vmem:[%s9027_s9 + $0x178] sm:$0xff] }
 0x4fd   : > { %v4787_v12 = vpop.f32.mrf.mxu0 }
 0x4fe   : > { %v4791_v17 = vadd.f32 %v4787_v12, %v4756_v40  ;;  %v5184_v40 = vld [vmem:[%s9027_s9 + $0x1f0] sm:$0xff]  ;;  %v5075_v12 = vld [vmem:[%s9027_s9 + $0x168] sm:$0xff] }
 0x500   : > { %v4797_v58 = vadd.f32 %v6200_v1, %v4791_v17  ;;  %v5182_v17 = vld [vmem:[%s9027_s9 + $0x1e0] sm:$0xff] }
 0x502   : > { %v4799_v21 = vmax.f32 %v4797_v58, 0.0 }
 0x503   : > { %v4812_v19 = vld [vmem:[#allocation3 + $0x1] sm:$0x1]  ;;  %v4803_v48 = vld [vmem:[#allocation3] sm:$0x1]  ;;  %v8598_v16 = vld [vmem:[#allocation3 + $0x2] sm:$0x1] }
 0x504   : > { %4802 = vst.msk [vmem:[#allocation3 + $0x8] sm:$0xff] %vm4800_vm4, %v4799_v21  ;;  %6152 = vmatmul.msk.f32.vlgmr.msrb.gmra.mxu1 %vm4800_vm4, %v4812_v19  ;;  %6154 = vmatmul.msk.f32.vlgmr.msra.gmra.mxu0 %vm4800_vm4, %v4803_v48  ;;  %v4961_v0 = vld [vmem:[#allocation3 + $0x3] sm:$0x1]  ;;  %v5015_v5 = vld [vmem:[#allocation3 + $0x4] sm:$0x1]  ;;  %v5073_v21 = vld [vmem:[%s9027_s9 + $0x158] sm:$0xff] }
 0x505   : > { %4899 = vmatpush.msrb.mxu1 %v4811_v50  ;;  %4985 = vmatpush.msra.mxu0 %v4968_v37  ;;  %v5069_v1 = vld [vmem:[#allocation3 + $0x5] sm:$0x1]  ;;  %v5123_v58 = vld [vmem:[#allocation3 + $0x6] sm:$0x1]  ;;  %v5071_v37 = vld [vmem:[%s9027_s9 + $0x148] sm:$0xff] }
 0x506   : > { %v5180_v50 = vld [vmem:[%s9027_s9 + $0x1d0] sm:$0xff] }
 0x507   : > { %4900 = vmatpush.msrb.mxu1 %v4809_v15  ;;  %4986 = vmatpush.msra.mxu0 %v4966_v3  ;;  %v5238_v15 = vld [vmem:[%s9027_s9 + $0x230] sm:$0xff]  ;;  %v5129_v3 = vld [vmem:[%s9027_s9 + $0x1a8] sm:$0xff] }
 0x509   : > { %4901 = vmatpush.msrb.mxu1 %v4807_v42  ;;  %4987 = vmatpush.msra.mxu0 %v4964_v53  ;;  %v5236_v42 = vld [vmem:[%s9027_s9 + $0x220] sm:$0xff]  ;;  %v5177_v53 = vld [vmem:[#allocation3 + $0x7] sm:$0x1] }
 0x50b   : > { %v5285_v38 = vld [vmem:[#allocation3 + $0x9] sm:$0x1]  ;;  %4902 = vmatpush.msrb.mxu1 %v4805_v10  ;;  %4988 = vmatpush.msra.mxu0 %v4962_v61  ;;  %v5393_v14 = vld [vmem:[#allocation3 + $0xb] sm:$0x1]  ;;  %v5501_v55 = vld [vmem:[#allocation3 + $0xd] sm:$0x1] }
 0x50c   : > { %6153 = vmatmul.msk.f32.vlgmr.msra.gmra.mxu1 %vm4800_vm4, %v4812_v19  ;;  %6156 = vmatmul.msk.f32.vlgmr.msrb.gmra.mxu0 %vm4800_vm4, %v8598_v16  ;;  %v5609_v8 = vld [vmem:[#allocation3 + $0xf] sm:$0x1]  ;;  %v5178_v19 = vld [vmem:[%s9027_s9 + $0x1c0] sm:$0xff]  ;;  %v5234_v61 = vld [vmem:[%s9027_s9 + $0x210] sm:$0xff] }
 0x50d   : > { %6170 = vmatmul.msk.f32.vlgmr.msra.gmra.mxu2 %vm4800_vm4, %v5285_v38  ;;  %6171 = vmatmul.msk.f32.vlgmr.msra.gmra.mxu3 %vm4800_vm4, %v5285_v38  ;;  %v5127_v10 = vld [vmem:[%s9027_s9 + $0x198] sm:$0xff] }
 0x50e   : > { %4951 = vmatpush.msra.mxu1 %v4915_v24  ;;  %5039 = vmatpush.msrb.mxu0 %v5022_v62  ;;  %v5125_v24 = vld [vmem:[%s9027_s9 + $0x188] sm:$0xff]  ;;  %v5185_v38 = vld [vmem:[%s9027_s9 + $0x1f8] sm:$0xff]  ;;  %v5346_v62 = vld [vmem:[%s9027_s9 + $0x2b0] sm:$0xff] }
 0x50f   : > { %5525 = vmatpush.msra.mxu2 %v5508_v27  ;;  %5545 = vmatpush.msra.mxu3 %v5509_v26  ;;  %v5183_v27 = vld [vmem:[%s9027_s9 + $0x1e8] sm:$0xff]  ;;  %v5344_v26 = vld [vmem:[%s9027_s9 + $0x2a0] sm:$0xff] }
 0x510   : > { %4952 = vmatpush.msra.mxu1 %v4913_v44  ;;  %5040 = vmatpush.msrb.mxu0 %v5020_v29  ;;  %v5231_v44 = vld [vmem:[#allocation3 + $0x8] sm:$0x1] }
 0x511   : > { %5526 = vmatpush.msra.mxu2 %v5506_v39  ;;  %5546 = vmatpush.msra.mxu3 %v5507_v18  ;;  %v5181_v29 = vld [vmem:[%s9027_s9 + $0x1d8] sm:$0xff]  ;;  %v5342_v39 = vld [vmem:[%s9027_s9 + $0x290] sm:$0xff]  ;;  %v5179_v18 = vld [vmem:[%s9027_s9 + $0x1c8] sm:$0xff] }
 0x512   : > { %4953 = vmatpush.msra.mxu1 %v4911_v57  ;;  %5041 = vmatpush.msrb.mxu0 %v5018_v47  ;;  %v5340_v57 = vld [vmem:[%s9027_s9 + $0x280] sm:$0xff]  ;;  %v5239_v47 = vld [vmem:[%s9027_s9 + $0x238] sm:$0xff] }
 0x513   : > { %5527 = vmatpush.msra.mxu2 %v5504_v2  ;;  %5547 = vmatpush.msra.mxu3 %v5505_v45  ;;  %v5454_v2 = vld [vmem:[%s9027_s9 + $0x330] sm:$0xff]  ;;  %v5237_v45 = vld [vmem:[%s9027_s9 + $0x228] sm:$0xff] }
 0x514   : > { %6155 = vmatmul.msk.f32.vlgmr.msrb.gmra.mxu1 %vm4800_vm4, %v4803_v48  ;;  %6158 = vmatmul.msk.f32.vlgmr.msra.gmra.mxu0 %vm4800_vm4, %v4961_v0  ;;  %v5131_v48 = vld [vmem:[%s9027_s9 + $0x1b8] sm:$0xff] }
 0x515   : > { %6174 = vmatmul.msk.f32.vlgmr.msrb.gmra.mxu2 %vm4800_vm4, %v5393_v14  ;;  %6175 = vmatmul.msk.f32.vlgmr.msrb.gmra.mxu3 %vm4800_vm4, %v5393_v14  ;;  %v5450_v14 = vld [vmem:[%s9027_s9 + $0x310] sm:$0xff] }
 0x516   : > { %4954 = vmatpush.msra.mxu1 %v4909_v41  ;;  %5042 = vmatpush.msrb.mxu0 %v5016_v6  ;;  %v5339_v41 = vld [vmem:[#allocation3 + $0xa] sm:$0x1] }
 0x517   : > { %5528 = vmatpush.msra.mxu2 %v5502_v30  ;;  %5548 = vmatpush.msra.mxu3 %v5503_v9  ;;  %v5235_v6 = vld [vmem:[%s9027_s9 + $0x218] sm:$0xff]  ;;  %v5233_v30 = vld [vmem:[%s9027_s9 + $0x208] sm:$0xff]  ;;  %v5448_v9 = vld [vmem:[%s9027_s9 + $0x300] sm:$0xff] }
 0x518   : > { %5005 = vmatpush.msrb.mxu1 %v4969_v31  ;;  %5093 = vmatpush.msra.mxu0 %v5076_v23  ;;  %v5347_v31 = vld [vmem:[%s9027_s9 + $0x2b8] sm:$0xff]  ;;  %v5562_v23 = vld [vmem:[%s9027_s9 + $0x3b0] sm:$0xff] }
 0x519   : > { %5633 = vmatpush.msrb.mxu2 %v5616_v22  ;;  %5653 = vmatpush.msrb.mxu3 %v5617_v63  ;;  %v5345_v22 = vld [vmem:[%s9027_s9 + $0x2a8] sm:$0xff]  ;;  %v5560_v63 = vld [vmem:[%s9027_s9 + $0x3a0] sm:$0xff] }
 0x51a   : > { %5006 = vmatpush.msrb.mxu1 %v4967_v7  ;;  %5094 = vmatpush.msra.mxu0 %v5074_v35  ;;  %v5447_v7 = vld [vmem:[#allocation3 + $0xc] sm:$0x1] }
 0x51b   : > { %5634 = vmatpush.msrb.mxu2 %v5614_v33  ;;  %5654 = vmatpush.msrb.mxu3 %v5615_v36  ;;  %v5343_v35 = vld [vmem:[%s9027_s9 + $0x298] sm:$0xff]  ;;  %v5558_v33 = vld [vmem:[%s9027_s9 + $0x390] sm:$0xff]  ;;  %v5341_v36 = vld [vmem:[%s9027_s9 + $0x288] sm:$0xff] }
 0x51c   : > { %6157 = vmatmul.msk.f32.vlgmr.msra.gmra.mxu1 %vm4800_vm4, %v8598_v16  ;;  %6160 = vmatmul.msk.f32.vlgmr.msrb.gmra.mxu0 %vm4800_vm4, %v5015_v5  ;;  %v5232_v16 = vld [vmem:[%s9027_s9 + $0x200] sm:$0xff] }
 0x51d   : > { %6178 = vmatmul.msk.f32.vlgmr.msra.gmra.mxu2 %vm4800_vm4, %v5501_v55  ;;  %6179 = vmatmul.msk.f32.vlgmr.msra.gmra.mxu3 %vm4800_vm4, %v5501_v55  ;;  %v5555_v55 = vld [vmem:[#allocation3 + $0xe] sm:$0x1] }
 0x51e   : > { %5007 = vmatpush.msrb.mxu1 %v4965_v60  ;;  %5095 = vmatpush.msra.mxu0 %v5072_v28  ;;  %v5455_v60 = vld [vmem:[%s9027_s9 + $0x338] sm:$0xff]  ;;  %v5453_v28 = vld [vmem:[%s9027_s9 + $0x328] sm:$0xff] }
 0x51f   : > { %5635 = vmatpush.msrb.mxu2 %v5612_v13  ;;  %5655 = vmatpush.msrb.mxu3 %v5613_v34  ;;  %v5451_v13 = vld [vmem:[%s9027_s9 + $0x318] sm:$0xff]  ;;  %v5449_v34 = vld [vmem:[%s9027_s9 + $0x308] sm:$0xff] }
 0x520   : > { %5008 = vmatpush.msrb.mxu1 %v4963_v56  ;;  %5096 = vmatpush.msra.mxu0 %v5070_v20  ;;  %v5563_v56 = vld [vmem:[%s9027_s9 + $0x3b8] sm:$0xff]  ;;  %v5561_v20 = vld [vmem:[%s9027_s9 + $0x3a8] sm:$0xff] }
 0x521   : > { %5636 = vmatpush.msrb.mxu2 %v5610_v11  ;;  %5656 = vmatpush.msrb.mxu3 %v5611_v43  ;;  %v5559_v11 = vld [vmem:[%s9027_s9 + $0x398] sm:$0xff]  ;;  %v5557_v43 = vld [vmem:[%s9027_s9 + $0x388] sm:$0xff] }
 0x522   : > { %5059 = vmatpush.msra.mxu1 %v5023_v4  ;;  %5147 = vmatpush.msrb.mxu0 %v5130_v52 }
 0x524   : > { %6159 = vmatmul.msk.f32.vlgmr.msrb.gmra.mxu1 %vm4800_vm4, %v4961_v0  ;;  %6162 = vmatmul.msk.f32.vlgmr.msra.gmra.mxu0 %vm4800_vm4, %v5069_v1  ;;  %v5452_v0 = vld [vmem:[%s9027_s9 + $0x320] sm:$0xff] }
 0x525   : > { %6182 = vmatmul.msk.f32.vlgmr.msrb.gmra.mxu2 %vm4800_vm4, %v5609_v8  ;;  %6183 = vmatmul.msk.f32.vlgmr.msrb.gmra.mxu3 %vm4800_vm4, %v5609_v8 }
 0x526   : > { %5060 = vmatpush.msra.mxu1 %v5021_v46  ;;  %5148 = vmatpush.msrb.mxu0 %v5128_v32 }
 0x528   : > { %5061 = vmatpush.msra.mxu1 %v5019_v51  ;;  %5149 = vmatpush.msrb.mxu0 %v5126_v59 }
 0x52a   : > { %5062 = vmatpush.msra.mxu1 %v5017_v49  ;;  %5150 = vmatpush.msrb.mxu0 %v5124_v54  ;;  %v5688_v49 = vld [vmem:[%s9029_s11 + $0x78] sm:$0xff]  ;;  %v5687_v54 = vld [vmem:[%s9029_s11 + $0x70] sm:$0xff] }
 0x52c   : > { %5113 = vmatpush.msrb.mxu1 %v5077_v25  ;;  %5201 = vmatpush.msra.mxu0 %v5184_v40  ;;  %v5686_v25 = vld [vmem:[%s9029_s11 + $0x68] sm:$0xff] }
 0x52d   : > { %6161 = vmatmul.msk.f32.vlgmr.msra.gmra.mxu1 %vm4800_vm4, %v5015_v5  ;;  %6164 = vmatmul.msk.f32.vlgmr.msrb.gmra.mxu0 %vm4800_vm4, %v5123_v58  ;;  %v5556_v5 = vld [vmem:[%s9027_s9 + $0x380] sm:$0xff] }
 0x52e   : > { %5114 = vmatpush.msrb.mxu1 %v5075_v12  ;;  %5202 = vmatpush.msra.mxu0 %v5182_v17  ;;  %v5685_v17 = vld [vmem:[%s9029_s11 + $0x60] sm:$0xff] }
 0x530   : > { %5115 = vmatpush.msrb.mxu1 %v5073_v21  ;;  %5203 = vmatpush.msra.mxu0 %v5180_v50  ;;  %v5683_v21 = vld [vmem:[%s9029_s11 + $0x50] sm:$0xff]  ;;  %v5682_v50 = vld [vmem:[%s9029_s11 + $0x48] sm:$0xff] }
 0x532   : > { %5116 = vmatpush.msrb.mxu1 %v5071_v37  ;;  %5204 = vmatpush.msra.mxu0 %v5178_v19 }
 0x534   : > { %5167 = vmatpush.msra.mxu1 %v5131_v48  ;;  %5255 = vmatpush.msrb.mxu0 %v5238_v15  ;;  %v5681_v48 = vld [vmem:[%s9029_s11 + $0x40] sm:$0xff]  ;;  %v5680_v15 = vld [vmem:[%s9029_s11 + $0x38] sm:$0xff] }
 0x535   : > { %6163 = vmatmul.msk.f32.vlgmr.msrb.gmra.mxu1 %vm4800_vm4, %v5069_v1  ;;  %6166 = vmatmul.msk.f32.vlgmr.msra.gmra.mxu0 %vm4800_vm4, %v5177_v53 }
 0x536   : > { %5168 = vmatpush.msra.mxu1 %v5129_v3  ;;  %5256 = vmatpush.msrb.mxu0 %v5236_v42  ;;  %v5704_v3 = vld [vmem:[%s9029_s11 + $0xf8] sm:$0xff]  ;;  %v5703_v42 = vld [vmem:[%s9029_s11 + $0xf0] sm:$0xff] }
 0x538   : > { %5169 = vmatpush.msra.mxu1 %v5127_v10  ;;  %5257 = vmatpush.msrb.mxu0 %v5234_v61  ;;  %v5702_v10 = vld [vmem:[%s9029_s11 + $0xe8] sm:$0xff] }
 0x539   : > { %v5678_v61 = vld [vmem:[%s9029_s11 + $0x28] sm:$0xff] }
 0x53a   : > { %5170 = vmatpush.msra.mxu1 %v5125_v24  ;;  %5258 = vmatpush.msrb.mxu0 %v5232_v16 }
 0x53c   : > { %5221 = vmatpush.msrb.mxu1 %v5185_v38  ;;  %5363 = vmatpush.msra.mxu0 %v5346_v62 }
 0x53d   : > { %6165 = vmatmul.msk.f32.vlgmr.msra.gmra.mxu1 %vm4800_vm4, %v5123_v58  ;;  %6168 = vmatmul.msk.f32.vlgmr.msrb.gmra.mxu0 %vm4800_vm4, %v5231_v44  ;;  %v5684_v58 = vld [vmem:[%s9029_s11 + $0x58] sm:$0xff] }
 0x53e   : > { %5222 = vmatpush.msrb.mxu1 %v5183_v27  ;;  %5364 = vmatpush.msra.mxu0 %v5344_v26  ;;  %v5677_v26 = vld [vmem:[%s9029_s11 + $0x20] sm:$0xff] }
 0x540   : > { %5223 = vmatpush.msrb.mxu1 %v5181_v29  ;;  %5365 = vmatpush.msra.mxu0 %v5342_v39  ;;  %v5676_v39 = vld [vmem:[%s9029_s11 + $0x18] sm:$0xff] }
 0x542   : > { %5224 = vmatpush.msrb.mxu1 %v5179_v18  ;;  %5366 = vmatpush.msra.mxu0 %v5340_v57  ;;  %v5700_v18 = vld [vmem:[%s9029_s11 + $0xd8] sm:$0xff] }
 0x544   : > { %5275 = vmatpush.msra.mxu1 %v5239_v47  ;;  %5471 = vmatpush.msrb.mxu0 %v5454_v2  ;;  %v5675_v47 = vld [vmem:[%s9029_s11 + $0x10] sm:$0xff] }
 0x545   : > { %6167 = vmatmul.msk.f32.vlgmr.msrb.gmra.mxu1 %vm4800_vm4, %v5177_v53  ;;  %6172 = vmatmul.msk.f32.vlgmr.msra.gmra.mxu0 %vm4800_vm4, %v5339_v41  ;;  %v5679_v53 = vld [vmem:[%s9029_s11 + $0x30] sm:$0xff] }
 0x546   : > { %5276 = vmatpush.msra.mxu1 %v5237_v45  ;;  %5472 = vmatpush.msrb.mxu0 %v5452_v0  ;;  %v5699_v2 = vld [vmem:[%s9029_s11 + $0xd0] sm:$0xff]  ;;  %v5674_v45 = vld [vmem:[%s9029_s11 + $0x8] sm:$0xff] }
 0x548   : > { %5277 = vmatpush.msra.mxu1 %v5235_v6  ;;  %5473 = vmatpush.msrb.mxu0 %v5450_v14  ;;  %v5698_v6 = vld [vmem:[%s9029_s11 + $0xc8] sm:$0xff] }
 0x54a   : > { %5278 = vmatpush.msra.mxu1 %v5233_v30  ;;  %5474 = vmatpush.msrb.mxu0 %v5448_v9  ;;  %v5673_v30 = vld [vmem:[%s9029_s11] sm:$0xff] }
 0x54b   : > { %v5697_v9 = vld [vmem:[%s9029_s11 + $0xc0] sm:$0xff] }
 0x54c   : > { %5383 = vmatpush.msrb.mxu1 %v5347_v31  ;;  %5579 = vmatpush.msra.mxu0 %v5562_v23  ;;  %v5696_v23 = vld [vmem:[%s9029_s11 + $0xb8] sm:$0xff] }
 0x54d   : > { %6169 = vmatmul.msk.f32.vlgmr.msra.gmra.mxu1 %vm4800_vm4, %v5231_v44  ;;  %6176 = vmatmul.msk.f32.vlgmr.msrb.gmra.mxu0 %vm4800_vm4, %v5447_v7  ;;  %v5701_v44 = vld [vmem:[%s9029_s11 + $0xe0] sm:$0xff] }
 0x54e   : > { %5384 = vmatpush.msrb.mxu1 %v5345_v22  ;;  %5580 = vmatpush.msra.mxu0 %v5560_v63 }
 0x550   : > { %5385 = vmatpush.msrb.mxu1 %v5343_v35  ;;  %5581 = vmatpush.msra.mxu0 %v5558_v33  ;;  %v5694_v33 = vld [vmem:[%s9029_s11 + $0xa8] sm:$0xff] }
 0x552   : > { %5386 = vmatpush.msrb.mxu1 %v5341_v36  ;;  %5582 = vmatpush.msra.mxu0 %v5556_v5 }
 0x554   : > { %5491 = vmatpush.msra.mxu1 %v5455_v60  ;;  %5706 = vmatpush.msrb.mxu0 %v5688_v49 }
 0x555   : > { %6173 = vmatmul.msk.f32.vlgmr.msrb.gmra.mxu1 %vm4800_vm4, %v5339_v41  ;;  %6180 = vmatmul.msk.f32.vlgmr.msra.gmra.mxu0 %vm4800_vm4, %v5555_v55 }
 0x556   : > { %5492 = vmatpush.msra.mxu1 %v5453_v28  ;;  %5707 = vmatpush.msrb.mxu0 %v5687_v54 }
 0x558   : > { %5493 = vmatpush.msra.mxu1 %v5451_v13  ;;  %5708 = vmatpush.msrb.mxu0 %v5686_v25  ;;  %v5693_v13 = vld [vmem:[%s9029_s11 + $0xa0] sm:$0xff] }
 0x55a   : > { %5494 = vmatpush.msra.mxu1 %v5449_v34  ;;  %5709 = vmatpush.msrb.mxu0 %v5685_v17 }
 0x55c   : > { %5599 = vmatpush.msrb.mxu1 %v5563_v56  ;;  %5710 = vmatpush.msrb.mxu0 %v5684_v58 }
 0x55d   : > { %6177 = vmatmul.msk.f32.vlgmr.msra.gmra.mxu1 %vm4800_vm4, %v5447_v7  ;;  %v5695_v7 = vld [vmem:[%s9029_s11 + $0xb0] sm:$0xff] }
 0x55e   : > { %5600 = vmatpush.msrb.mxu1 %v5561_v20  ;;  %5711 = vmatpush.msrb.mxu0 %v5683_v21 }
 0x560   : > { %5601 = vmatpush.msrb.mxu1 %v5559_v11  ;;  %5712 = vmatpush.msrb.mxu0 %v5682_v50  ;;  %v5692_v11 = vld [vmem:[%s9029_s11 + $0x98] sm:$0xff] }
 0x562   : > { %5602 = vmatpush.msrb.mxu1 %v5557_v43  ;;  %5713 = vmatpush.msrb.mxu0 %v5681_v48 }
 0x564   : > { %5726 = vmatpush.msra.mxu1 %v5704_v3  ;;  %5714 = vmatpush.msrb.mxu0 %v5680_v15 }
 0x565   : > { %6181 = vmatmul.msk.f32.vlgmr.msrb.gmra.mxu1 %vm4800_vm4, %v5555_v55 }
 0x566   : > { %5727 = vmatpush.msra.mxu1 %v5703_v42  ;;  %5715 = vmatpush.msrb.mxu0 %v5679_v53 }
 0x568   : > { %5728 = vmatpush.msra.mxu1 %v5702_v10  ;;  %5716 = vmatpush.msrb.mxu0 %v5678_v61 }
 0x56a   : > { %5717 = vmatpush.msrb.mxu0 %v5677_v26  ;;  %5729 = vmatpush.msra.mxu1 %v5701_v44 }
 0x56c   : > { %5718 = vmatpush.msrb.mxu0 %v5676_v39  ;;  %5730 = vmatpush.msra.mxu1 %v5700_v18 }
 0x56e   : > { %5719 = vmatpush.msrb.mxu0 %v5675_v47  ;;  %5731 = vmatpush.msra.mxu1 %v5699_v2  ;;  %v5705_v47 = vld [vmem:[%s9030_s12] sm:$0x1] }
 0x570   : > { %5720 = vmatpush.msrb.mxu0 %v5674_v45  ;;  %5732 = vmatpush.msra.mxu1 %v5698_v6 }
 0x572   : > { %5721 = vmatpush.msrb.mxu0 %v5673_v30  ;;  %5733 = vmatpush.msra.mxu1 %v5697_v9 }
 0x574   : > { %5734 = vmatpush.msra.mxu1 %v5696_v23 }
 0x576   : > { %5735 = vmatpush.msra.mxu1 %v5695_v7 }
 0x578   : > { %5736 = vmatpush.msra.mxu1 %v5694_v33 }
 0x57a   : > { %5737 = vmatpush.msra.mxu1 %v5693_v13 }
 0x57c   : > { %5738 = vmatpush.msra.mxu1 %v5692_v11 }
 0x581   : > { %v4841_v4 = vpop.f32.mrf.mxu1  ;;  %v4884_v52 = vpop.f32.mrf.mxu0 }
 0x582   : > { %v4885_v38 = vadd.f32 %v4884_v52, %v4841_v4  ;;  %v5691_v52 = vld [vmem:[%s9029_s11 + $0x90] sm:$0xff] }
 0x583   : > { %5739 = vmatpush.msra.mxu1 %v5691_v52 }
 0x589   : > { %v8893_v1 = vpop.f32.mrf.mxu1  ;;  %v4936_v46 = vpop.f32.mrf.mxu0 }
 0x58a   : > { %v4959_v62 = vadd.f32 %v4936_v46, %v4885_v38 }
 0x590   : > { %v5314_v27 = vpop.f32.mrf.mxu2  ;;  %v5334_v34 = vpop.f32.mrf.mxu3 }
 0x591   : > { %v8895_v32 = vpop.f32.mrf.mxu1  ;;  %v4990_v8 = vpop.f32.mrf.mxu0 }
 0x592   : > { %v5013_v29 = vadd.f32 %v4990_v8, %v4959_v62  ;;  %v4905_v60 = vadd.f32 %v8895_v32, %v8893_v1  ;;  %v5690_v1 = vld [vmem:[%s9029_s11 + $0x88] sm:$0xff] }
 0x593   : > { %5740 = vmatpush.msra.mxu1 %v5690_v1 }
 0x598   : > { %v5422_v22 = vpop.f32.mrf.mxu2 }
 0x599   : > { %v8897_v51 = vpop.f32.mrf.mxu1  ;;  %v5044_v59 = vpop.f32.mrf.mxu0 }
 0x59a   : > { %v5067_v57 = vadd.f32 %v5044_v59, %v5013_v29  ;;  %v4960_v28 = vadd.f32 %v8897_v51, %v4905_v60  ;;  %v5689_v59 = vld [vmem:[%s9029_s11 + $0x80] sm:$0xff] }
 0x59b   : > { %5741 = vmatpush.msra.mxu1 %v5689_v59 }
 0x5a0   : > { %v5530_v43 = vpop.f32.mrf.mxu2 }
 0x5a1   : > { %v8908_v40 = vpop.f32.mrf.mxu1  ;;  %v5098_v12 = vpop.f32.mrf.mxu0 }
 0x5a2   : > { %v5121_v14 = vadd.f32 %v5098_v12, %v5067_v57  ;;  %v5014_v56 = vadd.f32 %v8908_v40, %v4960_v28  ;;  %v5442_v40 = vpop.f32.mrf.mxu3  ;;  %v5663_v12 = vld [vmem:[%s9028_s10] sm:$0x3] }
 0x5a3   : > { %v5666_v44 = vperm.slane %v5663_v12, 1 }
 0x5a8   : > { %v5638_v48 = vpop.f32.mrf.mxu2 }
 0x5aa   : > { %v8922_v37 = vpop.f32.mrf.mxu1  ;;  %v5152_v19 = vpop.f32.mrf.mxu0 }
 0x5ab   : > { %v5175_v31 = vadd.f32 %v5152_v19, %v5121_v14  ;;  %v5068_v4 = vadd.f32 %v8922_v37, %v5014_v56  ;;  %v5665_v19 = vperm.slane %v5663_v12, 0  ;;  %v5550_v61 = vpop.f32.mrf.mxu3 }
 0x5b2   : > { %v5118_v24 = vpop.f32.mrf.mxu1  ;;  %v5206_v16 = vpop.f32.mrf.mxu0 }
 0x5b3   : > { %v5229_v63 = vadd.f32 %v5206_v16, %v5175_v31  ;;  %v5122_v8 = vadd.f32 %v5118_v24, %v5068_v4  ;;  %v5658_v29 = vpop.f32.mrf.mxu3 }
 0x5ba   : > { %v5172_v0 = vpop.f32.mrf.mxu1  ;;  %v5260_v41 = vpop.f32.mrf.mxu0 }
 0x5bb   : > { %v5283_v35 = vadd.f32 %v5260_v41, %v5229_v63  ;;  %v5176_v49 = vadd.f32 %v5172_v0, %v5122_v8 }
 0x5bd   : > { %v5337_v55 = vadd.f32 %v5314_v27, %v5283_v35 }
 0x5c2   : > { %v5226_v36 = vpop.f32.mrf.mxu1  ;;  %v5368_v5 = vpop.f32.mrf.mxu0 }
 0x5c3   : > { %v5391_v20 = vadd.f32 %v5368_v5, %v5337_v55  ;;  %v5230_v25 = vadd.f32 %v5226_v36, %v5176_v49 }
 0x5c5   : > { %v5445_v51 = vadd.f32 %v5422_v22, %v5391_v20 }
 0x5ca   : > { %v5280_v46 = vpop.f32.mrf.mxu1  ;;  %v5476_v32 = vpop.f32.mrf.mxu0 }
 0x5cb   : > { %v5499_v54 = vadd.f32 %v5476_v32, %v5445_v51  ;;  %v5284_v17 = vadd.f32 %v5280_v46, %v5230_v25 }
 0x5cd   : > { %v5553_v58 = vadd.f32 %v5530_v43, %v5499_v54  ;;  %v5338_v15 = vadd.f32 %v5334_v34, %v5284_v17 }
 0x5d2   : > { %v5388_v21 = vpop.f32.mrf.mxu1  ;;  %v5584_v50 = vpop.f32.mrf.mxu0 }
 0x5d3   : > { %v5607_v37 = vadd.f32 %v5584_v50, %v5553_v58  ;;  %v5392_v42 = vadd.f32 %v5388_v21, %v5338_v15 }
 0x5d5   : > { %v5661_v3 = vadd.f32 %v5638_v48, %v5607_v37  ;;  %v5446_v16 = vadd.f32 %v5442_v40, %v5392_v42 }
 0x5d7   : > { %v5669_v53 = vadd.f32 %v5665_v19, %v5661_v3 }
 0x5d9   : > { %v5671_v10 = vmax.f32 %v5669_v53, 0.0 }
 0x5da   : > { %v5496_v24 = vpop.f32.mrf.mxu1 }
 0x5db   : > { %5722 = vmatmul.f32.vlgmr.msrb.gmra.mxu0 %v5671_v10  ;;  %v5500_v38 = vadd.f32 %v5496_v24, %v5446_v16 }
 0x5dd   : > { %v5554_v62 = vadd.f32 %v5550_v61, %v5500_v38 }
 0x5e2   : > { %v5604_v27 = vpop.f32.mrf.mxu1 }
 0x5e3   : > { %v5608_v26 = vadd.f32 %v5604_v27, %v5554_v62 }
 0x5e5   : > { %v5662_v39 = vadd.f32 %v5658_v29, %v5608_v26 }
 0x5e7   : > { %v5670_v18 = vadd.f32 %v5666_v44, %v5662_v39 }
 0x5e9   : > { %v5672_v57 = vmax.f32 %v5670_v18, 0.0 }
 0x5eb   : > { %5742 = vmatmul.f32.vlgmr.msra.gmra.mxu1 %v5672_v57 }
 0x658   : > { %v5723_v2 = vpop.f32.mrf.mxu0 }
 0x659   : > { %v5724_v45 = vadd.f32 %v5723_v2, %v5705_v47 }
 0x668   : > { %v5743_v0 = vpop.f32.mrf.mxu1 }
 0x669   : > { %v5744_v41 = vadd.f32 %v5743_v0, %v5724_v45 }
 0x66b   : > { %5747 = vst.msk [vmem:[%s438_s15] sm:$0x1] %vm5746_vm5, %v5744_v41 }
 0x66c PF: > { %s23_s25 = sadd.s32 1, %s6214_s25  }
 0x66d   : > { %p20_p5 = scmp.ge.s32.totalorder %s23_s25, 4  }
 0x66f   :  { %22 = sbr.rel (!%p20_p5) target bundleno = 1 (0x1), region = 102 }

</bundles_post_ra>
